<compile_context>
chip_gen: v7x
topology: tpu7x:2x2x1
jax: 0.10.0
libtpu: 0.0.40
codegen_flags: <defaults>
</compile_context>

<pallas_src>
import functools

import jax
import jax.numpy as jnp
from jax import lax
from jax.experimental import pallas as pl
from jax.experimental.pallas import tpu as pltpu


def _rcab_kernel(H, W, C, Cr,
                 x_ref, mask_ref,
                 w1_ref, b1_ref, w2_ref, b2_ref,
                 wd1t_ref, bd1_ref, wd2_ref, bd2_ref,
                 out_ref, xpad_ref, hpad_ref):
    f32 = jnp.float32
    Wp = W + 2                      # padded row length
    NROW = H * Wp                   # conv-band rows (incl. 2 junk cols / row)
    BOT = (H + 1) * Wp              # first row of the bottom zero border

    # --- refresh the zero border every step (megacore / restart safe; the
    # --- interior is fully overwritten below, so no full-buffer re-zeroing).
    ztop = jnp.zeros((Wp + 1, C), f32)            # top border row + (1, 0)
    zbot = jnp.zeros((Wp + 2, C), f32)            # bottom border + 2 overrun rows
    xpad_ref[pl.ds(0, Wp + 1), :] = ztop
    xpad_ref[pl.ds(BOT, Wp + 2), :] = zbot
    hpad_ref[pl.ds(0, Wp + 1), :] = ztop
    hpad_ref[pl.ds(BOT, Wp + 2), :] = zbot

    # --- fused SAME padding: scatter input rows into the flat padded buffer.
    zpair = jnp.zeros((2, C), f32)
    for h in range(H):
        base = (h + 1) * Wp
        xpad_ref[pl.ds(base + 1, W), :] = x_ref[0, h]
        xpad_ref[pl.ds(base + W + 1, 2), :] = zpair   # right + next-left border

    # --- conv1 (3x3 SAME) + bias + ReLU: 9 contiguous-band MXU matmuls.
    acc = jnp.zeros((NROW, C), f32)
    for dy in range(3):
        for dx in range(3):
            band = xpad_ref[pl.ds(dy * Wp + dx, NROW), :]
            acc += jnp.dot(band, w1_ref[dy, dx], preferred_element_type=f32)
    h1 = jnp.maximum(acc + b1_ref[...], 0.0)
    # Junk rows are zeroed, so this single shifted store also rewrites the
    # left/right zero border of hpad (no separate border maintenance needed).
    hpad_ref[pl.ds(Wp + 1, NROW), :] = h1 * mask_ref[...]

    # --- conv2 (3x3 SAME) + bias.
    acc = jnp.zeros((NROW, C), f32)
    for dy in range(3):
        for dx in range(3):
            band = hpad_ref[pl.ds(dy * Wp + dx, NROW), :]
            acc += jnp.dot(band, w2_ref[dy, dx], preferred_element_type=f32)
    h2 = acc + b2_ref[...]

    # --- channel attention; the two M=1 matmuls stay off the MXU:
    # VPU broadcast-multiply + XLU lane/sublane reductions.
    y = jnp.sum(h2 * mask_ref[...], axis=0, keepdims=True) * (1.0 / (H * W))  # (1,C)
    z = jnp.sum(y * wd1t_ref[...], axis=1, keepdims=True) + bd1_ref[...]      # (Cr,1)
    z = jnp.maximum(z, 0.0)
    s = jnp.sum(z * wd2_ref[...], axis=0, keepdims=True) + bd2_ref[...]       # (1,C)
    s = jax.nn.sigmoid(s)

    # --- channel scale + residual add; one contiguous store.  Junk rows carry
    # garbage and are dropped in the wrapper.
    x_band = xpad_ref[pl.ds(Wp + 1, NROW), :]
    out_ref[0] = h2 * s + x_band


def rcab_forward(x_nchw, params):
    """RCAB forward. x_nchw: (N, C, H, W) float32 (PyTorch layout)."""
    w1, b1, w2, b2, wd1, bd1, wd2, bd2 = params
    N, C, H, W = x_nchw.shape
    Cr = wd1.shape[1]
    Wp = W + 2
    NROW = H * Wp
    PADROWS = (H + 2) * Wp + 2      # +2: the last taps over-read 2 (zeroed) rows

    x = jnp.transpose(x_nchw, (0, 2, 3, 1)).astype(jnp.float32)   # NHWC
    # TODO(synk): if the surrounding graph can stay NHWC, this transpose and the
    # final one become unnecessary HBM round trips.

    # flat-band validity mask: row r is a real pixel iff (r mod Wp) < W
    mask = (jnp.arange(NROW, dtype=jnp.int32) % Wp < W)
    mask = mask.astype(jnp.float32).reshape(NROW, 1)

    w1_ = w1.astype(jnp.float32)
    w2_ = w2.astype(jnp.float32)
    b1_ = b1.reshape(1, C).astype(jnp.float32)
    b2_ = b2.reshape(1, C).astype(jnp.float32)
    wd1t = wd1.T.astype(jnp.float32)                # (Cr, C)
    bd1_ = bd1.reshape(Cr, 1).astype(jnp.float32)
    wd2_ = wd2.astype(jnp.float32)                  # (Cr, C)
    bd2_ = bd2.reshape(1, C).astype(jnp.float32)

    kernel = functools.partial(_rcab_kernel, H, W, C, Cr)

    def const_spec(shape):
        n = len(shape)
        return pl.BlockSpec(shape, lambda b, _n=n: (0,) * _n)

    out_flat = pl.pallas_call(
        kernel,
        out_shape=jax.ShapeDtypeStruct((N, NROW, C), jnp.float32),
        grid_spec=pltpu.PrefetchScalarGridSpec(
            num_scalar_prefetch=0,
            grid=(N,),
            in_specs=[
                pl.BlockSpec((1, H, W, C), lambda b: (b, 0, 0, 0)),   # x (unpadded)
                const_spec((NROW, 1)),      # valid-row mask
                const_spec((3, 3, C, C)),   # conv1 weight (HWIO)
                const_spec((1, C)),         # conv1 bias
                const_spec((3, 3, C, C)),   # conv2 weight (HWIO)
                const_spec((1, C)),         # conv2 bias
                const_spec((Cr, C)),        # CA squeeze weight (transposed)
                const_spec((Cr, 1)),        # CA squeeze bias
                const_spec((Cr, C)),        # CA excite weight
                const_spec((1, C)),         # CA excite bias
            ],
            out_specs=pl.BlockSpec((1, NROW, C), lambda b: (b, 0, 0)),
            scratch_shapes=[pltpu.VMEM((PADROWS, C), jnp.float32),
                            pltpu.VMEM((PADROWS, C), jnp.float32)],
        ),
        compiler_params=pltpu.CompilerParams(
            dimension_semantics=("parallel",)),   # batch split across TCs on v7x
    )(x, mask, w1_, b1_, w2_, b2_, wd1t, bd1_, wd2_, bd2_)

    # Drop the 2 junk columns per row; the slice fuses with the NHWC->NCHW
    # transpose required by the NCHW interface anyway.
    out_nhwc = out_flat.reshape(N, H, Wp, C)[:, :, :W, :]
    return jnp.transpose(out_nhwc, (0, 3, 1, 2))


def rcab_reference(x_nchw, params):
    """Pure-JAX reference matching the PyTorch module semantics."""
    w1, b1, w2, b2, wd1, bd1, wd2, bd2 = params
    x = jnp.transpose(x_nchw, (0, 2, 3, 1))
    dn = ('NHWC', 'HWIO', 'NHWC')
    h1 = lax.conv_general_dilated(x, w1, (1, 1), 'SAME',
                                  dimension_numbers=dn) + b1
    h1 = jnp.maximum(h1, 0.0)
    h2 = lax.conv_general_dilated(h1, w2, (1, 1), 'SAME',
                                  dimension_numbers=dn) + b2
    y = jnp.mean(h2, axis=(1, 2), keepdims=True)                     # (N,1,1,C)
    y = jnp.maximum(jnp.einsum('nhwc,cr->nhwr', y, wd1) + bd1, 0.0)
    y = jax.nn.sigmoid(jnp.einsum('nhwr,rc->nhwc', y, wd2) + bd2)
    out = h2 * y + x
    return jnp.transpose(out, (0, 3, 1, 2))


if __name__ == "__main__":
    # RCAB defaults: n_feat=64, kernel_size=3, reduction=16, bias=True, bn=False
    N, C, H, W = 2, 64, 16, 16
    reduction = 16
    Cr = C // reduction

    key = jax.random.PRNGKey(0)
    ks = jax.random.split(key, 9)

    x = jax.random.normal(ks[0], (N, C, H, W), jnp.float32)

    # Deterministic synthetic parameters (HWIO conv weights, 1x1 convs as dense).
    w1 = jax.random.normal(ks[1], (3, 3, C, C), jnp.float32) / (3.0 * C ** 0.5)
    b1 = 0.1 * jax.random.normal(ks[2], (C,), jnp.float32)
    w2 = jax.random.normal(ks[3], (3, 3, C, C), jnp.float32) / (3.0 * C ** 0.5)
    b2 = 0.1 * jax.random.normal(ks[4], (C,), jnp.float32)
    wd1 = jax.random.normal(ks[5], (C, Cr), jnp.float32) / (C ** 0.5)
    bd1 = 0.1 * jax.random.normal(ks[6], (Cr,), jnp.float32)
    wd2 = jax.random.normal(ks[7], (Cr, C), jnp.float32) / (Cr ** 0.5)
    bd2 = 0.1 * jax.random.normal(ks[8], (C,), jnp.float32)

    params = (w1, b1, w2, b2, wd1, bd1, wd2, bd2)

    out = jax.jit(rcab_forward)(x, params)
    out = jax.block_until_ready(out)

    ref = rcab_reference(x, params)
    err = float(jnp.max(jnp.abs(out - ref)))
    assert out.shape == (N, C, H, W), out.shape
    assert jnp.allclose(out, ref, atol=1e-2, rtol=1e-2), f"max abs err {err}"

    print("KERNEL_OK")
</pallas_src>

<mosaic_0001>
module attributes {stable_mosaic.version = 11 : i64} {
  func.func @_rcab_kernel(%arg0: i32, %arg1: memref<1x16x16x64xf32, #tpu.memory_space<vmem>>, %arg2: memref<288x1xf32, #tpu.memory_space<vmem>>, %arg3: memref<3x3x64x64xf32, #tpu.memory_space<vmem>>, %arg4: memref<1x64xf32, #tpu.memory_space<vmem>>, %arg5: memref<3x3x64x64xf32, #tpu.memory_space<vmem>>, %arg6: memref<1x64xf32, #tpu.memory_space<vmem>>, %arg7: memref<4x64xf32, #tpu.memory_space<vmem>>, %arg8: memref<4x1xf32, #tpu.memory_space<vmem>>, %arg9: memref<4x64xf32, #tpu.memory_space<vmem>>, %arg10: memref<1x64xf32, #tpu.memory_space<vmem>>, %arg11: memref<1x288x64xf32, #tpu.memory_space<vmem>>, %arg12: memref<326x64xf32, #tpu.memory_space<vmem>>, %arg13: memref<326x64xf32, #tpu.memory_space<vmem>>) attributes {dimension_semantics = [#tpu.dimension_semantics<parallel>], iteration_bounds = array<i64: 2>, scalar_prefetch = 0 : i64, scratch_operands = 2 : i64, tpu.core_type = #tpu.core_type<tc>, window_params = [{transform_indices = @transform_0, window_bounds = array<i64: 1, 16, 16, 64>}, {pipeline_mode = #tpu.pipeline_mode<synchronous>, transform_indices = @transform_1, window_bounds = array<i64: 288, 1>}, {pipeline_mode = #tpu.pipeline_mode<synchronous>, transform_indices = @transform_2, window_bounds = array<i64: 3, 3, 64, 64>}, {pipeline_mode = #tpu.pipeline_mode<synchronous>, transform_indices = @transform_3, window_bounds = array<i64: 1, 64>}, {pipeline_mode = #tpu.pipeline_mode<synchronous>, transform_indices = @transform_4, window_bounds = array<i64: 3, 3, 64, 64>}, {pipeline_mode = #tpu.pipeline_mode<synchronous>, transform_indices = @transform_5, window_bounds = array<i64: 1, 64>}, {pipeline_mode = #tpu.pipeline_mode<synchronous>, transform_indices = @transform_6, window_bounds = array<i64: 4, 64>}, {pipeline_mode = #tpu.pipeline_mode<synchronous>, transform_indices = @transform_7, window_bounds = array<i64: 4, 1>}, {pipeline_mode = #tpu.pipeline_mode<synchronous>, transform_indices = @transform_8, window_bounds = array<i64: 4, 64>}, {pipeline_mode = #tpu.pipeline_mode<synchronous>, transform_indices = @transform_9, window_bounds = array<i64: 1, 64>}, {transform_indices = @transform_10, window_bounds = array<i64: 1, 288, 64>}]} {
    %cst = arith.constant 0.000000e+00 : f32
    %0 = vector.broadcast %cst : f32 to vector<19x64xf32>
    %cst_0 = arith.constant 0.000000e+00 : f32
    %1 = vector.broadcast %cst_0 : f32 to vector<20x64xf32>
    %c0 = arith.constant 0 : index
    %c0_1 = arith.constant 0 : index
    %2 = vector.load %arg12[%c0, %c0_1] : memref<326x64xf32, #tpu.memory_space<vmem>>, vector<19x64xf32>
    tpu.vector_store %arg12[%c0, %c0_1], %0 {strides = array<i32>} : memref<326x64xf32, #tpu.memory_space<vmem>>, vector<19x64xf32>,
    %c306 = arith.constant 306 : index
    %c0_2 = arith.constant 0 : index
    %3 = vector.load %arg12[%c306, %c0_2] : memref<326x64xf32, #tpu.memory_space<vmem>>, vector<20x64xf32>
    tpu.vector_store %arg12[%c306, %c0_2], %1 {strides = array<i32>} : memref<326x64xf32, #tpu.memory_space<vmem>>, vector<20x64xf32>,
    %c0_3 = arith.constant 0 : index
    %c0_4 = arith.constant 0 : index
    %4 = vector.load %arg13[%c0_3, %c0_4] : memref<326x64xf32, #tpu.memory_space<vmem>>, vector<19x64xf32>
    tpu.vector_store %arg13[%c0_3, %c0_4], %0 {strides = array<i32>} : memref<326x64xf32, #tpu.memory_space<vmem>>, vector<19x64xf32>,
    %c306_5 = arith.constant 306 : index
    %c0_6 = arith.constant 0 : index
    %5 = vector.load %arg13[%c306_5, %c0_6] : memref<326x64xf32, #tpu.memory_space<vmem>>, vector<20x64xf32>
    tpu.vector_store %arg13[%c306_5, %c0_6], %1 {strides = array<i32>} : memref<326x64xf32, #tpu.memory_space<vmem>>, vector<20x64xf32>,
    %cst_7 = arith.constant 0.000000e+00 : f32
    %6 = vector.broadcast %cst_7 : f32 to vector<2x64xf32>
    %c0_8 = arith.constant 0 : index
    %c0_9 = arith.constant 0 : index
    %c0_10 = arith.constant 0 : index
    %c0_11 = arith.constant 0 : index
    %7 = vector.load %arg1[%c0_8, %c0_9, %c0_10, %c0_11] : memref<1x16x16x64xf32, #tpu.memory_space<vmem>>, vector<1x1x16x64xf32>
    %8 = vector.shape_cast %7 : vector<1x1x16x64xf32> to vector<16x64xf32>
    %c19 = arith.constant 19 : index
    %c0_12 = arith.constant 0 : index
    %9 = vector.load %arg12[%c19, %c0_12] : memref<326x64xf32, #tpu.memory_space<vmem>>, vector<16x64xf32>
    tpu.vector_store %arg12[%c19, %c0_12], %8 {strides = array<i32>} : memref<326x64xf32, #tpu.memory_space<vmem>>, vector<16x64xf32>,
    %c35 = arith.constant 35 : index
    %c0_13 = arith.constant 0 : index
    %10 = vector.load %arg12[%c35, %c0_13] : memref<326x64xf32, #tpu.memory_space<vmem>>, vector<2x64xf32>
    tpu.vector_store %arg12[%c35, %c0_13], %6 {strides = array<i32>} : memref<326x64xf32, #tpu.memory_space<vmem>>, vector<2x64xf32>,
    %c0_14 = arith.constant 0 : index
    %c1 = arith.constant 1 : index
    %c0_15 = arith.constant 0 : index
    %c0_16 = arith.constant 0 : index
    %11 = vector.load %arg1[%c0_14, %c1, %c0_15, %c0_16] : memref<1x16x16x64xf32, #tpu.memory_space<vmem>>, vector<1x1x16x64xf32>
    %12 = vector.shape_cast %11 : vector<1x1x16x64xf32> to vector<16x64xf32>
    %c37 = arith.constant 37 : index
    %c0_17 = arith.constant 0 : index
    %13 = vector.load %arg12[%c37, %c0_17] : memref<326x64xf32, #tpu.memory_space<vmem>>, vector<16x64xf32>
    tpu.vector_store %arg12[%c37, %c0_17], %12 {strides = array<i32>} : memref<326x64xf32, #tpu.memory_space<vmem>>, vector<16x64xf32>,
    %c53 = arith.constant 53 : index
    %c0_18 = arith.constant 0 : index
    %14 = vector.load %arg12[%c53, %c0_18] : memref<326x64xf32, #tpu.memory_space<vmem>>, vector<2x64xf32>
    tpu.vector_store %arg12[%c53, %c0_18], %6 {strides = array<i32>} : memref<326x64xf32, #tpu.memory_space<vmem>>, vector<2x64xf32>,
    %c0_19 = arith.constant 0 : index
    %c2 = arith.constant 2 : index
    %c0_20 = arith.constant 0 : index
    %c0_21 = arith.constant 0 : index
    %15 = vector.load %arg1[%c0_19, %c2, %c0_20, %c0_21] : memref<1x16x16x64xf32, #tpu.memory_space<vmem>>, vector<1x1x16x64xf32>
    %16 = vector.shape_cast %15 : vector<1x1x16x64xf32> to vector<16x64xf32>
    %c55 = arith.constant 55 : index
    %c0_22 = arith.constant 0 : index
    %17 = vector.load %arg12[%c55, %c0_22] : memref<326x64xf32, #tpu.memory_space<vmem>>, vector<16x64xf32>
    tpu.vector_store %arg12[%c55, %c0_22], %16 {strides = array<i32>} : memref<326x64xf32, #tpu.memory_space<vmem>>, vector<16x64xf32>,
    %c71 = arith.constant 71 : index
    %c0_23 = arith.constant 0 : index
    %18 = vector.load %arg12[%c71, %c0_23] : memref<326x64xf32, #tpu.memory_space<vmem>>, vector<2x64xf32>
    tpu.vector_store %arg12[%c71, %c0_23], %6 {strides = array<i32>} : memref<326x64xf32, #tpu.memory_space<vmem>>, vector<2x64xf32>,
    %c0_24 = arith.constant 0 : index
    %c3 = arith.constant 3 : index
    %c0_25 = arith.constant 0 : index
    %c0_26 = arith.constant 0 : index
    %19 = vector.load %arg1[%c0_24, %c3, %c0_25, %c0_26] : memref<1x16x16x64xf32, #tpu.memory_space<vmem>>, vector<1x1x16x64xf32>
    %20 = vector.shape_cast %19 : vector<1x1x16x64xf32> to vector<16x64xf32>
    %c73 = arith.constant 73 : index
    %c0_27 = arith.constant 0 : index
    %21 = vector.load %arg12[%c73, %c0_27] : memref<326x64xf32, #tpu.memory_space<vmem>>, vector<16x64xf32>
    tpu.vector_store %arg12[%c73, %c0_27], %20 {strides = array<i32>} : memref<326x64xf32, #tpu.memory_space<vmem>>, vector<16x64xf32>,
    %c89 = arith.constant 89 : index
    %c0_28 = arith.constant 0 : index
    %22 = vector.load %arg12[%c89, %c0_28] : memref<326x64xf32, #tpu.memory_space<vmem>>, vector<2x64xf32>
    tpu.vector_store %arg12[%c89, %c0_28], %6 {strides = array<i32>} : memref<326x64xf32, #tpu.memory_space<vmem>>, vector<2x64xf32>,
    %c0_29 = arith.constant 0 : index
    %c4 = arith.constant 4 : index
    %c0_30 = arith.constant 0 : index
    %c0_31 = arith.constant 0 : index
    %23 = vector.load %arg1[%c0_29, %c4, %c0_30, %c0_31] : memref<1x16x16x64xf32, #tpu.memory_space<vmem>>, vector<1x1x16x64xf32>
    %24 = vector.shape_cast %23 : vector<1x1x16x64xf32> to vector<16x64xf32>
    %c91 = arith.constant 91 : index
    %c0_32 = arith.constant 0 : index
    %25 = vector.load %arg12[%c91, %c0_32] : memref<326x64xf32, #tpu.memory_space<vmem>>, vector<16x64xf32>
    tpu.vector_store %arg12[%c91, %c0_32], %24 {strides = array<i32>} : memref<326x64xf32, #tpu.memory_space<vmem>>, vector<16x64xf32>,
    %c107 = arith.constant 107 : index
    %c0_33 = arith.constant 0 : index
    %26 = vector.load %arg12[%c107, %c0_33] : memref<326x64xf32, #tpu.memory_space<vmem>>, vector<2x64xf32>
    tpu.vector_store %arg12[%c107, %c0_33], %6 {strides = array<i32>} : memref<326x64xf32, #tpu.memory_space<vmem>>, vector<2x64xf32>,
    %c0_34 = arith.constant 0 : index
    %c5 = arith.constant 5 : index
    %c0_35 = arith.constant 0 : index
    %c0_36 = arith.constant 0 : index
    %27 = vector.load %arg1[%c0_34, %c5, %c0_35, %c0_36] : memref<1x16x16x64xf32, #tpu.memory_space<vmem>>, vector<1x1x16x64xf32>
    %28 = vector.shape_cast %27 : vector<1x1x16x64xf32> to vector<16x64xf32>
    %c109 = arith.constant 109 : index
    %c0_37 = arith.constant 0 : index
    %29 = vector.load %arg12[%c109, %c0_37] : memref<326x64xf32, #tpu.memory_space<vmem>>, vector<16x64xf32>
    tpu.vector_store %arg12[%c109, %c0_37], %28 {strides = array<i32>} : memref<326x64xf32, #tpu.memory_space<vmem>>, vector<16x64xf32>,
    %c125 = arith.constant 125 : index
    %c0_38 = arith.constant 0 : index
    %30 = vector.load %arg12[%c125, %c0_38] : memref<326x64xf32, #tpu.memory_space<vmem>>, vector<2x64xf32>
    tpu.vector_store %arg12[%c125, %c0_38], %6 {strides = array<i32>} : memref<326x64xf32, #tpu.memory_space<vmem>>, vector<2x64xf32>,
    %c0_39 = arith.constant 0 : index
    %c6 = arith.constant 6 : index
    %c0_40 = arith.constant 0 : index
    %c0_41 = arith.constant 0 : index
    %31 = vector.load %arg1[%c0_39, %c6, %c0_40, %c0_41] : memref<1x16x16x64xf32, #tpu.memory_space<vmem>>, vector<1x1x16x64xf32>
    %32 = vector.shape_cast %31 : vector<1x1x16x64xf32> to vector<16x64xf32>
    %c127 = arith.constant 127 : index
    %c0_42 = arith.constant 0 : index
    %33 = vector.load %arg12[%c127, %c0_42] : memref<326x64xf32, #tpu.memory_space<vmem>>, vector<16x64xf32>
    tpu.vector_store %arg12[%c127, %c0_42], %32 {strides = array<i32>} : memref<326x64xf32, #tpu.memory_space<vmem>>, vector<16x64xf32>,
    %c143 = arith.constant 143 : index
    %c0_43 = arith.constant 0 : index
    %34 = vector.load %arg12[%c143, %c0_43] : memref<326x64xf32, #tpu.memory_space<vmem>>, vector<2x64xf32>
    tpu.vector_store %arg12[%c143, %c0_43], %6 {strides = array<i32>} : memref<326x64xf32, #tpu.memory_space<vmem>>, vector<2x64xf32>,
    %c0_44 = arith.constant 0 : index
    %c7 = arith.constant 7 : index
    %c0_45 = arith.constant 0 : index
    %c0_46 = arith.constant 0 : index
    %35 = vector.load %arg1[%c0_44, %c7, %c0_45, %c0_46] : memref<1x16x16x64xf32, #tpu.memory_space<vmem>>, vector<1x1x16x64xf32>
    %36 = vector.shape_cast %35 : vector<1x1x16x64xf32> to vector<16x64xf32>
    %c145 = arith.constant 145 : index
    %c0_47 = arith.constant 0 : index
    %37 = vector.load %arg12[%c145, %c0_47] : memref<326x64xf32, #tpu.memory_space<vmem>>, vector<16x64xf32>
    tpu.vector_store %arg12[%c145, %c0_47], %36 {strides = array<i32>} : memref<326x64xf32, #tpu.memory_space<vmem>>, vector<16x64xf32>,
    %c161 = arith.constant 161 : index
    %c0_48 = arith.constant 0 : index
    %38 = vector.load %arg12[%c161, %c0_48] : memref<326x64xf32, #tpu.memory_space<vmem>>, vector<2x64xf32>
    tpu.vector_store %arg12[%c161, %c0_48], %6 {strides = array<i32>} : memref<326x64xf32, #tpu.memory_space<vmem>>, vector<2x64xf32>,
    %c0_49 = arith.constant 0 : index
    %c8 = arith.constant 8 : index
    %c0_50 = arith.constant 0 : index
    %c0_51 = arith.constant 0 : index
    %39 = vector.load %arg1[%c0_49, %c8, %c0_50, %c0_51] : memref<1x16x16x64xf32, #tpu.memory_space<vmem>>, vector<1x1x16x64xf32>
    %40 = vector.shape_cast %39 : vector<1x1x16x64xf32> to vector<16x64xf32>
    %c163 = arith.constant 163 : index
    %c0_52 = arith.constant 0 : index
    %41 = vector.load %arg12[%c163, %c0_52] : memref<326x64xf32, #tpu.memory_space<vmem>>, vector<16x64xf32>
    tpu.vector_store %arg12[%c163, %c0_52], %40 {strides = array<i32>} : memref<326x64xf32, #tpu.memory_space<vmem>>, vector<16x64xf32>,
    %c179 = arith.constant 179 : index
    %c0_53 = arith.constant 0 : index
    %42 = vector.load %arg12[%c179, %c0_53] : memref<326x64xf32, #tpu.memory_space<vmem>>, vector<2x64xf32>
    tpu.vector_store %arg12[%c179, %c0_53], %6 {strides = array<i32>} : memref<326x64xf32, #tpu.memory_space<vmem>>, vector<2x64xf32>,
    %c0_54 = arith.constant 0 : index
    %c9 = arith.constant 9 : index
    %c0_55 = arith.constant 0 : index
    %c0_56 = arith.constant 0 : index
    %43 = vector.load %arg1[%c0_54, %c9, %c0_55, %c0_56] : memref<1x16x16x64xf32, #tpu.memory_space<vmem>>, vector<1x1x16x64xf32>
    %44 = vector.shape_cast %43 : vector<1x1x16x64xf32> to vector<16x64xf32>
    %c181 = arith.constant 181 : index
    %c0_57 = arith.constant 0 : index
    %45 = vector.load %arg12[%c181, %c0_57] : memref<326x64xf32, #tpu.memory_space<vmem>>, vector<16x64xf32>
    tpu.vector_store %arg12[%c181, %c0_57], %44 {strides = array<i32>} : memref<326x64xf32, #tpu.memory_space<vmem>>, vector<16x64xf32>,
    %c197 = arith.constant 197 : index
    %c0_58 = arith.constant 0 : index
    %46 = vector.load %arg12[%c197, %c0_58] : memref<326x64xf32, #tpu.memory_space<vmem>>, vector<2x64xf32>
    tpu.vector_store %arg12[%c197, %c0_58], %6 {strides = array<i32>} : memref<326x64xf32, #tpu.memory_space<vmem>>, vector<2x64xf32>,
    %c0_59 = arith.constant 0 : index
    %c10 = arith.constant 10 : index
    %c0_60 = arith.constant 0 : index
    %c0_61 = arith.constant 0 : index
    %47 = vector.load %arg1[%c0_59, %c10, %c0_60, %c0_61] : memref<1x16x16x64xf32, #tpu.memory_space<vmem>>, vector<1x1x16x64xf32>
    %48 = vector.shape_cast %47 : vector<1x1x16x64xf32> to vector<16x64xf32>
    %c199 = arith.constant 199 : index
    %c0_62 = arith.constant 0 : index
    %49 = vector.load %arg12[%c199, %c0_62] : memref<326x64xf32, #tpu.memory_space<vmem>>, vector<16x64xf32>
    tpu.vector_store %arg12[%c199, %c0_62], %48 {strides = array<i32>} : memref<326x64xf32, #tpu.memory_space<vmem>>, vector<16x64xf32>,
    %c215 = arith.constant 215 : index
    %c0_63 = arith.constant 0 : index
    %50 = vector.load %arg12[%c215, %c0_63] : memref<326x64xf32, #tpu.memory_space<vmem>>, vector<2x64xf32>
    tpu.vector_store %arg12[%c215, %c0_63], %6 {strides = array<i32>} : memref<326x64xf32, #tpu.memory_space<vmem>>, vector<2x64xf32>,
    %c0_64 = arith.constant 0 : index
    %c11 = arith.constant 11 : index
    %c0_65 = arith.constant 0 : index
    %c0_66 = arith.constant 0 : index
    %51 = vector.load %arg1[%c0_64, %c11, %c0_65, %c0_66] : memref<1x16x16x64xf32, #tpu.memory_space<vmem>>, vector<1x1x16x64xf32>
    %52 = vector.shape_cast %51 : vector<1x1x16x64xf32> to vector<16x64xf32>
    %c217 = arith.constant 217 : index
    %c0_67 = arith.constant 0 : index
    %53 = vector.load %arg12[%c217, %c0_67] : memref<326x64xf32, #tpu.memory_space<vmem>>, vector<16x64xf32>
    tpu.vector_store %arg12[%c217, %c0_67], %52 {strides = array<i32>} : memref<326x64xf32, #tpu.memory_space<vmem>>, vector<16x64xf32>,
    %c233 = arith.constant 233 : index
    %c0_68 = arith.constant 0 : index
    %54 = vector.load %arg12[%c233, %c0_68] : memref<326x64xf32, #tpu.memory_space<vmem>>, vector<2x64xf32>
    tpu.vector_store %arg12[%c233, %c0_68], %6 {strides = array<i32>} : memref<326x64xf32, #tpu.memory_space<vmem>>, vector<2x64xf32>,
    %c0_69 = arith.constant 0 : index
    %c12 = arith.constant 12 : index
    %c0_70 = arith.constant 0 : index
    %c0_71 = arith.constant 0 : index
    %55 = vector.load %arg1[%c0_69, %c12, %c0_70, %c0_71] : memref<1x16x16x64xf32, #tpu.memory_space<vmem>>, vector<1x1x16x64xf32>
    %56 = vector.shape_cast %55 : vector<1x1x16x64xf32> to vector<16x64xf32>
    %c235 = arith.constant 235 : index
    %c0_72 = arith.constant 0 : index
    %57 = vector.load %arg12[%c235, %c0_72] : memref<326x64xf32, #tpu.memory_space<vmem>>, vector<16x64xf32>
    tpu.vector_store %arg12[%c235, %c0_72], %56 {strides = array<i32>} : memref<326x64xf32, #tpu.memory_space<vmem>>, vector<16x64xf32>,
    %c251 = arith.constant 251 : index
    %c0_73 = arith.constant 0 : index
    %58 = vector.load %arg12[%c251, %c0_73] : memref<326x64xf32, #tpu.memory_space<vmem>>, vector<2x64xf32>
    tpu.vector_store %arg12[%c251, %c0_73], %6 {strides = array<i32>} : memref<326x64xf32, #tpu.memory_space<vmem>>, vector<2x64xf32>,
    %c0_74 = arith.constant 0 : index
    %c13 = arith.constant 13 : index
    %c0_75 = arith.constant 0 : index
    %c0_76 = arith.constant 0 : index
    %59 = vector.load %arg1[%c0_74, %c13, %c0_75, %c0_76] : memref<1x16x16x64xf32, #tpu.memory_space<vmem>>, vector<1x1x16x64xf32>
    %60 = vector.shape_cast %59 : vector<1x1x16x64xf32> to vector<16x64xf32>
    %c253 = arith.constant 253 : index
    %c0_77 = arith.constant 0 : index
    %61 = vector.load %arg12[%c253, %c0_77] : memref<326x64xf32, #tpu.memory_space<vmem>>, vector<16x64xf32>
    tpu.vector_store %arg12[%c253, %c0_77], %60 {strides = array<i32>} : memref<326x64xf32, #tpu.memory_space<vmem>>, vector<16x64xf32>,
    %c269 = arith.constant 269 : index
    %c0_78 = arith.constant 0 : index
    %62 = vector.load %arg12[%c269, %c0_78] : memref<326x64xf32, #tpu.memory_space<vmem>>, vector<2x64xf32>
    tpu.vector_store %arg12[%c269, %c0_78], %6 {strides = array<i32>} : memref<326x64xf32, #tpu.memory_space<vmem>>, vector<2x64xf32>,
    %c0_79 = arith.constant 0 : index
    %c14 = arith.constant 14 : index
    %c0_80 = arith.constant 0 : index
    %c0_81 = arith.constant 0 : index
    %63 = vector.load %arg1[%c0_79, %c14, %c0_80, %c0_81] : memref<1x16x16x64xf32, #tpu.memory_space<vmem>>, vector<1x1x16x64xf32>
    %64 = vector.shape_cast %63 : vector<1x1x16x64xf32> to vector<16x64xf32>
    %c271 = arith.constant 271 : index
    %c0_82 = arith.constant 0 : index
    %65 = vector.load %arg12[%c271, %c0_82] : memref<326x64xf32, #tpu.memory_space<vmem>>, vector<16x64xf32>
    tpu.vector_store %arg12[%c271, %c0_82], %64 {strides = array<i32>} : memref<326x64xf32, #tpu.memory_space<vmem>>, vector<16x64xf32>,
    %c287 = arith.constant 287 : index
    %c0_83 = arith.constant 0 : index
    %66 = vector.load %arg12[%c287, %c0_83] : memref<326x64xf32, #tpu.memory_space<vmem>>, vector<2x64xf32>
    tpu.vector_store %arg12[%c287, %c0_83], %6 {strides = array<i32>} : memref<326x64xf32, #tpu.memory_space<vmem>>, vector<2x64xf32>,
    %c0_84 = arith.constant 0 : index
    %c15 = arith.constant 15 : index
    %c0_85 = arith.constant 0 : index
    %c0_86 = arith.constant 0 : index
    %67 = vector.load %arg1[%c0_84, %c15, %c0_85, %c0_86] : memref<1x16x16x64xf32, #tpu.memory_space<vmem>>, vector<1x1x16x64xf32>
    %68 = vector.shape_cast %67 : vector<1x1x16x64xf32> to vector<16x64xf32>
    %c289 = arith.constant 289 : index
    %c0_87 = arith.constant 0 : index
    %69 = vector.load %arg12[%c289, %c0_87] : memref<326x64xf32, #tpu.memory_space<vmem>>, vector<16x64xf32>
    tpu.vector_store %arg12[%c289, %c0_87], %68 {strides = array<i32>} : memref<326x64xf32, #tpu.memory_space<vmem>>, vector<16x64xf32>,
    %c305 = arith.constant 305 : index
    %c0_88 = arith.constant 0 : index
    %70 = vector.load %arg12[%c305, %c0_88] : memref<326x64xf32, #tpu.memory_space<vmem>>, vector<2x64xf32>
    tpu.vector_store %arg12[%c305, %c0_88], %6 {strides = array<i32>} : memref<326x64xf32, #tpu.memory_space<vmem>>, vector<2x64xf32>,
    %cst_89 = arith.constant 0.000000e+00 : f32
    %71 = vector.broadcast %cst_89 : f32 to vector<288x64xf32>
    %c0_90 = arith.constant 0 : index
    %c0_91 = arith.constant 0 : index
    %72 = vector.load %arg12[%c0_90, %c0_91] : memref<326x64xf32, #tpu.memory_space<vmem>>, vector<288x64xf32>
    %c0_92 = arith.constant 0 : index
    %c0_93 = arith.constant 0 : index
    %c0_94 = arith.constant 0 : index
    %c0_95 = arith.constant 0 : index
    %73 = vector.load %arg3[%c0_92, %c0_93, %c0_94, %c0_95] : memref<3x3x64x64xf32, #tpu.memory_space<vmem>>, vector<1x1x64x64xf32>
    %74 = vector.shape_cast %73 : vector<1x1x64x64xf32> to vector<64x64xf32>
    %cst_96 = arith.constant dense<0.000000e+00> : vector<288x64xf32>
    %75 = tpu.matmul %72, %74, %cst_96 {dimension_numbers = #tpu.dot_dimension_numbers<[1], [0], [0], [1], [0, 0, 1, 1], [], []>} : vector<288x64xf32>, vector<64x64xf32>, vector<288x64xf32> -> vector<288x64xf32>
    %76 = arith.addf %71, %75 : vector<288x64xf32>
    %c1_97 = arith.constant 1 : index
    %c0_98 = arith.constant 0 : index
    %77 = vector.load %arg12[%c1_97, %c0_98] : memref<326x64xf32, #tpu.memory_space<vmem>>, vector<288x64xf32>
    %c0_99 = arith.constant 0 : index
    %c1_100 = arith.constant 1 : index
    %c0_101 = arith.constant 0 : index
    %c0_102 = arith.constant 0 : index
    %78 = vector.load %arg3[%c0_99, %c1_100, %c0_101, %c0_102] : memref<3x3x64x64xf32, #tpu.memory_space<vmem>>, vector<1x1x64x64xf32>
    %79 = vector.shape_cast %78 : vector<1x1x64x64xf32> to vector<64x64xf32>
    %cst_103 = arith.constant dense<0.000000e+00> : vector<288x64xf32>
    %80 = tpu.matmul %77, %79, %cst_103 {dimension_numbers = #tpu.dot_dimension_numbers<[1], [0], [0], [1], [0, 0, 1, 1], [], []>} : vector<288x64xf32>, vector<64x64xf32>, vector<288x64xf32> -> vector<288x64xf32>
    %81 = arith.addf %76, %80 : vector<288x64xf32>
    %c2_104 = arith.constant 2 : index
    %c0_105 = arith.constant 0 : index
    %82 = vector.load %arg12[%c2_104, %c0_105] : memref<326x64xf32, #tpu.memory_space<vmem>>, vector<288x64xf32>
    %c0_106 = arith.constant 0 : index
    %c2_107 = arith.constant 2 : index
    %c0_108 = arith.constant 0 : index
    %c0_109 = arith.constant 0 : index
    %83 = vector.load %arg3[%c0_106, %c2_107, %c0_108, %c0_109] : memref<3x3x64x64xf32, #tpu.memory_space<vmem>>, vector<1x1x64x64xf32>
    %84 = vector.shape_cast %83 : vector<1x1x64x64xf32> to vector<64x64xf32>
    %cst_110 = arith.constant dense<0.000000e+00> : vector<288x64xf32>
    %85 = tpu.matmul %82, %84, %cst_110 {dimension_numbers = #tpu.dot_dimension_numbers<[1], [0], [0], [1], [0, 0, 1, 1], [], []>} : vector<288x64xf32>, vector<64x64xf32>, vector<288x64xf32> -> vector<288x64xf32>
    %86 = arith.addf %81, %85 : vector<288x64xf32>
    %c18 = arith.constant 18 : index
    %c0_111 = arith.constant 0 : index
    %87 = vector.load %arg12[%c18, %c0_111] : memref<326x64xf32, #tpu.memory_space<vmem>>, vector<288x64xf32>
    %c1_112 = arith.constant 1 : index
    %c0_113 = arith.constant 0 : index
    %c0_114 = arith.constant 0 : index
    %c0_115 = arith.constant 0 : index
    %88 = vector.load %arg3[%c1_112, %c0_113, %c0_114, %c0_115] : memref<3x3x64x64xf32, #tpu.memory_space<vmem>>, vector<1x1x64x64xf32>
    %89 = vector.shape_cast %88 : vector<1x1x64x64xf32> to vector<64x64xf32>
    %cst_116 = arith.constant dense<0.000000e+00> : vector<288x64xf32>
    %90 = tpu.matmul %87, %89, %cst_116 {dimension_numbers = #tpu.dot_dimension_numbers<[1], [0], [0], [1], [0, 0, 1, 1], [], []>} : vector<288x64xf32>, vector<64x64xf32>, vector<288x64xf32> -> vector<288x64xf32>
    %91 = arith.addf %86, %90 : vector<288x64xf32>
    %c19_117 = arith.constant 19 : index
    %c0_118 = arith.constant 0 : index
    %92 = vector.load %arg12[%c19_117, %c0_118] : memref<326x64xf32, #tpu.memory_space<vmem>>, vector<288x64xf32>
    %c1_119 = arith.constant 1 : index
    %c1_120 = arith.constant 1 : index
    %c0_121 = arith.constant 0 : index
    %c0_122 = arith.constant 0 : index
    %93 = vector.load %arg3[%c1_119, %c1_120, %c0_121, %c0_122] : memref<3x3x64x64xf32, #tpu.memory_space<vmem>>, vector<1x1x64x64xf32>
    %94 = vector.shape_cast %93 : vector<1x1x64x64xf32> to vector<64x64xf32>
    %cst_123 = arith.constant dense<0.000000e+00> : vector<288x64xf32>
    %95 = tpu.matmul %92, %94, %cst_123 {dimension_numbers = #tpu.dot_dimension_numbers<[1], [0], [0], [1], [0, 0, 1, 1], [], []>} : vector<288x64xf32>, vector<64x64xf32>, vector<288x64xf32> -> vector<288x64xf32>
    %96 = arith.addf %91, %95 : vector<288x64xf32>
    %c20 = arith.constant 20 : index
    %c0_124 = arith.constant 0 : index
    %97 = vector.load %arg12[%c20, %c0_124] : memref<326x64xf32, #tpu.memory_space<vmem>>, vector<288x64xf32>
    %c1_125 = arith.constant 1 : index
    %c2_126 = arith.constant 2 : index
    %c0_127 = arith.constant 0 : index
    %c0_128 = arith.constant 0 : index
    %98 = vector.load %arg3[%c1_125, %c2_126, %c0_127, %c0_128] : memref<3x3x64x64xf32, #tpu.memory_space<vmem>>, vector<1x1x64x64xf32>
    %99 = vector.shape_cast %98 : vector<1x1x64x64xf32> to vector<64x64xf32>
    %cst_129 = arith.constant dense<0.000000e+00> : vector<288x64xf32>
    %100 = tpu.matmul %97, %99, %cst_129 {dimension_numbers = #tpu.dot_dimension_numbers<[1], [0], [0], [1], [0, 0, 1, 1], [], []>} : vector<288x64xf32>, vector<64x64xf32>, vector<288x64xf32> -> vector<288x64xf32>
    %101 = arith.addf %96, %100 : vector<288x64xf32>
    %c36 = arith.constant 36 : index
    %c0_130 = arith.constant 0 : index
    %102 = vector.load %arg12[%c36, %c0_130] : memref<326x64xf32, #tpu.memory_space<vmem>>, vector<288x64xf32>
    %c2_131 = arith.constant 2 : index
    %c0_132 = arith.constant 0 : index
    %c0_133 = arith.constant 0 : index
    %c0_134 = arith.constant 0 : index
    %103 = vector.load %arg3[%c2_131, %c0_132, %c0_133, %c0_134] : memref<3x3x64x64xf32, #tpu.memory_space<vmem>>, vector<1x1x64x64xf32>
    %104 = vector.shape_cast %103 : vector<1x1x64x64xf32> to vector<64x64xf32>
    %cst_135 = arith.constant dense<0.000000e+00> : vector<288x64xf32>
    %105 = tpu.matmul %102, %104, %cst_135 {dimension_numbers = #tpu.dot_dimension_numbers<[1], [0], [0], [1], [0, 0, 1, 1], [], []>} : vector<288x64xf32>, vector<64x64xf32>, vector<288x64xf32> -> vector<288x64xf32>
    %106 = arith.addf %101, %105 : vector<288x64xf32>
    %c37_136 = arith.constant 37 : index
    %c0_137 = arith.constant 0 : index
    %107 = vector.load %arg12[%c37_136, %c0_137] : memref<326x64xf32, #tpu.memory_space<vmem>>, vector<288x64xf32>
    %c2_138 = arith.constant 2 : index
    %c1_139 = arith.constant 1 : index
    %c0_140 = arith.constant 0 : index
    %c0_141 = arith.constant 0 : index
    %108 = vector.load %arg3[%c2_138, %c1_139, %c0_140, %c0_141] : memref<3x3x64x64xf32, #tpu.memory_space<vmem>>, vector<1x1x64x64xf32>
    %109 = vector.shape_cast %108 : vector<1x1x64x64xf32> to vector<64x64xf32>
    %cst_142 = arith.constant dense<0.000000e+00> : vector<288x64xf32>
    %110 = tpu.matmul %107, %109, %cst_142 {dimension_numbers = #tpu.dot_dimension_numbers<[1], [0], [0], [1], [0, 0, 1, 1], [], []>} : vector<288x64xf32>, vector<64x64xf32>, vector<288x64xf32> -> vector<288x64xf32>
    %111 = arith.addf %106, %110 : vector<288x64xf32>
    %c38 = arith.constant 38 : index
    %c0_143 = arith.constant 0 : index
    %112 = vector.load %arg12[%c38, %c0_143] : memref<326x64xf32, #tpu.memory_space<vmem>>, vector<288x64xf32>
    %c2_144 = arith.constant 2 : index
    %c2_145 = arith.constant 2 : index
    %c0_146 = arith.constant 0 : index
    %c0_147 = arith.constant 0 : index
    %113 = vector.load %arg3[%c2_144, %c2_145, %c0_146, %c0_147] : memref<3x3x64x64xf32, #tpu.memory_space<vmem>>, vector<1x1x64x64xf32>
    %114 = vector.shape_cast %113 : vector<1x1x64x64xf32> to vector<64x64xf32>
    %cst_148 = arith.constant dense<0.000000e+00> : vector<288x64xf32>
    %115 = tpu.matmul %112, %114, %cst_148 {dimension_numbers = #tpu.dot_dimension_numbers<[1], [0], [0], [1], [0, 0, 1, 1], [], []>} : vector<288x64xf32>, vector<64x64xf32>, vector<288x64xf32> -> vector<288x64xf32>
    %116 = arith.addf %111, %115 : vector<288x64xf32>
    %c0_149 = arith.constant 0 : index
    %c0_150 = arith.constant 0 : index
    %117 = vector.load %arg4[%c0_149, %c0_150] : memref<1x64xf32, #tpu.memory_space<vmem>>, vector<1x64xf32>
    %118 = vector.broadcast %117 : vector<1x64xf32> to vector<288x64xf32>
    %119 = arith.addf %116, %118 : vector<288x64xf32>
    %cst_151 = arith.constant 0.000000e+00 : f32
    %120 = vector.broadcast %cst_151 : f32 to vector<288x64xf32>
    %121 = arith.maximumf %119, %120 : vector<288x64xf32>
    %c0_152 = arith.constant 0 : index
    %c0_153 = arith.constant 0 : index
    %122 = vector.load %arg2[%c0_152, %c0_153] : memref<288x1xf32, #tpu.memory_space<vmem>>, vector<288x1xf32>
    %123 = vector.broadcast %122 : vector<288x1xf32> to vector<288x64xf32>
    %124 = arith.mulf %121, %123 : vector<288x64xf32>
    %c19_154 = arith.constant 19 : index
    %c0_155 = arith.constant 0 : index
    %125 = vector.load %arg13[%c19_154, %c0_155] : memref<326x64xf32, #tpu.memory_space<vmem>>, vector<288x64xf32>
    tpu.vector_store %arg13[%c19_154, %c0_155], %124 {strides = array<i32>} : memref<326x64xf32, #tpu.memory_space<vmem>>, vector<288x64xf32>,
    %cst_156 = arith.constant 0.000000e+00 : f32
    %126 = vector.broadcast %cst_156 : f32 to vector<288x64xf32>
    %c0_157 = arith.constant 0 : index
    %c0_158 = arith.constant 0 : index
    %127 = vector.load %arg13[%c0_157, %c0_158] : memref<326x64xf32, #tpu.memory_space<vmem>>, vector<288x64xf32>
    %c0_159 = arith.constant 0 : index
    %c0_160 = arith.constant 0 : index
    %c0_161 = arith.constant 0 : index
    %c0_162 = arith.constant 0 : index
    %128 = vector.load %arg5[%c0_159, %c0_160, %c0_161, %c0_162] : memref<3x3x64x64xf32, #tpu.memory_space<vmem>>, vector<1x1x64x64xf32>
    %129 = vector.shape_cast %128 : vector<1x1x64x64xf32> to vector<64x64xf32>
    %cst_163 = arith.constant dense<0.000000e+00> : vector<288x64xf32>
    %130 = tpu.matmul %127, %129, %cst_163 {dimension_numbers = #tpu.dot_dimension_numbers<[1], [0], [0], [1], [0, 0, 1, 1], [], []>} : vector<288x64xf32>, vector<64x64xf32>, vector<288x64xf32> -> vector<288x64xf32>
    %131 = arith.addf %126, %130 : vector<288x64xf32>
    %c1_164 = arith.constant 1 : index
    %c0_165 = arith.constant 0 : index
    %132 = vector.load %arg13[%c1_164, %c0_165] : memref<326x64xf32, #tpu.memory_space<vmem>>, vector<288x64xf32>
    %c0_166 = arith.constant 0 : index
    %c1_167 = arith.constant 1 : index
    %c0_168 = arith.constant 0 : index
    %c0_169 = arith.constant 0 : index
    %133 = vector.load %arg5[%c0_166, %c1_167, %c0_168, %c0_169] : memref<3x3x64x64xf32, #tpu.memory_space<vmem>>, vector<1x1x64x64xf32>
    %134 = vector.shape_cast %133 : vector<1x1x64x64xf32> to vector<64x64xf32>
    %cst_170 = arith.constant dense<0.000000e+00> : vector<288x64xf32>
    %135 = tpu.matmul %132, %134, %cst_170 {dimension_numbers = #tpu.dot_dimension_numbers<[1], [0], [0], [1], [0, 0, 1, 1], [], []>} : vector<288x64xf32>, vector<64x64xf32>, vector<288x64xf32> -> vector<288x64xf32>
    %136 = arith.addf %131, %135 : vector<288x64xf32>
    %c2_171 = arith.constant 2 : index
    %c0_172 = arith.constant 0 : index
    %137 = vector.load %arg13[%c2_171, %c0_172] : memref<326x64xf32, #tpu.memory_space<vmem>>, vector<288x64xf32>
    %c0_173 = arith.constant 0 : index
    %c2_174 = arith.constant 2 : index
    %c0_175 = arith.constant 0 : index
    %c0_176 = arith.constant 0 : index
    %138 = vector.load %arg5[%c0_173, %c2_174, %c0_175, %c0_176] : memref<3x3x64x64xf32, #tpu.memory_space<vmem>>, vector<1x1x64x64xf32>
    %139 = vector.shape_cast %138 : vector<1x1x64x64xf32> to vector<64x64xf32>
    %cst_177 = arith.constant dense<0.000000e+00> : vector<288x64xf32>
    %140 = tpu.matmul %137, %139, %cst_177 {dimension_numbers = #tpu.dot_dimension_numbers<[1], [0], [0], [1], [0, 0, 1, 1], [], []>} : vector<288x64xf32>, vector<64x64xf32>, vector<288x64xf32> -> vector<288x64xf32>
    %141 = arith.addf %136, %140 : vector<288x64xf32>
    %c18_178 = arith.constant 18 : index
    %c0_179 = arith.constant 0 : index
    %142 = vector.load %arg13[%c18_178, %c0_179] : memref<326x64xf32, #tpu.memory_space<vmem>>, vector<288x64xf32>
    %c1_180 = arith.constant 1 : index
    %c0_181 = arith.constant 0 : index
    %c0_182 = arith.constant 0 : index
    %c0_183 = arith.constant 0 : index
    %143 = vector.load %arg5[%c1_180, %c0_181, %c0_182, %c0_183] : memref<3x3x64x64xf32, #tpu.memory_space<vmem>>, vector<1x1x64x64xf32>
    %144 = vector.shape_cast %143 : vector<1x1x64x64xf32> to vector<64x64xf32>
    %cst_184 = arith.constant dense<0.000000e+00> : vector<288x64xf32>
    %145 = tpu.matmul %142, %144, %cst_184 {dimension_numbers = #tpu.dot_dimension_numbers<[1], [0], [0], [1], [0, 0, 1, 1], [], []>} : vector<288x64xf32>, vector<64x64xf32>, vector<288x64xf32> -> vector<288x64xf32>
    %146 = arith.addf %141, %145 : vector<288x64xf32>
    %c19_185 = arith.constant 19 : index
    %c0_186 = arith.constant 0 : index
    %147 = vector.load %arg13[%c19_185, %c0_186] : memref<326x64xf32, #tpu.memory_space<vmem>>, vector<288x64xf32>
    %c1_187 = arith.constant 1 : index
    %c1_188 = arith.constant 1 : index
    %c0_189 = arith.constant 0 : index
    %c0_190 = arith.constant 0 : index
    %148 = vector.load %arg5[%c1_187, %c1_188, %c0_189, %c0_190] : memref<3x3x64x64xf32, #tpu.memory_space<vmem>>, vector<1x1x64x64xf32>
    %149 = vector.shape_cast %148 : vector<1x1x64x64xf32> to vector<64x64xf32>
    %cst_191 = arith.constant dense<0.000000e+00> : vector<288x64xf32>
    %150 = tpu.matmul %147, %149, %cst_191 {dimension_numbers = #tpu.dot_dimension_numbers<[1], [0], [0], [1], [0, 0, 1, 1], [], []>} : vector<288x64xf32>, vector<64x64xf32>, vector<288x64xf32> -> vector<288x64xf32>
    %151 = arith.addf %146, %150 : vector<288x64xf32>
    %c20_192 = arith.constant 20 : index
    %c0_193 = arith.constant 0 : index
    %152 = vector.load %arg13[%c20_192, %c0_193] : memref<326x64xf32, #tpu.memory_space<vmem>>, vector<288x64xf32>
    %c1_194 = arith.constant 1 : index
    %c2_195 = arith.constant 2 : index
    %c0_196 = arith.constant 0 : index
    %c0_197 = arith.constant 0 : index
    %153 = vector.load %arg5[%c1_194, %c2_195, %c0_196, %c0_197] : memref<3x3x64x64xf32, #tpu.memory_space<vmem>>, vector<1x1x64x64xf32>
    %154 = vector.shape_cast %153 : vector<1x1x64x64xf32> to vector<64x64xf32>
    %cst_198 = arith.constant dense<0.000000e+00> : vector<288x64xf32>
    %155 = tpu.matmul %152, %154, %cst_198 {dimension_numbers = #tpu.dot_dimension_numbers<[1], [0], [0], [1], [0, 0, 1, 1], [], []>} : vector<288x64xf32>, vector<64x64xf32>, vector<288x64xf32> -> vector<288x64xf32>
    %156 = arith.addf %151, %155 : vector<288x64xf32>
    %c36_199 = arith.constant 36 : index
    %c0_200 = arith.constant 0 : index
    %157 = vector.load %arg13[%c36_199, %c0_200] : memref<326x64xf32, #tpu.memory_space<vmem>>, vector<288x64xf32>
    %c2_201 = arith.constant 2 : index
    %c0_202 = arith.constant 0 : index
    %c0_203 = arith.constant 0 : index
    %c0_204 = arith.constant 0 : index
    %158 = vector.load %arg5[%c2_201, %c0_202, %c0_203, %c0_204] : memref<3x3x64x64xf32, #tpu.memory_space<vmem>>, vector<1x1x64x64xf32>
    %159 = vector.shape_cast %158 : vector<1x1x64x64xf32> to vector<64x64xf32>
    %cst_205 = arith.constant dense<0.000000e+00> : vector<288x64xf32>
    %160 = tpu.matmul %157, %159, %cst_205 {dimension_numbers = #tpu.dot_dimension_numbers<[1], [0], [0], [1], [0, 0, 1, 1], [], []>} : vector<288x64xf32>, vector<64x64xf32>, vector<288x64xf32> -> vector<288x64xf32>
    %161 = arith.addf %156, %160 : vector<288x64xf32>
    %c37_206 = arith.constant 37 : index
    %c0_207 = arith.constant 0 : index
    %162 = vector.load %arg13[%c37_206, %c0_207] : memref<326x64xf32, #tpu.memory_space<vmem>>, vector<288x64xf32>
    %c2_208 = arith.constant 2 : index
    %c1_209 = arith.constant 1 : index
    %c0_210 = arith.constant 0 : index
    %c0_211 = arith.constant 0 : index
    %163 = vector.load %arg5[%c2_208, %c1_209, %c0_210, %c0_211] : memref<3x3x64x64xf32, #tpu.memory_space<vmem>>, vector<1x1x64x64xf32>
    %164 = vector.shape_cast %163 : vector<1x1x64x64xf32> to vector<64x64xf32>
    %cst_212 = arith.constant dense<0.000000e+00> : vector<288x64xf32>
    %165 = tpu.matmul %162, %164, %cst_212 {dimension_numbers = #tpu.dot_dimension_numbers<[1], [0], [0], [1], [0, 0, 1, 1], [], []>} : vector<288x64xf32>, vector<64x64xf32>, vector<288x64xf32> -> vector<288x64xf32>
    %166 = arith.addf %161, %165 : vector<288x64xf32>
    %c38_213 = arith.constant 38 : index
    %c0_214 = arith.constant 0 : index
    %167 = vector.load %arg13[%c38_213, %c0_214] : memref<326x64xf32, #tpu.memory_space<vmem>>, vector<288x64xf32>
    %c2_215 = arith.constant 2 : index
    %c2_216 = arith.constant 2 : index
    %c0_217 = arith.constant 0 : index
    %c0_218 = arith.constant 0 : index
    %168 = vector.load %arg5[%c2_215, %c2_216, %c0_217, %c0_218] : memref<3x3x64x64xf32, #tpu.memory_space<vmem>>, vector<1x1x64x64xf32>
    %169 = vector.shape_cast %168 : vector<1x1x64x64xf32> to vector<64x64xf32>
    %cst_219 = arith.constant dense<0.000000e+00> : vector<288x64xf32>
    %170 = tpu.matmul %167, %169, %cst_219 {dimension_numbers = #tpu.dot_dimension_numbers<[1], [0], [0], [1], [0, 0, 1, 1], [], []>} : vector<288x64xf32>, vector<64x64xf32>, vector<288x64xf32> -> vector<288x64xf32>
    %171 = arith.addf %166, %170 : vector<288x64xf32>
    %c0_220 = arith.constant 0 : index
    %c0_221 = arith.constant 0 : index
    %172 = vector.load %arg6[%c0_220, %c0_221] : memref<1x64xf32, #tpu.memory_space<vmem>>, vector<1x64xf32>
    %173 = vector.broadcast %172 : vector<1x64xf32> to vector<288x64xf32>
    %174 = arith.addf %171, %173 : vector<288x64xf32>
    %c0_222 = arith.constant 0 : index
    %c0_223 = arith.constant 0 : index
    %175 = vector.load %arg2[%c0_222, %c0_223] : memref<288x1xf32, #tpu.memory_space<vmem>>, vector<288x1xf32>
    %176 = vector.broadcast %175 : vector<288x1xf32> to vector<288x64xf32>
    %177 = arith.mulf %174, %176 : vector<288x64xf32>
    %cst_224 = arith.constant dense<0.000000e+00> : vector<64xf32>
    %178 = vector.multi_reduction <add>, %177, %cst_224 [0] : vector<288x64xf32> to vector<64xf32>
    %179 = vector.shape_cast %178 : vector<64xf32> to vector<1x64xf32>
    %cst_225 = arith.constant 3.906250e-03 : f32
    %180 = vector.broadcast %cst_225 : f32 to vector<1x64xf32>
    %181 = arith.mulf %179, %180 : vector<1x64xf32>
    %c0_226 = arith.constant 0 : index
    %c0_227 = arith.constant 0 : index
    %182 = vector.load %arg7[%c0_226, %c0_227] : memref<4x64xf32, #tpu.memory_space<vmem>>, vector<4x64xf32>
    %183 = vector.broadcast %181 : vector<1x64xf32> to vector<4x64xf32>
    %184 = arith.mulf %183, %182 : vector<4x64xf32>
    %cst_228 = arith.constant dense<0.000000e+00> : vector<4xf32>
    %185 = vector.multi_reduction <add>, %184, %cst_228 [1] : vector<4x64xf32> to vector<4xf32>
    %186 = vector.shape_cast %185 : vector<4xf32> to vector<4x1xf32>
    %c0_229 = arith.constant 0 : index
    %c0_230 = arith.constant 0 : index
    %187 = vector.load %arg8[%c0_229, %c0_230] : memref<4x1xf32, #tpu.memory_space<vmem>>, vector<4x1xf32>
    %188 = arith.addf %186, %187 : vector<4x1xf32>
    %cst_231 = arith.constant 0.000000e+00 : f32
    %189 = vector.broadcast %cst_231 : f32 to vector<4x1xf32>
    %190 = arith.maximumf %188, %189 : vector<4x1xf32>
    %c0_232 = arith.constant 0 : index
    %c0_233 = arith.constant 0 : index
    %191 = vector.load %arg9[%c0_232, %c0_233] : memref<4x64xf32, #tpu.memory_space<vmem>>, vector<4x64xf32>
    %192 = vector.broadcast %190 : vector<4x1xf32> to vector<4x64xf32>
    %193 = arith.mulf %192, %191 : vector<4x64xf32>
    %cst_234 = arith.constant dense<0.000000e+00> : vector<64xf32>
    %194 = vector.multi_reduction <add>, %193, %cst_234 [0] : vector<4x64xf32> to vector<64xf32>
    %195 = vector.shape_cast %194 : vector<64xf32> to vector<1x64xf32>
    %c0_235 = arith.constant 0 : index
    %c0_236 = arith.constant 0 : index
    %196 = vector.load %arg10[%c0_235, %c0_236] : memref<1x64xf32, #tpu.memory_space<vmem>>, vector<1x64xf32>
    %197 = arith.addf %195, %196 : vector<1x64xf32>
    %198 = arith.negf %197 : vector<1x64xf32>
    %199 = math.exp %198 : vector<1x64xf32>
    %cst_237 = arith.constant 1.000000e+00 : f32
    %200 = vector.broadcast %cst_237 : f32 to vector<1x64xf32>
    %201 = arith.addf %200, %199 : vector<1x64xf32>
    %202 = arith.divf %200, %201 : vector<1x64xf32>
    %c19_238 = arith.constant 19 : index
    %c0_239 = arith.constant 0 : index
    %203 = vector.load %arg12[%c19_238, %c0_239] : memref<326x64xf32, #tpu.memory_space<vmem>>, vector<288x64xf32>
    %204 = vector.broadcast %202 : vector<1x64xf32> to vector<288x64xf32>
    %205 = arith.mulf %174, %204 : vector<288x64xf32>
    %206 = arith.addf %205, %203 : vector<288x64xf32>
    %c0_240 = arith.constant 0 : index
    %c0_241 = arith.constant 0 : index
    %c0_242 = arith.constant 0 : index
    %207 = vector.load %arg11[%c0_240, %c0_241, %c0_242] : memref<1x288x64xf32, #tpu.memory_space<vmem>>, vector<1x288x64xf32>
    %208 = vector.shape_cast %207 : vector<1x288x64xf32> to vector<288x64xf32>
    %209 = vector.shape_cast %206 : vector<288x64xf32> to vector<1x288x64xf32>
    tpu.vector_store %arg11[%c0_240, %c0_241, %c0_242], %209 {strides = array<i32>} : memref<1x288x64xf32, #tpu.memory_space<vmem>>, vector<1x288x64xf32>,
    return
  }
  func.func @transform_0(%arg0: i32) -> (i32, i32, i32, i32) {
    %c0_i32 = arith.constant 0 : i32
    %c0_i32_0 = arith.constant 0 : i32
    %c0_i32_1 = arith.constant 0 : i32
    %c0_i32_2 = arith.constant 0 : i32
    return %arg0, %c0_i32, %c0_i32_0, %c0_i32_1 : i32, i32, i32, i32
  }
  func.func @transform_1(%arg0: i32) -> (i32, i32) {
    %c0_i32 = arith.constant 0 : i32
    %c0_i32_0 = arith.constant 0 : i32
    %c0_i32_1 = arith.constant 0 : i32
    return %c0_i32, %c0_i32_0 : i32, i32
  }
  func.func @transform_2(%arg0: i32) -> (i32, i32, i32, i32) {
    %c0_i32 = arith.constant 0 : i32
    %c0_i32_0 = arith.constant 0 : i32
    %c0_i32_1 = arith.constant 0 : i32
    %c0_i32_2 = arith.constant 0 : i32
    %c0_i32_3 = arith.constant 0 : i32
    return %c0_i32, %c0_i32_0, %c0_i32_1, %c0_i32_2 : i32, i32, i32, i32
  }
  func.func @transform_3(%arg0: i32) -> (i32, i32) {
    %c0_i32 = arith.constant 0 : i32
    %c0_i32_0 = arith.constant 0 : i32
    %c0_i32_1 = arith.constant 0 : i32
    return %c0_i32, %c0_i32_0 : i32, i32
  }
  func.func @transform_4(%arg0: i32) -> (i32, i32, i32, i32) {
    %c0_i32 = arith.constant 0 : i32
    %c0_i32_0 = arith.constant 0 : i32
    %c0_i32_1 = arith.constant 0 : i32
    %c0_i32_2 = arith.constant 0 : i32
    %c0_i32_3 = arith.constant 0 : i32
    return %c0_i32, %c0_i32_0, %c0_i32_1, %c0_i32_2 : i32, i32, i32, i32
  }
  func.func @transform_5(%arg0: i32) -> (i32, i32) {
    %c0_i32 = arith.constant 0 : i32
    %c0_i32_0 = arith.constant 0 : i32
    %c0_i32_1 = arith.constant 0 : i32
    return %c0_i32, %c0_i32_0 : i32, i32
  }
  func.func @transform_6(%arg0: i32) -> (i32, i32) {
    %c0_i32 = arith.constant 0 : i32
    %c0_i32_0 = arith.constant 0 : i32
    %c0_i32_1 = arith.constant 0 : i32
    return %c0_i32, %c0_i32_0 : i32, i32
  }
  func.func @transform_7(%arg0: i32) -> (i32, i32) {
    %c0_i32 = arith.constant 0 : i32
    %c0_i32_0 = arith.constant 0 : i32
    %c0_i32_1 = arith.constant 0 : i32
    return %c0_i32, %c0_i32_0 : i32, i32
  }
  func.func @transform_8(%arg0: i32) -> (i32, i32) {
    %c0_i32 = arith.constant 0 : i32
    %c0_i32_0 = arith.constant 0 : i32
    %c0_i32_1 = arith.constant 0 : i32
    return %c0_i32, %c0_i32_0 : i32, i32
  }
  func.func @transform_9(%arg0: i32) -> (i32, i32) {
    %c0_i32 = arith.constant 0 : i32
    %c0_i32_0 = arith.constant 0 : i32
    %c0_i32_1 = arith.constant 0 : i32
    return %c0_i32, %c0_i32_0 : i32, i32
  }
  func.func @transform_10(%arg0: i32) -> (i32, i32, i32) {
    %c0_i32 = arith.constant 0 : i32
    %c0_i32_0 = arith.constant 0 : i32
    %c0_i32_1 = arith.constant 0 : i32
    return %arg0, %c0_i32, %c0_i32_0 : i32, i32, i32
  }
}

</mosaic_0001>

<bundles_post_ra>
// kernel: rcab_forward.1
= control target key start
LH: loop header
LB: loop body
LE: loop exit
PB: predicated region body
PF: predicated region fallthrough
CT: control target
= control target key end

     0   :  { %15 = vsyncpa [#allocation5], 0  ;;  %s15292_s0 = inlined_call_operand.hbm [shape: f32[2,16,16,64], index: 0, kind: input, shape index: {}]   ;;  %s15293_s1 = inlined_call_operand.vmem [shape: f32[288,1], index: 1, kind: input, shape index: {}]   ;;  %s15294_s2 = inlined_call_operand.hbm [shape: f32[3,3,64,64], index: 2, kind: input, shape index: {}]   ;;  %s15295_s3 = inlined_call_operand.vmem [shape: f32[1,64], index: 3, kind: input, shape index: {}]   ;;  %s15296_s4 = inlined_call_operand.hbm [shape: f32[3,3,64,64], index: 4, kind: input, shape index: {}]   ;;  %s15297_s5 = inlined_call_operand.vmem [shape: f32[1,64], index: 5, kind: input, shape index: {}]   ;;  %s15298_s6 = inlined_call_operand.vmem [shape: f32[4,64], index: 6, kind: input, shape index: {}]   ;;  %s15299_s7 = inlined_call_operand.vmem [shape: f32[4,1], index: 7, kind: input, shape index: {}]   ;;  %s15300_s8 = inlined_call_operand.vmem [shape: f32[4,64], index: 8, kind: input, shape index: {}]   ;;  %s15301_s9 = inlined_call_operand.vmem [shape: f32[1,64], index: 9, kind: input, shape index: {}]   ;;  %s15302_s10 = inlined_call_operand.vmem [shape: f32[2,288,64], index: 10, kind: output, shape index: {}]  }
   0x1   :  { %17 = vsyncpa [#allocation5 + $0x1], 0 }
   0x2   :  { %18 = vsyncpa [#allocation7], 0  ;;  %s13098_s13 = smov 0   ;;  %s13100_s14 = smov 0  }
   0x3   :  { %s13102_s15 = smov 0   ;;  %s13104_s16 = smov 0  }
   0x4 LB: > { %s13117_s17 = sadd.s32 4294967295, %s13034_s16   ;;  %p44_p0 = scmp.ne.s32.totalorder %s13026_s14, %s13022_s13  ;;  %s13034_s16 = sphi %s13104_s16, %s15317_s16   ;;  %s13030_s15 = sphi %s13102_s15, %s15316_s15   ;;  %s13026_s14 = sphi %s13100_s14, %s15315_s14   ;;  %s13022_s13 = sphi %s13098_s13, %s15314_s13  }
   0x5   : > { %p15303_p1 = scmp.eq.s32.totalorder %s13117_s17, 0  ;;  %p9191_p2 = scmp.ge.s32.totalorder %s13034_s16, 1 }
   0x6   : > { %p270_p3 = scmp.lt.s32.totalorder %s13034_s16, 3  ;;  %s13036_s20 = smov [#allocation6]  }
   0x7   : > { %p13125_p4 = por %p15303_p1, %p44_p0  ;;  %s285_s21 = sshll.u32 %s13036_s20, 4  ;;  %s286_s21 = int_to_ptr.vmem [resolvable:$true] %s285_s21 }
   0x8   : > { %p13129_p5 = pnand %p9191_p2, %p270_p3  ;;  %s13037_s23 = smov [#allocation8]  }
   0x9   : > { %s15306_s18 = scalar_select %p13125_p4, 1, 0 }
   0xa   : > { %s15307_s19 = scalar_select %p13129_p5, 1, 0 }
   0xb   : > { %p12814_p6 = pneg %p13129_p5  ;;  %s301_s24 = sshll.u32 %s13037_s23, 4  ;;  %s13141_s24 = int_to_ptr.vmem [resolvable:$true] %s301_s24 }
   0xc   : > { %s12910_s27 = scalar_lea.hbm %s15294_s2, 9216 }
   0xd   : > { %p13137_p7 = pnand %p12814_p6, %p15303_p1  ;;  %p12911_p8 = scmp.ne.s32.totalorder %s15294_s2, %s12910_s27 }
   0xe   : > { %p12917_p12 = scmp.lt.u32.totalorder %s12910_s27, %s15294_s2 }
   0xf   : > { %p12912_p9 = pneg %p13137_p7 }
  0x11   : > { %p12913_p10 = pnand %p12912_p9, %p12911_p8 }
  0x13   : > { %p12914_p11 = pneg %p12913_p10 }
  0x15   : > { %p12919_p13 = pnand %p12917_p12, %p12914_p11 }
  0x17   : > { %12922 = shalt.err (!%p12919_p13)
}
  0x18   : > { %s12923_s12 = scalar_lea.vmem %s286_s21, 9216  ;;  %p12931_p6 = scmp.lt.s32.totalorder %s286_s21, %s286_s21 }
  0x19   : > { %p12924_p0 = scmp.ne.s32.totalorder %s286_s21, %s12923_s12  ;;  %p12932_p1 = scmp.lt.s32.totalorder %s12923_s12, %s12923_s12 }
  0x1b   : > { %p12926_p2 = pnand %p12924_p0, %p12912_p9  ;;  %p12933_p4 = por %p12932_p1, %p12931_p6 }
  0x1d   : > { %p12927_p3 = pneg %p12926_p2 }
  0x1f   : > { %p12934_p5 = pnand %p12933_p4, %p12927_p3 }
  0x21   : > { %12937 = shalt.err (!%p12934_p5)
}
  0x22   : > { %s13038_s13 = smov 128   ;;  %s13039_s20 = smov 8  }
  0x23   : > { %12817 = dma.hbm_to_vmem [thread:$0]  (!%p13137_p7), %s15294_s2, 9216, %s286_s21, [#allocation7], %s13038_s13, %s13038_s13, %s13039_s20  }
  0x24   : > { %s12938_s28 = scalar_lea.hbm %s15296_s4, 9216 }
  0x25   : > { %p12939_p1 = scmp.ne.s32.totalorder %s15296_s4, %s12938_s28  ;;  %p12945_p8 = scmp.lt.u32.totalorder %s12938_s28, %s15296_s4 }
  0x27   : > { %p12941_p4 = pnand %p12939_p1, %p12912_p9 }
  0x29   : > { %p12942_p5 = pneg %p12941_p4 }
  0x2b   : > { %p12947_p10 = pnand %p12945_p8, %p12942_p5 }
  0x2d   : > { %12950 = shalt.err (!%p12947_p10)
}
  0x2e   : > { %s12951_s21 = scalar_lea.vmem %s13141_s24, 9216  ;;  %p12959_p0 = scmp.lt.s32.totalorder %s13141_s24, %s13141_s24 }
  0x2f   : > { %p12952_p11 = scmp.ne.s32.totalorder %s13141_s24, %s12951_s21  ;;  %p12960_p2 = scmp.lt.s32.totalorder %s12951_s21, %s12951_s21 }
  0x31   : > { %p12954_p12 = pnand %p12952_p11, %p12912_p9  ;;  %p12961_p3 = por %p12960_p2, %p12959_p0 }
  0x33   : > { %p12955_p13 = pneg %p12954_p12 }
  0x35   : > { %p12962_p6 = pnand %p12961_p3, %p12955_p13 }
  0x37   : > { %12965 = shalt.err (!%p12962_p6)
}
  0x38   : > { %12820 = dma.hbm_to_vmem [thread:$0]  (!%p13137_p7), %s15296_s4, 9216, %s13141_s24, [#allocation7], %s13038_s13, %s13038_s13, %s13039_s20  }
  0x39   : > { %s13197_s26 = sadd.s32 1, %s13034_s16   ;;  %s31_s22 = sadd.s32 1, %s13030_s15 }
  0x3a   : > { %s28_s27 = ssub.s32 %s13034_s16, %s13197_s26  ;;  %p38_p9 = scmp.ne.s32.totalorder %s13030_s15, %s13026_s14 }
  0x3b   : > { %p29_p1 = scmp.eq.s32.totalorder %s28_s27, 0  ;;  %p39_p4 = scmp.eq.s32.totalorder %s13034_s16, 0 }
  0x3c   : > { %p12827_p5 = scmp.lt.s32.totalorder %s13034_s16, 2  ;;  %s330_s28 = sand.u32 1, %s13030_s15  }
  0x3d   : > { %s13208_s29 = scalar_select %p29_p1, %s13030_s15, %s31_s22  }
  0x3e   : > { %p40_p8 = por %p39_p4, %p38_p9  ;;  %s9195_s30 = sshll.u32 %s330_s28, 8 }
  0x3f   : > { %s9886_s11 = sshll.u32 %s13034_s16, 12  ;;  %s334_s24 = scalar_lea.vmem [#allocation4], %s9195_s30 }
  0x40   : > { %s13214_s23 = scalar_lea.hbm %s15292_s0, %s9886_s11  ;;  %s341_s25 = sshll.u32 %s334_s24, 4  ;;  %s13220_s25 = int_to_ptr.vmem [resolvable:$true] %s341_s25 }
  0x41   : > { %p13216_p7 = pnand %p12827_p5, %p40_p8  ;;  %s13222_s16 = scalar_lea.sflag [#allocation5], %s330_s28 }
  0x42   : > { %s12966_s22 = scalar_lea.hbm %s13214_s23, 4096  ;;  %s12971_s12 = scalar_lea.hbm %s15292_s0, 8192 }
  0x43   : > { %p12967_p10 = scmp.ne.s32.totalorder %s13214_s23, %s12966_s22  ;;  %p12968_p11 = pneg %p13216_p7 }
  0x44   : > { %p12972_p0 = scmp.lt.u32.totalorder %s13214_s23, %s15292_s0  ;;  %p12973_p2 = scmp.lt.u32.totalorder %s12971_s12, %s12966_s22 }
  0x45   : > { %p12969_p12 = pnand %p12968_p11, %p12967_p10  ;;  %p12975_p6 = scmp.lt.u32.totalorder %s12966_s22, %s13214_s23 }
  0x46   : > { %p12974_p3 = por %p12973_p2, %p12972_p0 }
  0x47   : > { %p12970_p13 = pneg %p12969_p12 }
  0x48   : > { %p12976_p9 = por %p12975_p6, %p12974_p3 }
  0x4a   : > { %p12977_p1 = pnand %p12976_p9, %p12970_p13 }
  0x4c   : > { %12980 = shalt.err (!%p12977_p1)
}
  0x4d   : > { %s12981_s28 = scalar_lea.vmem %s13220_s25, 4096  ;;  %s13040_s30 = smov [#allocation4]  }
  0x4e   : > { %p12982_p4 = scmp.ne.s32.totalorder %s13220_s25, %s12981_s28  ;;  %s12986_s11 = sshll.u32 %s13040_s30, 4  ;;  %s12987_s11 = int_to_ptr.vmem [resolvable:$false] %s12986_s11 }
  0x4f   : > { %s12988_s21 = scalar_lea.vmem %s12987_s11, 8192  ;;  %p12989_p10 = scmp.lt.s32.totalorder %s13220_s25, %s12987_s11 }
  0x50   : > { %p12984_p5 = pnand %p12982_p4, %p12968_p11  ;;  %p12990_p12 = scmp.lt.s32.totalorder %s12988_s21, %s12981_s28 }
  0x52   : > { %p12985_p8 = pneg %p12984_p5  ;;  %p12991_p0 = por %p12990_p12, %p12989_p10 }
  0x54   : > { %p12992_p2 = pnand %p12991_p0, %p12985_p8 }
  0x56   : > { %12995 = shalt.err (!%p12992_p2)
}
  0x57   : > { %12824 = dma.hbm_to_vmem [thread:$0]  (!%p13216_p7), %s13214_s23, 4096, %s13220_s25, %s13222_s16, %s13038_s13, %s13038_s13, %s13039_s20  }
  0x58   : > { %p15310_p11 = scmp.ne.s32.totalorder %s15307_s19, 0 }
  0x59   : > { %s355_s22 = sand.u32 (!%p15310_p11), 1, %s13026_s14   ;;  %p15311_p13 = scmp.ne.s32.totalorder (!%p15310_p11), %s15306_s18, 0 }
  0x5a   : > { %353 = sbr.rel (%p15310_p11) target bundleno = 2152 (0x868), region = 60  ;;  %s9199_s12 = sshll.u32 (!%p15310_p11), %s355_s22, 8 }
  0x5b   : > { %s356_s24 = scalar_lea.sflag (!%p15310_p11), [#allocation5], %s355_s22  ;;  %s13256_s28 = scalar_lea.vmem (!%p15310_p11), [#allocation4], %s9199_s12 }
  0x61   : > { %13013 = dma.done.wait (%p15311_p13), %s356_s24, 4096  }
  0x62   : > { %13015 = vsyncadd (%p15311_p13), %s356_s24, 4294963200  ;;  %p15312_p3 = scmp.eq.s32.totalorder %s13117_s17, 0 }
  0x64   : > { %13017 = dma.done.wait (%p15312_p3), [#allocation7], 18432   ;;  %p15313_p7 = pmov %p15312_p3 }
  0x65   : > { %vm409_vm0 = vcmask 523264   ;;  %vm412_vm1 = vcmask 518144   ;;  %vm428_vm2 = vcmask 517120   ;;  %v13041_v0 = vmov 0.0   ;;  %v601_v1 = vld [vmem:[#allocation6 + $0x40] sm:$0xff]  ;;  %v602_v2 = vld [vmem:[#allocation6 + $0x48] sm:$0xff] }
  0x66   : > { %13019 = vsyncadd (%p15313_p7), [#allocation7], 4294948864  ;;  %410 = vst.msk [vmem:[#allocation2] sm:$0xff] %vm409_vm0, %v13041_v0  ;;  %v603_v3 = vld [vmem:[#allocation6 + $0x50] sm:$0xff]  ;;  %v11939_v4 = vpack.c.bf16 %v602_v2, %v601_v1  ;;  %v604_v5 = vld [vmem:[#allocation6 + $0x58] sm:$0xff]  ;;  %vm416_vm3 = vcmask 519168  }
  0x67   : > { %411 = vst.msk [vmem:[#allocation2 + $0x8] sm:$0xff] %vm409_vm0, %v13041_v0  ;;  %414 = vst.msk [vmem:[#allocation2 + $0x132] sm:$0xff] %vm409_vm0, %v13041_v0  ;;  %v11943_v6 = vpack.c.bf16 %v604_v5, %v603_v3  ;;  %v605_v7 = vld [vmem:[#allocation6 + $0x60] sm:$0xff]  ;;  %v606_v8 = vld [vmem:[#allocation6 + $0x68] sm:$0xff]  ;;  %p404_p6 = scmp.lt.s32.totalorder %s13117_s17, 1 }
  0x68   : > { %415 = vst.msk [vmem:[#allocation2 + $0x13a] sm:$0xff] %vm409_vm0, %v13041_v0  ;;  %418 = vst.msk [vmem:[#allocation3] sm:$0xff] %vm409_vm0, %v13041_v0  ;;  %11940 = vmatprep.subr.bf16.mxu0 %v11939_v4  ;;  %v424_v10 = vld [vmem:[%s13256_s28] sm:$0xff]  ;;  %v425_v11 = vld [vmem:[%s13256_s28 + $0x8] sm:$0xff]  ;;  %v11947_v13 = vpack.c.bf16 %v606_v8, %v605_v7 }
  0x69   : > { %419 = vst.msk [vmem:[#allocation3 + $0x8] sm:$0xff] %vm409_vm0, %v13041_v0  ;;  %421 = vst.msk [vmem:[#allocation3 + $0x132] sm:$0xff] %vm409_vm0, %v13041_v0  ;;  %11942 = vmatpush3.bf16.msra.mxu0 %v11939_v4  ;;  %v9203_v12 = vld [vmem:[%s13256_s28 + $0x10] sm:$0xff]  ;;  %v9204_v14 = vld [vmem:[%s13256_s28 + $0x18] sm:$0xff]  ;;  %s15319_s17 = smov (!%p404_p6, %s13117_s17), 1 }
  0x6a   : > { %422 = vst.msk [vmem:[#allocation3 + $0x13a] sm:$0xff] %vm409_vm0, %v13041_v0  ;;  %11944 = vmatprep.subr.bf16.mxu0 %v11943_v6  ;;  %426 = vst.msk [vmem:[#allocation2 + $0x13] sm:$0xff] %vm409_vm0, %v424_v10  ;;  %v9205_v15 = vld [vmem:[%s13256_s28 + $0x20] sm:$0xff]  ;;  %v9206_v16 = vld [vmem:[%s13256_s28 + $0x28] sm:$0xff]  ;;  %s12803_s11 = smul.u32 288, %s15319_s17 }
  0x6b   : > { %413 = vst.msk [vmem:[#allocation2 + $0x10] sm:$0x7] %vm412_vm1, %v13041_v0  ;;  %420 = vst.msk [vmem:[#allocation3 + $0x10] sm:$0x7] %vm412_vm1, %v13041_v0  ;;  %v607_v17 = vld [vmem:[#allocation6 + $0x70] sm:$0xff]  ;;  %v608_v18 = vld [vmem:[#allocation6 + $0x78] sm:$0xff] }
  0x6c   : > { %429 = vst.msk [vmem:[#allocation2 + $0x23] sm:$0x3] %vm428_vm2, %v13041_v0  ;;  %435 = vst.msk [vmem:[#allocation2 + $0x35] sm:$0x3] %vm428_vm2, %v13041_v0  ;;  %v9207_v19 = vld [vmem:[%s13256_s28 + $0x30] sm:$0xff]  ;;  %v9208_v20 = vld [vmem:[%s13256_s28 + $0x38] sm:$0xff]  ;;  %v11951_v26 = vpack.c.bf16 %v608_v18, %v607_v17  ;;  %s15174_s22 = scalar_lea.vmem %s15302_s10, %s12803_s11 }
  0x6d   : > { %441 = vst.msk [vmem:[#allocation2 + $0x47] sm:$0x3] %vm428_vm2, %v13041_v0  ;;  %447 = vst.msk [vmem:[#allocation2 + $0x59] sm:$0x3] %vm428_vm2, %v13041_v0  ;;  %v9209_v21 = vld [vmem:[%s13256_s28 + $0x40] sm:$0xff]  ;;  %v9210_v22 = vld [vmem:[%s13256_s28 + $0x48] sm:$0xff]  ;;  %11946 = vmatpush3.bf16.msra.mxu0 %v11943_v6 }
  0x6e   : > { %453 = vst.msk [vmem:[#allocation2 + $0x6b] sm:$0x3] %vm428_vm2, %v13041_v0  ;;  %459 = vst.msk [vmem:[#allocation2 + $0x7d] sm:$0x3] %vm428_vm2, %v13041_v0  ;;  %v564_v9 = vld [vmem:[#allocation2 + $0x1] sm:$0xff]  ;;  %v9213_v25 = vld [vmem:[%s13256_s28 + $0x60] sm:$0xff]  ;;  %11948 = vmatprep.subr.bf16.mxu0 %v11947_v13 }
  0x6f   : > { %465 = vst.msk [vmem:[#allocation2 + $0x8f] sm:$0x3] %vm428_vm2, %v13041_v0  ;;  %471 = vst.msk [vmem:[#allocation2 + $0xa1] sm:$0x3] %vm428_vm2, %v13041_v0  ;;  %10695 = vmatprep.mubr.msk.f32.mxu0 %vm409_vm0, %v564_v9  ;;  %v9211_v23 = vld [vmem:[%s13256_s28 + $0x50] sm:$0xff]  ;;  %v9212_v24 = vld [vmem:[%s13256_s28 + $0x58] sm:$0xff] }
  0x70   : > { %477 = vst.msk [vmem:[#allocation2 + $0xb3] sm:$0x3] %vm428_vm2, %v13041_v0  ;;  %483 = vst.msk [vmem:[#allocation2 + $0xc5] sm:$0x3] %vm428_vm2, %v13041_v0  ;;  %v9214_v27 = vld [vmem:[%s13256_s28 + $0x68] sm:$0xff]  ;;  %v9215_v28 = vld [vmem:[%s13256_s28 + $0x70] sm:$0xff] }
  0x71   : > { %489 = vst.msk [vmem:[#allocation2 + $0xd7] sm:$0x3] %vm428_vm2, %v13041_v0  ;;  %495 = vst.msk [vmem:[#allocation2 + $0xe9] sm:$0x3] %vm428_vm2, %v13041_v0  ;;  %v9216_v29 = vld [vmem:[%s13256_s28 + $0x78] sm:$0xff]  ;;  %v556_v30 = vld [vmem:[#allocation6] sm:$0xff]  ;;  %11950 = vmatpush3.bf16.msra.mxu0 %v11947_v13 }
  0x72   : > { %501 = vst.msk [vmem:[#allocation2 + $0xfb] sm:$0x3] %vm428_vm2, %v13041_v0  ;;  %507 = vst.msk [vmem:[#allocation2 + $0x10d] sm:$0x3] %vm428_vm2, %v13041_v0  ;;  %v557_v31 = vld [vmem:[#allocation6 + $0x8] sm:$0xff]  ;;  %v9217_v32 = vld [vmem:[%s13256_s28 + $0x80] sm:$0xff]  ;;  %11952 = vmatprep.subr.bf16.mxu0 %v11951_v26 }
  0x73   : > { %513 = vst.msk [vmem:[#allocation2 + $0x11f] sm:$0x3] %vm428_vm2, %v13041_v0  ;;  %519 = vst.msk [vmem:[#allocation2 + $0x131] sm:$0x3] %vm428_vm2, %v13041_v0  ;;  %v9218_v33 = vld [vmem:[%s13256_s28 + $0x88] sm:$0xff]  ;;  %v9219_v34 = vld [vmem:[%s13256_s28 + $0x90] sm:$0xff]  ;;  %v11955_v36 = vpack.c.bf16 %v557_v31, %v556_v30 }
  0x74   : > { %427 = vst.msk [vmem:[#allocation2 + $0x1b] sm:$0xff] %vm409_vm0, %v425_v11  ;;  %433 = vst.msk [vmem:[#allocation2 + $0x25] sm:$0xff] %vm409_vm0, %v9203_v12  ;;  %v9220_v35 = vld [vmem:[%s13256_s28 + $0x98] sm:$0xff]  ;;  %v558_v37 = vld [vmem:[#allocation6 + $0x10] sm:$0xff] }
  0x75   : > { %434 = vst.msk [vmem:[#allocation2 + $0x2d] sm:$0xff] %vm409_vm0, %v9204_v14  ;;  %439 = vst.msk [vmem:[#allocation2 + $0x37] sm:$0xff] %vm409_vm0, %v9205_v15  ;;  %v559_v38 = vld [vmem:[#allocation6 + $0x18] sm:$0xff]  ;;  %11954 = vmatpush3.bf16.msra.mxu0 %v11951_v26  ;;  %v566_v40 = vld [vmem:[#allocation2 + $0x11] sm:$0xff] }
  0x76   : > { %440 = vst.msk [vmem:[#allocation2 + $0x3f] sm:$0xff] %vm409_vm0, %v9206_v16  ;;  %445 = vst.msk [vmem:[#allocation2 + $0x49] sm:$0xff] %vm409_vm0, %v9207_v19  ;;  %v565_v39 = vld [vmem:[#allocation2 + $0x9] sm:$0xff]  ;;  %11956 = vmatprep.subr.bf16.mxu0 %v11955_v36  ;;  %v11959_v41 = vpack.c.bf16 %v559_v38, %v558_v37  ;;  %v561_v43 = vld [vmem:[#allocation6 + $0x28] sm:$0xff] }
  0x77   : > { %446 = vst.msk [vmem:[#allocation2 + $0x51] sm:$0xff] %vm409_vm0, %v9208_v20  ;;  %451 = vst.msk [vmem:[#allocation2 + $0x5b] sm:$0xff] %vm409_vm0, %v9209_v21  ;;  %v560_v42 = vld [vmem:[#allocation6 + $0x20] sm:$0xff]  ;;  %v9222_v52 = vld [vmem:[%s13256_s28 + $0xa8] sm:$0xff] }
  0x78   : > { %452 = vst.msk [vmem:[#allocation2 + $0x63] sm:$0xff] %vm409_vm0, %v9210_v22  ;;  %457 = vst.msk [vmem:[#allocation2 + $0x6d] sm:$0xff] %vm409_vm0, %v9211_v23  ;;  %10696 = vmatmul.mubr.msk.f32.vlgmr.msra.gmra.mrb[0].mxu0 %vm409_vm0, %v565_v39  ;;  %v11963_v46 = vpack.c.bf16 %v561_v43, %v560_v42  ;;  %v9221_v50 = vld [vmem:[%s13256_s28 + $0xa0] sm:$0xff]  ;;  %v9223_v53 = vld [vmem:[%s13256_s28 + $0xb0] sm:$0xff] }
  0x79   : > { %458 = vst.msk [vmem:[#allocation2 + $0x75] sm:$0xff] %vm409_vm0, %v9212_v24  ;;  %463 = vst.msk [vmem:[#allocation2 + $0x7f] sm:$0xff] %vm409_vm0, %v9213_v25  ;;  %11958 = vmatpush3.bf16.msra.mxu0 %v11955_v36  ;;  %10698 = vmatprep.mubr.msk.f32.mxu0 %vm409_vm0, %v566_v40  ;;  %v562_v54 = vld [vmem:[#allocation6 + $0x30] sm:$0xff]  ;;  %v563_v55 = vld [vmem:[#allocation6 + $0x38] sm:$0xff] }
  0x7a   : > { %464 = vst.msk [vmem:[#allocation2 + $0x87] sm:$0xff] %vm409_vm0, %v9214_v27  ;;  %469 = vst.msk [vmem:[#allocation2 + $0x91] sm:$0xff] %vm409_vm0, %v9215_v28  ;;  %11960 = vmatprep.subr.bf16.mxu0 %v11959_v41  ;;  %v9224_v56 = vld [vmem:[%s13256_s28 + $0xb8] sm:$0xff]  ;;  %v9225_v57 = vld [vmem:[%s13256_s28 + $0xc0] sm:$0xff]  ;;  %v11967_v58 = vpack.c.bf16 %v563_v55, %v562_v54 }
  0x7b   : > { %470 = vst.msk [vmem:[#allocation2 + $0x99] sm:$0xff] %vm409_vm0, %v9216_v29  ;;  %475 = vst.msk [vmem:[#allocation2 + $0xa3] sm:$0xff] %vm409_vm0, %v9217_v32  ;;  %v567_v44 = vld [vmem:[#allocation2 + $0x19] sm:$0xff]  ;;  %v568_v45 = vld [vmem:[#allocation2 + $0x21] sm:$0xff] }
  0x7c   : > { %476 = vst.msk [vmem:[#allocation2 + $0xab] sm:$0xff] %vm409_vm0, %v9218_v33  ;;  %481 = vst.msk [vmem:[#allocation2 + $0xb5] sm:$0xff] %vm409_vm0, %v9219_v34  ;;  %10699 = vmatmul.mubr.msk.f32.gmra.mrb[2].mxu0 %vm409_vm0, %v567_v44  ;;  %v569_v47 = vld [vmem:[#allocation2 + $0x29] sm:$0xff]  ;;  %v570_v48 = vld [vmem:[#allocation2 + $0x31] sm:$0xff] }
  0x7d   : > { %482 = vst.msk [vmem:[#allocation2 + $0xbd] sm:$0xff] %vm409_vm0, %v9220_v35  ;;  %10701 = vmatprep.mubr.msk.f32.mxu0 %vm409_vm0, %v568_v45  ;;  %11962 = vmatpush3.bf16.msra.mxu0 %v11959_v41  ;;  %v571_v49 = vld [vmem:[#allocation2 + $0x39] sm:$0xff]  ;;  %v572_v51 = vld [vmem:[#allocation2 + $0x41] sm:$0xff]  ;;  %487 = vst.msk [vmem:[#allocation2 + $0xc7] sm:$0xff] %vm409_vm0, %v9221_v50 }
  0x7e   : > { %11964 = vmatprep.subr.bf16.mxu0 %v11963_v46  ;;  %488 = vst.msk [vmem:[#allocation2 + $0xcf] sm:$0xff] %vm409_vm0, %v9222_v52  ;;  %493 = vst.msk [vmem:[#allocation2 + $0xd9] sm:$0xff] %vm409_vm0, %v9223_v53  ;;  %v9226_v59 = vld [vmem:[%s13256_s28 + $0xc8] sm:$0xff]  ;;  %v9227_v60 = vld [vmem:[%s13256_s28 + $0xd0] sm:$0xff] }
  0x7f   : > { %494 = vst.msk [vmem:[#allocation2 + $0xe1] sm:$0xff] %vm409_vm0, %v9224_v56  ;;  %499 = vst.msk [vmem:[#allocation2 + $0xeb] sm:$0xff] %vm409_vm0, %v9225_v57  ;;  %v9228_v61 = vld [vmem:[%s13256_s28 + $0xd8] sm:$0xff]  ;;  %v9229_v62 = vld [vmem:[%s13256_s28 + $0xe0] sm:$0xff] }
  0x80   : > { %10702 = vmatmul.mubr.msk.f32.gmra.mrb[4].mxu0 %vm409_vm0, %v569_v47  ;;  %500 = vst.msk [vmem:[#allocation2 + $0xf3] sm:$0xff] %vm409_vm0, %v9226_v59  ;;  %505 = vst.msk [vmem:[#allocation2 + $0xfd] sm:$0xff] %vm409_vm0, %v9227_v60  ;;  %v9230_v63 = vld [vmem:[%s13256_s28 + $0xe8] sm:$0xff]  ;;  %v1352_v1 = vld [vmem:[#allocation6 + $0x80] sm:$0xff] }
  0x81   : > { %10704 = vmatprep.mubr.msk.f32.mxu0 %vm409_vm0, %v570_v48  ;;  %11966 = vmatpush3.bf16.msra.mxu0 %v11963_v46  ;;  %506 = vst.msk [vmem:[#allocation2 + $0x105] sm:$0xff] %vm409_vm0, %v9228_v61  ;;  %511 = vst.msk [vmem:[#allocation2 + $0x10f] sm:$0xff] %vm409_vm0, %v9229_v62  ;;  %v1353_v2 = vld [vmem:[#allocation6 + $0x88] sm:$0xff]  ;;  %v573_v3 = vld [vmem:[#allocation2 + $0x49] sm:$0xff] }
  0x82   : > { %11968 = vmatprep.subr.bf16.mxu0 %v11967_v58  ;;  %512 = vst.msk [vmem:[#allocation2 + $0x117] sm:$0xff] %vm409_vm0, %v9230_v63  ;;  %v13385_v4 = vpack.c.bf16 %v1353_v2, %v1352_v1  ;;  %v574_v5 = vld [vmem:[#allocation2 + $0x51] sm:$0xff]  ;;  %v575_v6 = vld [vmem:[#allocation2 + $0x59] sm:$0xff]  ;;  %v576_v7 = vld [vmem:[#allocation2 + $0x61] sm:$0xff] }
  0x83   : > { %v577_v8 = vld [vmem:[#allocation2 + $0x69] sm:$0xff]  ;;  %v578_v9 = vld [vmem:[#allocation2 + $0x71] sm:$0xff]  ;;  %v579_v10 = vld [vmem:[#allocation2 + $0x79] sm:$0xff]  ;;  %417 = vst.msk [vmem:[#allocation2 + $0x142] sm:$0xf] %vm416_vm3, %v13041_v0 }
  0x84   : > { %10705 = vmatmul.mubr.msk.f32.gmra.mrb[6].mxu0 %vm409_vm0, %v571_v49  ;;  %v580_v11 = vld [vmem:[#allocation2 + $0x81] sm:$0xff]  ;;  %v581_v12 = vld [vmem:[#allocation2 + $0x89] sm:$0xff]  ;;  %v582_v13 = vld [vmem:[#allocation2 + $0x91] sm:$0xff]  ;;  %423 = vst.msk [vmem:[#allocation3 + $0x142] sm:$0xf] %vm416_vm3, %v13041_v0 }
  0x85   : > { %10707 = vmatprep.mubr.msk.f32.mxu0 %vm409_vm0, %v572_v51  ;;  %11970 = vmatpush3.bf16.msra.mxu0 %v11967_v58  ;;  %v583_v14 = vld [vmem:[#allocation2 + $0x99] sm:$0xff]  ;;  %v584_v15 = vld [vmem:[#allocation2 + $0xa1] sm:$0xff]  ;;  %v585_v16 = vld [vmem:[#allocation2 + $0xa9] sm:$0xff] }
  0x86   : > { %11972 = vmatprep.subr.bf16.mxu0 %v13385_v4  ;;  %v586_v17 = vld [vmem:[#allocation2 + $0xb1] sm:$0xff]  ;;  %v587_v18 = vld [vmem:[#allocation2 + $0xb9] sm:$0xff]  ;;  %v588_v19 = vld [vmem:[#allocation2 + $0xc1] sm:$0xff] }
  0x87   : > { %v589_v20 = vld [vmem:[#allocation2 + $0xc9] sm:$0xff]  ;;  %v590_v21 = vld [vmem:[#allocation2 + $0xd1] sm:$0xff]  ;;  %v591_v22 = vld [vmem:[#allocation2 + $0xd9] sm:$0xff] }
  0x88   : > { %10708 = vmatmul.mubr.msk.f32.gmra.mrb[8].mxu0 %vm409_vm0, %v573_v3  ;;  %v592_v23 = vld [vmem:[#allocation2 + $0xe1] sm:$0xff]  ;;  %v593_v24 = vld [vmem:[#allocation2 + $0xe9] sm:$0xff]  ;;  %v594_v25 = vld [vmem:[#allocation2 + $0xf1] sm:$0xff] }
  0x89   : > { %10710 = vmatprep.mubr.msk.f32.mxu0 %vm409_vm0, %v574_v5  ;;  %v595_v26 = vld [vmem:[#allocation2 + $0xf9] sm:$0xff]  ;;  %v596_v27 = vld [vmem:[#allocation2 + $0x101] sm:$0xff]  ;;  %v597_v28 = vld [vmem:[#allocation2 + $0x109] sm:$0xff] }
  0x8a   : > { %v598_v29 = vld [vmem:[#allocation2 + $0x111] sm:$0xff]  ;;  %v599_v30 = vld [vmem:[#allocation2 + $0x119] sm:$0xff]  ;;  %v1355_v33 = vld [vmem:[#allocation6 + $0x98] sm:$0xff] }
  0x8b   : > { %v520_v31 = vld [vmem:[#allocation2] sm:$0xff]  ;;  %v521_v34 = vld [vmem:[#allocation2 + $0x8] sm:$0xff]  ;;  %v522_v35 = vld [vmem:[#allocation2 + $0x10] sm:$0xff] }
  0x8c   : > { %10711 = vmatmul.mubr.msk.f32.gmra.mrb[10].mxu0 %vm409_vm0, %v575_v6  ;;  %v1354_v32 = vld [vmem:[#allocation6 + $0x90] sm:$0xff]  ;;  %v1356_v37 = vld [vmem:[#allocation6 + $0xa0] sm:$0xff]  ;;  %v1357_v38 = vld [vmem:[#allocation6 + $0xa8] sm:$0xff] }
  0x8d   : > { %10713 = vmatprep.mubr.msk.f32.mxu0 %vm409_vm0, %v576_v7  ;;  %v11975_v36 = vpack.c.bf16 %v1355_v33, %v1354_v32  ;;  %v523_v39 = vld [vmem:[#allocation2 + $0x18] sm:$0xff]  ;;  %v524_v40 = vld [vmem:[#allocation2 + $0x20] sm:$0xff]  ;;  %v11979_v41 = vpack.c.bf16 %v1357_v38, %v1356_v37  ;;  %v1359_v43 = vld [vmem:[#allocation6 + $0xb8] sm:$0xff] }
  0x8e   : > { %v1358_v42 = vld [vmem:[#allocation6 + $0xb0] sm:$0xff]  ;;  %v525_v45 = vld [vmem:[#allocation2 + $0x28] sm:$0xff]  ;;  %v526_v46 = vld [vmem:[#allocation2 + $0x30] sm:$0xff] }
  0x8f   : > { %v9231_v44 = vld [vmem:[%s13256_s28 + $0xf0] sm:$0xff]  ;;  %v11983_v47 = vpack.c.bf16 %v1359_v43, %v1358_v42  ;;  %v1786_v48 = vld [vmem:[#allocation6 + $0xc0] sm:$0xff]  ;;  %v1787_v49 = vld [vmem:[#allocation6 + $0xc8] sm:$0xff] }
  0x90   : > { %10714 = vmatmul.mubr.msk.f32.gmra.mrb[12].mxu0 %vm409_vm0, %v577_v8  ;;  %517 = vst.msk [vmem:[#allocation2 + $0x121] sm:$0xff] %vm409_vm0, %v9231_v44  ;;  %v527_v50 = vld [vmem:[#allocation2 + $0x38] sm:$0xff]  ;;  %v528_v51 = vld [vmem:[#allocation2 + $0x40] sm:$0xff]  ;;  %v13425_v52 = vpack.c.bf16 %v1787_v49, %v1786_v48  ;;  %v529_v53 = vld [vmem:[#allocation2 + $0x48] sm:$0xff] }
  0x91   : > { %10716 = vmatprep.mubr.msk.f32.mxu0 %vm409_vm0, %v578_v9  ;;  %v530_v54 = vld [vmem:[#allocation2 + $0x50] sm:$0xff]  ;;  %v531_v55 = vld [vmem:[#allocation2 + $0x58] sm:$0xff]  ;;  %v532_v56 = vld [vmem:[#allocation2 + $0x60] sm:$0xff] }
  0x92   : > { %v533_v57 = vld [vmem:[#allocation2 + $0x68] sm:$0xff]  ;;  %v534_v58 = vld [vmem:[#allocation2 + $0x70] sm:$0xff]  ;;  %v535_v59 = vld [vmem:[#allocation2 + $0x78] sm:$0xff] }
  0x93   : > { %v536_v60 = vld [vmem:[#allocation2 + $0x80] sm:$0xff]  ;;  %v537_v61 = vld [vmem:[#allocation2 + $0x88] sm:$0xff]  ;;  %v538_v62 = vld [vmem:[#allocation2 + $0x90] sm:$0xff] }
  0x94   : > { %10717 = vmatmul.mubr.msk.f32.gmra.mrb[14].mxu0 %vm409_vm0, %v579_v10  ;;  %v539_v63 = vld [vmem:[#allocation2 + $0x98] sm:$0xff]  ;;  %v540_v1 = vld [vmem:[#allocation2 + $0xa0] sm:$0xff]  ;;  %v541_v2 = vld [vmem:[#allocation2 + $0xa8] sm:$0xff] }
  0x95   : > { %10719 = vmatprep.mubr.msk.f32.mxu0 %vm409_vm0, %v580_v11  ;;  %v542_v3 = vld [vmem:[#allocation2 + $0xb0] sm:$0xff]  ;;  %v544_v5 = vld [vmem:[#allocation2 + $0xc0] sm:$0xff]  ;;  %v545_v6 = vld [vmem:[#allocation2 + $0xc8] sm:$0xff] }
  0x96   : > { %v546_v7 = vld [vmem:[#allocation2 + $0xd0] sm:$0xff]  ;;  %v547_v8 = vld [vmem:[#allocation2 + $0xd8] sm:$0xff]  ;;  %v548_v9 = vld [vmem:[#allocation2 + $0xe0] sm:$0xff] }
  0x97   : > { %v549_v10 = vld [vmem:[#allocation2 + $0xe8] sm:$0xff]  ;;  %v550_v11 = vld [vmem:[#allocation2 + $0xf0] sm:$0xff]  ;;  %v13533_v49 = vld [vmem:[#allocation2 + $0x9a] sm:$0xff] }
  0x98   : > { %10720 = vmatmul.mubr.msk.f32.gmra.mrb[16].mxu0 %vm409_vm0, %v581_v12  ;;  %v551_v12 = vld [vmem:[#allocation2 + $0xf8] sm:$0xff]  ;;  %v13484_v37 = vld [vmem:[#allocation2 + $0x42] sm:$0xff]  ;;  %v13509_v43 = vld [vmem:[#allocation2 + $0x6a] sm:$0xff] }
  0x99   : > { %10722 = vmatprep.mubr.msk.f32.mxu0 %vm409_vm0, %v582_v13  ;;  %v552_v13 = vld [vmem:[#allocation2 + $0x100] sm:$0xff]  ;;  %v13476_v32 = vld [vmem:[#allocation2 + $0x32] sm:$0xff] }
  0x9a   : > { %v13503_v42 = vld [vmem:[#allocation2 + $0x62] sm:$0xff]  ;;  %v13511_v44 = vld [vmem:[#allocation2 + $0x72] sm:$0xff] }
  0x9b   : > { %v13527_v48 = vld [vmem:[#allocation2 + $0x92] sm:$0xff] }
  0x9c   : > { %10723 = vmatmul.mubr.msk.f32.gmra.mrb[18].mxu0 %vm409_vm0, %v583_v14  ;;  %v553_v14 = vld [vmem:[#allocation2 + $0x108] sm:$0xff]  ;;  %v13712_v0 = vld [vmem:[#allocation2 + $0x54] sm:$0xff] }
  0x9d   : > { %10725 = vmatprep.mubr.msk.f32.mxu0 %vm409_vm0, %v584_v15  ;;  %v554_v15 = vld [vmem:[#allocation2 + $0x110] sm:$0xff] }
  0xa0   : > { %10726 = vmatmul.mubr.msk.f32.gmra.mrb[20].mxu0 %vm409_vm0, %v585_v16  ;;  %v555_v16 = vld [vmem:[#allocation2 + $0x118] sm:$0xff] }
  0xa1   : > { %10728 = vmatprep.mubr.msk.f32.mxu0 %vm409_vm0, %v586_v17  ;;  %v1315_v17 = vld [vmem:[#allocation2 + $0x2] sm:$0xff] }
  0xa4   : > { %10729 = vmatmul.mubr.msk.f32.gmra.mrb[22].mxu0 %vm409_vm0, %v587_v18  ;;  %v1788_v18 = vld [vmem:[#allocation6 + $0xd0] sm:$0xff] }
  0xa5   : > { %10731 = vmatprep.mubr.msk.f32.mxu0 %vm409_vm0, %v588_v19  ;;  %v1789_v19 = vld [vmem:[#allocation6 + $0xd8] sm:$0xff] }
  0xa8   : > { %10732 = vmatmul.mubr.msk.f32.gmra.mrb[24].mxu0 %vm409_vm0, %v589_v20  ;;  %v1316_v20 = vld [vmem:[#allocation2 + $0xa] sm:$0xff] }
  0xa9   : > { %10734 = vmatprep.mubr.msk.f32.mxu0 %vm409_vm0, %v590_v21  ;;  %v13458_v21 = vld [vmem:[#allocation2 + $0x12] sm:$0xff] }
  0xac   : > { %10735 = vmatmul.mubr.msk.f32.gmra.mrb[26].mxu0 %vm409_vm0, %v591_v22  ;;  %v11991_v22 = vpack.c.bf16 %v1789_v19, %v1788_v18  ;;  %v2656_v18 = vld [vmem:[#allocation6 + $0x150] sm:$0xff]  ;;  %v2657_v19 = vld [vmem:[#allocation6 + $0x158] sm:$0xff] }
  0xad   : > { %10737 = vmatprep.mubr.msk.f32.mxu0 %vm409_vm0, %v592_v23  ;;  %v1790_v23 = vld [vmem:[#allocation6 + $0xe0] sm:$0xff] }
  0xb0   : > { %10738 = vmatmul.mubr.msk.f32.gmra.mrb[28].mxu0 %vm409_vm0, %v593_v24  ;;  %v1791_v24 = vld [vmem:[#allocation6 + $0xe8] sm:$0xff] }
  0xb1   : > { %10740 = vmatprep.mubr.msk.f32.mxu0 %vm409_vm0, %v594_v25  ;;  %v13464_v25 = vld [vmem:[#allocation2 + $0x1a] sm:$0xff] }
  0xb4   : > { %10741 = vmatmul.mubr.msk.f32.gmra.mrb[30].mxu0 %vm409_vm0, %v595_v26  ;;  %v13466_v26 = vld [vmem:[#allocation2 + $0x22] sm:$0xff] }
  0xb5   : > { %10743 = vmatprep.mubr.msk.f32.mxu0 %vm409_vm0, %v596_v27  ;;  %v11995_v27 = vpack.c.bf16 %v1791_v24, %v1790_v23  ;;  %v2658_v23 = vld [vmem:[#allocation6 + $0x160] sm:$0xff]  ;;  %v2659_v24 = vld [vmem:[#allocation6 + $0x168] sm:$0xff] }
  0xb8   : > { %10744 = vmatmul.mubr.msk.f32.gmra.mrb[32].mxu0 %vm409_vm0, %v597_v28  ;;  %v9232_v28 = vld [vmem:[%s13256_s28 + $0xf8] sm:$0xff] }
  0xb9   : > { %10746 = vmatprep.mubr.msk.f32.mxu0 %vm409_vm0, %v598_v29  ;;  %v1792_v29 = vld [vmem:[#allocation6 + $0xf0] sm:$0xff]  ;;  %518 = vst.msk [vmem:[#allocation2 + $0x129] sm:$0xff] %vm409_vm0, %v9232_v28 }
  0xba   : > { %v2660_v28 = vld [vmem:[#allocation6 + $0x170] sm:$0xff] }
  0xbc   : > { %10747 = vmatmul.mubr.msk.f32.gmra.mrb[34].mxu0 %vm409_vm0, %v599_v30  ;;  %v1793_v30 = vld [vmem:[#allocation6 + $0xf8] sm:$0xff] }
  0xbd   : > { %10765 = vmatprep.mubr.msk.f32.mxu0 %vm409_vm0, %v520_v31  ;;  %v13474_v31 = vld [vmem:[#allocation2 + $0x2a] sm:$0xff]  ;;  %v11999_v33 = vpack.c.bf16 %v1793_v30, %v1792_v29  ;;  %v8961_v30 = vld [vmem:[#allocation2 + $0x3b] sm:$0xff] }
  0xbe   : > { %v2661_v29 = vld [vmem:[#allocation6 + $0x178] sm:$0xff] }
  0xc0   : > { %10766 = vmatmul.mubr.msk.f32.vlgmr.msra.gmra.mrb[0].mxu0 %vm409_vm0, %v521_v34  ;;  %v2220_v34 = vld [vmem:[#allocation6 + $0x100] sm:$0xff] }
  0xc1   : > { %11974 = vmatpush3.bf16.msra.mxu0 %v13385_v4  ;;  %10768 = vmatprep.mubr.msk.f32.mxu0 %vm409_vm0, %v522_v35  ;;  %v543_v4 = vld [vmem:[#allocation2 + $0xb8] sm:$0xff] }
  0xc2   : > { %11976 = vmatprep.subr.bf16.mxu0 %v11975_v36  ;;  %v2221_v35 = vld [vmem:[#allocation6 + $0x108] sm:$0xff] }
  0xc3   : > { %v13486_v38 = vpack.c.bf16 %v2221_v35, %v2220_v34  ;;  %v3089_v34 = vld [vmem:[#allocation6 + $0x188] sm:$0xff]  ;;  %v8963_v35 = vld [vmem:[#allocation2 + $0x4b] sm:$0xff] }
  0xc4   : > { %10769 = vmatmul.mubr.msk.f32.gmra.mrb[2].mxu0 %vm409_vm0, %v523_v39  ;;  %v13492_v39 = vld [vmem:[#allocation2 + $0x4a] sm:$0xff] }
  0xc5   : > { %10771 = vmatprep.mubr.msk.f32.mxu0 %vm409_vm0, %v524_v40  ;;  %11978 = vmatpush3.bf16.msra.mxu0 %v11975_v36  ;;  %v13482_v36 = vld [vmem:[#allocation2 + $0x3a] sm:$0xff]  ;;  %v13494_v40 = vld [vmem:[#allocation2 + $0x52] sm:$0xff] }
  0xc6   : > { %11980 = vmatprep.subr.bf16.mxu0 %v11979_v41 }
  0xc8   : > { %10772 = vmatmul.mubr.msk.f32.gmra.mrb[4].mxu0 %vm409_vm0, %v525_v45  ;;  %v13517_v45 = vld [vmem:[#allocation2 + $0x7a] sm:$0xff] }
  0xc9   : > { %10774 = vmatprep.mubr.msk.f32.mxu0 %vm409_vm0, %v526_v46  ;;  %11982 = vmatpush3.bf16.msra.mxu0 %v11979_v41  ;;  %v13501_v41 = vld [vmem:[#allocation2 + $0x5a] sm:$0xff]  ;;  %v13519_v46 = vld [vmem:[#allocation2 + $0x82] sm:$0xff] }
  0xca   : > { %11984 = vmatprep.subr.bf16.mxu0 %v11983_v47 }
  0xcc   : > { %10775 = vmatmul.mubr.msk.f32.gmra.mrb[6].mxu0 %vm409_vm0, %v527_v50  ;;  %v13535_v50 = vld [vmem:[#allocation2 + $0xa2] sm:$0xff] }
  0xcd   : > { %10777 = vmatprep.mubr.msk.f32.mxu0 %vm409_vm0, %v528_v51  ;;  %11986 = vmatpush3.bf16.msra.mxu0 %v11983_v47  ;;  %v13525_v47 = vld [vmem:[#allocation2 + $0x8a] sm:$0xff] }
  0xce   : > { %11988 = vmatprep.subr.bf16.mxu0 %v13425_v52  ;;  %v13541_v51 = vld [vmem:[#allocation2 + $0xaa] sm:$0xff] }
  0xd0   : > { %10778 = vmatmul.mubr.msk.f32.gmra.mrb[8].mxu0 %vm409_vm0, %v529_v53  ;;  %v13549_v53 = vld [vmem:[#allocation2 + $0xba] sm:$0xff] }
  0xd1   : > { %10780 = vmatprep.mubr.msk.f32.mxu0 %vm409_vm0, %v530_v54  ;;  %v13551_v54 = vld [vmem:[#allocation2 + $0xc2] sm:$0xff] }
  0xd4   : > { %10781 = vmatmul.mubr.msk.f32.gmra.mrb[10].mxu0 %vm409_vm0, %v531_v55  ;;  %v13557_v55 = vld [vmem:[#allocation2 + $0xca] sm:$0xff] }
  0xd5   : > { %10783 = vmatprep.mubr.msk.f32.mxu0 %vm409_vm0, %v532_v56  ;;  %v13559_v56 = vld [vmem:[#allocation2 + $0xd2] sm:$0xff] }
  0xd8   : > { %10784 = vmatmul.mubr.msk.f32.gmra.mrb[12].mxu0 %vm409_vm0, %v533_v57  ;;  %v13565_v57 = vld [vmem:[#allocation2 + $0xda] sm:$0xff] }
  0xd9   : > { %10786 = vmatprep.mubr.msk.f32.mxu0 %vm409_vm0, %v534_v58  ;;  %v13567_v58 = vld [vmem:[#allocation2 + $0xe2] sm:$0xff] }
  0xdc   : > { %10787 = vmatmul.mubr.msk.f32.gmra.mrb[14].mxu0 %vm409_vm0, %v535_v59  ;;  %v1344_v59 = vld [vmem:[#allocation2 + $0xea] sm:$0xff] }
  0xdd   : > { %10789 = vmatprep.mubr.msk.f32.mxu0 %vm409_vm0, %v536_v60  ;;  %v1345_v60 = vld [vmem:[#allocation2 + $0xf2] sm:$0xff] }
  0xe0   : > { %10790 = vmatmul.mubr.msk.f32.gmra.mrb[16].mxu0 %vm409_vm0, %v537_v61  ;;  %v1346_v61 = vld [vmem:[#allocation2 + $0xfa] sm:$0xff] }
  0xe1   : > { %10792 = vmatprep.mubr.msk.f32.mxu0 %vm409_vm0, %v538_v62  ;;  %v1347_v62 = vld [vmem:[#allocation2 + $0x102] sm:$0xff] }
  0xe4   : > { %10793 = vmatmul.mubr.msk.f32.gmra.mrb[18].mxu0 %vm409_vm0, %v539_v63  ;;  %v1348_v63 = vld [vmem:[#allocation2 + $0x10a] sm:$0xff] }
  0xe5   : > { %10795 = vmatprep.mubr.msk.f32.mxu0 %vm409_vm0, %v540_v1  ;;  %v1349_v1 = vld [vmem:[#allocation2 + $0x112] sm:$0xff] }
  0xe8   : > { %10796 = vmatmul.mubr.msk.f32.gmra.mrb[20].mxu0 %vm409_vm0, %v541_v2  ;;  %v1350_v2 = vld [vmem:[#allocation2 + $0x11a] sm:$0xff] }
  0xe9   : > { %10798 = vmatprep.mubr.msk.f32.mxu0 %vm409_vm0, %v542_v3  ;;  %v2222_v3 = vld [vmem:[#allocation6 + $0x110] sm:$0xff] }
  0xec   : > { %10799 = vmatmul.mubr.msk.f32.gmra.mrb[22].mxu0 %vm409_vm0, %v543_v4  ;;  %v2223_v4 = vld [vmem:[#allocation6 + $0x118] sm:$0xff] }
  0xed   : > { %10801 = vmatprep.mubr.msk.f32.mxu0 %vm409_vm0, %v544_v5  ;;  %v12007_v5 = vpack.c.bf16 %v2223_v4, %v2222_v3  ;;  %v3090_v3 = vld [vmem:[#allocation6 + $0x190] sm:$0xff]  ;;  %v3091_v4 = vld [vmem:[#allocation6 + $0x198] sm:$0xff] }
  0xf0   : > { %10802 = vmatmul.mubr.msk.f32.gmra.mrb[24].mxu0 %vm409_vm0, %v545_v6  ;;  %v2224_v6 = vld [vmem:[#allocation6 + $0x120] sm:$0xff] }
  0xf1   : > { %10804 = vmatprep.mubr.msk.f32.mxu0 %vm409_vm0, %v546_v7  ;;  %v2225_v7 = vld [vmem:[#allocation6 + $0x128] sm:$0xff] }
  0xf4   : > { %10805 = vmatmul.mubr.msk.f32.gmra.mrb[26].mxu0 %vm409_vm0, %v547_v8  ;;  %v12011_v8 = vpack.c.bf16 %v2225_v7, %v2224_v6  ;;  %v13684_v6 = vld [vmem:[#allocation2 + $0x24] sm:$0xff]  ;;  %v12039_v7 = vpack.c.bf16 %v3091_v4, %v3090_v3  ;;  %v13925_v3 = vld [vmem:[#allocation2 + $0x12c] sm:$0xff] }
  0xf5   : > { %10807 = vmatprep.mubr.msk.f32.mxu0 %vm409_vm0, %v548_v9  ;;  %v2226_v9 = vld [vmem:[#allocation6 + $0x130] sm:$0xff] }
  0xf6   : > { %v3524_v4 = vld [vmem:[#allocation6 + $0x1d0] sm:$0xff] }
  0xf8   : > { %10808 = vmatmul.mubr.msk.f32.gmra.mrb[28].mxu0 %vm409_vm0, %v549_v10  ;;  %v2227_v10 = vld [vmem:[#allocation6 + $0x138] sm:$0xff] }
  0xf9   : > { %10810 = vmatprep.mubr.msk.f32.mxu0 %vm409_vm0, %v550_v11  ;;  %v12015_v11 = vpack.c.bf16 %v2227_v10, %v2226_v9  ;;  %v3093_v9 = vld [vmem:[#allocation6 + $0x1a8] sm:$0xff]  ;;  %v13690_v10 = vld [vmem:[#allocation2 + $0x2c] sm:$0xff] }
  0xfc   : > { %10811 = vmatmul.mubr.msk.f32.gmra.mrb[30].mxu0 %vm409_vm0, %v551_v12  ;;  %v2654_v12 = vld [vmem:[#allocation6 + $0x140] sm:$0xff] }
  0xfd   : > { %10813 = vmatprep.mubr.msk.f32.mxu0 %vm409_vm0, %v552_v13  ;;  %v2655_v13 = vld [vmem:[#allocation6 + $0x148] sm:$0xff] }
 0x100   : > { %10814 = vmatmul.mubr.msk.f32.gmra.mrb[32].mxu0 %vm409_vm0, %v553_v14  ;;  %v12019_v14 = vpack.c.bf16 %v2655_v13, %v2654_v12  ;;  %v3094_v13 = vld [vmem:[#allocation6 + $0x1b0] sm:$0xff] }
 0x101   : > { %10816 = vmatprep.mubr.msk.f32.mxu0 %vm409_vm0, %v554_v15  ;;  %v1783_v15 = vld [vmem:[#allocation2 + $0x122] sm:$0xff] }
 0x104   : > { %10817 = vmatmul.mubr.msk.f32.gmra.mrb[34].mxu0 %vm409_vm0, %v555_v16  ;;  %v1784_v16 = vld [vmem:[#allocation2 + $0x12a] sm:$0xff] }
 0x105   : > { %10835 = vmatprep.mubr.msk.f32.mxu0 %vm409_vm0, %v1315_v17  ;;  %v8956_v17 = vld [vmem:[#allocation2 + $0x13] sm:$0xff] }
 0x108   : > { %10836 = vmatmul.mubr.msk.f32.vlgmr.msra.gmra.mrb[0].mxu0 %vm409_vm0, %v1316_v20  ;;  %v8957_v20 = vld [vmem:[#allocation2 + $0x1b] sm:$0xff] }
 0x109   : > { %11990 = vmatpush3.bf16.msra.mxu0 %v13425_v52  ;;  %10838 = vmatprep.mubr.msk.f32.mxu0 %vm409_vm0, %v13458_v21  ;;  %v13543_v52 = vld [vmem:[#allocation2 + $0xb2] sm:$0xff] }
 0x10a   : > { %11992 = vmatprep.subr.bf16.mxu0 %v11991_v22 }
 0x10c   : > { %10839 = vmatmul.mubr.msk.f32.gmra.mrb[2].mxu0 %vm409_vm0, %v13464_v25 }
 0x10d   : > { %10841 = vmatprep.mubr.msk.f32.mxu0 %vm409_vm0, %v13466_v26  ;;  %11994 = vmatpush3.bf16.msra.mxu0 %v11991_v22  ;;  %v12023_v22 = vpack.c.bf16 %v2657_v19, %v2656_v18  ;;  %v3522_v18 = vld [vmem:[#allocation6 + $0x1c0] sm:$0xff]  ;;  %v3523_v19 = vld [vmem:[#allocation6 + $0x1c8] sm:$0xff] }
 0x10e   : > { %11996 = vmatprep.subr.bf16.mxu0 %v11995_v27 }
 0x110   : > { %10842 = vmatmul.mubr.msk.f32.gmra.mrb[4].mxu0 %vm409_vm0, %v13474_v31 }
 0x111   : > { %10844 = vmatprep.mubr.msk.f32.mxu0 %vm409_vm0, %v13476_v32  ;;  %11998 = vmatpush3.bf16.msra.mxu0 %v11995_v27  ;;  %v12027_v27 = vpack.c.bf16 %v2659_v24, %v2658_v23  ;;  %v13722_v23 = vld [vmem:[#allocation2 + $0x64] sm:$0xff]  ;;  %v13729_v24 = vld [vmem:[#allocation2 + $0x6c] sm:$0xff] }
 0x112   : > { %12000 = vmatprep.subr.bf16.mxu0 %v11999_v33 }
 0x114   : > { %10845 = vmatmul.mubr.msk.f32.gmra.mrb[6].mxu0 %vm409_vm0, %v13482_v36 }
 0x115   : > { %10847 = vmatprep.mubr.msk.f32.mxu0 %vm409_vm0, %v13484_v37  ;;  %12002 = vmatpush3.bf16.msra.mxu0 %v11999_v33  ;;  %v3088_v33 = vld [vmem:[#allocation6 + $0x180] sm:$0xff] }
 0x116   : > { %12004 = vmatprep.subr.bf16.mxu0 %v13486_v38 }
 0x118   : > { %10848 = vmatmul.mubr.msk.f32.gmra.mrb[8].mxu0 %vm409_vm0, %v13492_v39 }
 0x119   : > { %10850 = vmatprep.mubr.msk.f32.mxu0 %vm409_vm0, %v13494_v40 }
 0x11c   : > { %10851 = vmatmul.mubr.msk.f32.gmra.mrb[10].mxu0 %vm409_vm0, %v13501_v41 }
 0x11d   : > { %10853 = vmatprep.mubr.msk.f32.mxu0 %vm409_vm0, %v13503_v42 }
 0x120   : > { %10854 = vmatmul.mubr.msk.f32.gmra.mrb[12].mxu0 %vm409_vm0, %v13509_v43 }
 0x121   : > { %10856 = vmatprep.mubr.msk.f32.mxu0 %vm409_vm0, %v13511_v44 }
 0x124   : > { %10857 = vmatmul.mubr.msk.f32.gmra.mrb[14].mxu0 %vm409_vm0, %v13517_v45 }
 0x125   : > { %10859 = vmatprep.mubr.msk.f32.mxu0 %vm409_vm0, %v13519_v46 }
 0x128   : > { %10860 = vmatmul.mubr.msk.f32.gmra.mrb[16].mxu0 %vm409_vm0, %v13525_v47 }
 0x129   : > { %10862 = vmatprep.mubr.msk.f32.mxu0 %vm409_vm0, %v13527_v48 }
 0x12c   : > { %10863 = vmatmul.mubr.msk.f32.gmra.mrb[18].mxu0 %vm409_vm0, %v13533_v49 }
 0x12d   : > { %10865 = vmatprep.mubr.msk.f32.mxu0 %vm409_vm0, %v13535_v50 }
 0x130   : > { %10866 = vmatmul.mubr.msk.f32.gmra.mrb[20].mxu0 %vm409_vm0, %v13541_v51 }
 0x131   : > { %10868 = vmatprep.mubr.msk.f32.mxu0 %vm409_vm0, %v13543_v52 }
 0x134   : > { %10869 = vmatmul.mubr.msk.f32.gmra.mrb[22].mxu0 %vm409_vm0, %v13549_v53 }
 0x135   : > { %10871 = vmatprep.mubr.msk.f32.mxu0 %vm409_vm0, %v13551_v54 }
 0x138   : > { %10872 = vmatmul.mubr.msk.f32.gmra.mrb[24].mxu0 %vm409_vm0, %v13557_v55 }
 0x139   : > { %10874 = vmatprep.mubr.msk.f32.mxu0 %vm409_vm0, %v13559_v56 }
 0x13c   : > { %10875 = vmatmul.mubr.msk.f32.gmra.mrb[26].mxu0 %vm409_vm0, %v13565_v57 }
 0x13d   : > { %10877 = vmatprep.mubr.msk.f32.mxu0 %vm409_vm0, %v13567_v58 }
 0x140   : > { %10878 = vmatmul.mubr.msk.f32.gmra.mrb[28].mxu0 %vm409_vm0, %v1344_v59 }
 0x141   : > { %10880 = vmatprep.mubr.msk.f32.mxu0 %vm409_vm0, %v1345_v60 }
 0x144   : > { %10881 = vmatmul.mubr.msk.f32.gmra.mrb[30].mxu0 %vm409_vm0, %v1346_v61 }
 0x145   : > { %10883 = vmatprep.mubr.msk.f32.mxu0 %vm409_vm0, %v1347_v62 }
 0x148   : > { %10884 = vmatmul.mubr.msk.f32.gmra.mrb[32].mxu0 %vm409_vm0, %v1348_v63 }
 0x149   : > { %10886 = vmatprep.mubr.msk.f32.mxu0 %vm409_vm0, %v1349_v1 }
 0x14c   : > { %10887 = vmatmul.mubr.msk.f32.gmra.mrb[34].mxu0 %vm409_vm0, %v1350_v2 }
 0x14d   : > { %10905 = vmatprep.mubr.msk.f32.mxu0 %vm409_vm0, %v13458_v21  ;;  %v8958_v21 = vld [vmem:[#allocation2 + $0x23] sm:$0xff] }
 0x150   : > { %10906 = vmatmul.mubr.msk.f32.vlgmr.msra.gmra.mrb[0].mxu0 %vm409_vm0, %v13464_v25  ;;  %v8959_v25 = vld [vmem:[#allocation2 + $0x2b] sm:$0xff] }
 0x151   : > { %12006 = vmatpush3.bf16.msra.mxu0 %v13486_v38  ;;  %10908 = vmatprep.mubr.msk.f32.mxu0 %vm409_vm0, %v13466_v26  ;;  %v8960_v26 = vld [vmem:[#allocation2 + $0x33] sm:$0xff]  ;;  %v8965_v38 = vld [vmem:[#allocation2 + $0x5b] sm:$0xff] }
 0x152   : > { %12008 = vmatprep.subr.bf16.mxu0 %v12007_v5 }
 0x154   : > { %10909 = vmatmul.mubr.msk.f32.gmra.mrb[2].mxu0 %vm409_vm0, %v13474_v31  ;;  %v8962_v31 = vld [vmem:[#allocation2 + $0x43] sm:$0xff] }
 0x155   : > { %10911 = vmatprep.mubr.msk.f32.mxu0 %vm409_vm0, %v13476_v32  ;;  %12010 = vmatpush3.bf16.msra.mxu0 %v12007_v5  ;;  %v12031_v32 = vpack.c.bf16 %v2661_v29, %v2660_v28  ;;  %v2618_v5 = vld [vmem:[#allocation2 + $0x1c] sm:$0xff]  ;;  %v13745_v28 = vld [vmem:[#allocation2 + $0x8c] sm:$0xff]  ;;  %v13747_v29 = vld [vmem:[#allocation2 + $0x94] sm:$0xff] }
 0x156   : > { %12012 = vmatprep.subr.bf16.mxu0 %v12011_v8 }
 0x158   : > { %10912 = vmatmul.mubr.msk.f32.gmra.mrb[4].mxu0 %vm409_vm0, %v13482_v36  ;;  %v8964_v36 = vld [vmem:[#allocation2 + $0x53] sm:$0xff] }
 0x159   : > { %10914 = vmatprep.mubr.msk.f32.mxu0 %vm409_vm0, %v13484_v37  ;;  %12014 = vmatpush3.bf16.msra.mxu0 %v12011_v8  ;;  %v13651_v37 = vpack.c.bf16 %v3089_v34, %v3088_v33  ;;  %v3092_v8 = vld [vmem:[#allocation6 + $0x1a0] sm:$0xff]  ;;  %v13042_v34 = vmov 0  }
 0x15a   : > { %12016 = vmatprep.subr.bf16.mxu0 %v12015_v11  ;;  %v12043_v12 = vpack.c.bf16 %v3093_v9, %v3092_v8  ;;  %v13766_v33 = vld [vmem:[#allocation2 + $0xac] sm:$0xff]  ;;  %12868 = vset.pattern.permute.xlu0 %v13042_v34 }
 0x15b   : > { %12869 = vset.pattern.permute.xlu1 %v13042_v34  ;;  %v13942_v8 = vld [vmem:[%s15293_s1 + $0x90] sm:$0xff] }
 0x15c   : > { %10915 = vmatmul.mubr.msk.f32.gmra.mrb[6].mxu0 %vm409_vm0, %v13492_v39  ;;  %v8966_v39 = vld [vmem:[#allocation2 + $0x63] sm:$0xff]  ;;  %v3956_v34 = vld [vmem:[#allocation6 + $0x200] sm:$0xff] }
 0x15d   : > { %10917 = vmatprep.mubr.msk.f32.mxu0 %vm409_vm0, %v13494_v40  ;;  %12018 = vmatpush3.bf16.msra.mxu0 %v12015_v11  ;;  %v8967_v40 = vld [vmem:[#allocation2 + $0x6b] sm:$0xff]  ;;  %v13692_v11 = vld [vmem:[#allocation2 + $0x34] sm:$0xff] }
 0x15e   : > { %12020 = vmatprep.subr.bf16.mxu0 %v12019_v14 }
 0x160   : > { %10918 = vmatmul.mubr.msk.f32.gmra.mrb[8].mxu0 %vm409_vm0, %v13501_v41  ;;  %v8968_v41 = vld [vmem:[#allocation2 + $0x73] sm:$0xff] }
 0x161   : > { %10920 = vmatprep.mubr.msk.f32.mxu0 %vm409_vm0, %v13503_v42  ;;  %v8969_v42 = vld [vmem:[#allocation2 + $0x7b] sm:$0xff] }
 0x164   : > { %10921 = vmatmul.mubr.msk.f32.gmra.mrb[10].mxu0 %vm409_vm0, %v13509_v43  ;;  %v8970_v43 = vld [vmem:[#allocation2 + $0x83] sm:$0xff] }
 0x165   : > { %10923 = vmatprep.mubr.msk.f32.mxu0 %vm409_vm0, %v13511_v44  ;;  %v8971_v44 = vld [vmem:[#allocation2 + $0x8b] sm:$0xff] }
 0x168   : > { %10924 = vmatmul.mubr.msk.f32.gmra.mrb[12].mxu0 %vm409_vm0, %v13517_v45  ;;  %v8972_v45 = vld [vmem:[#allocation2 + $0x93] sm:$0xff] }
 0x169   : > { %10926 = vmatprep.mubr.msk.f32.mxu0 %vm409_vm0, %v13519_v46  ;;  %v8973_v46 = vld [vmem:[#allocation2 + $0x9b] sm:$0xff] }
 0x16c   : > { %10927 = vmatmul.mubr.msk.f32.gmra.mrb[14].mxu0 %vm409_vm0, %v13525_v47  ;;  %v8974_v47 = vld [vmem:[#allocation2 + $0xa3] sm:$0xff] }
 0x16d   : > { %10929 = vmatprep.mubr.msk.f32.mxu0 %vm409_vm0, %v13527_v48  ;;  %v8975_v48 = vld [vmem:[#allocation2 + $0xab] sm:$0xff] }
 0x170   : > { %10930 = vmatmul.mubr.msk.f32.gmra.mrb[16].mxu0 %vm409_vm0, %v13533_v49  ;;  %v8976_v49 = vld [vmem:[#allocation2 + $0xb3] sm:$0xff] }
 0x171   : > { %10932 = vmatprep.mubr.msk.f32.mxu0 %vm409_vm0, %v13535_v50  ;;  %v8977_v50 = vld [vmem:[#allocation2 + $0xbb] sm:$0xff] }
 0x174   : > { %10933 = vmatmul.mubr.msk.f32.gmra.mrb[18].mxu0 %vm409_vm0, %v13541_v51  ;;  %v8978_v51 = vld [vmem:[#allocation2 + $0xc3] sm:$0xff] }
 0x175   : > { %10935 = vmatprep.mubr.msk.f32.mxu0 %vm409_vm0, %v13543_v52  ;;  %v8979_v52 = vld [vmem:[#allocation2 + $0xcb] sm:$0xff] }
 0x178   : > { %10936 = vmatmul.mubr.msk.f32.gmra.mrb[20].mxu0 %vm409_vm0, %v13549_v53  ;;  %v8980_v53 = vld [vmem:[#allocation2 + $0xd3] sm:$0xff] }
 0x179   : > { %10938 = vmatprep.mubr.msk.f32.mxu0 %vm409_vm0, %v13551_v54  ;;  %v8981_v54 = vld [vmem:[#allocation2 + $0xdb] sm:$0xff] }
 0x17c   : > { %10939 = vmatmul.mubr.msk.f32.gmra.mrb[22].mxu0 %vm409_vm0, %v13557_v55  ;;  %v8982_v55 = vld [vmem:[#allocation2 + $0xe3] sm:$0xff] }
 0x17d   : > { %10941 = vmatprep.mubr.msk.f32.mxu0 %vm409_vm0, %v13559_v56  ;;  %v8983_v56 = vld [vmem:[#allocation2 + $0xeb] sm:$0xff] }
 0x180   : > { %10942 = vmatmul.mubr.msk.f32.gmra.mrb[24].mxu0 %vm409_vm0, %v13565_v57  ;;  %v8984_v57 = vld [vmem:[#allocation2 + $0xf3] sm:$0xff] }
 0x181   : > { %10944 = vmatprep.mubr.msk.f32.mxu0 %vm409_vm0, %v13567_v58  ;;  %v8985_v58 = vld [vmem:[#allocation2 + $0xfb] sm:$0xff] }
 0x184   : > { %10945 = vmatmul.mubr.msk.f32.gmra.mrb[26].mxu0 %vm409_vm0, %v1344_v59  ;;  %v8986_v59 = vld [vmem:[#allocation2 + $0x103] sm:$0xff] }
 0x185   : > { %10947 = vmatprep.mubr.msk.f32.mxu0 %vm409_vm0, %v1345_v60  ;;  %v8987_v60 = vld [vmem:[#allocation2 + $0x10b] sm:$0xff] }
 0x188   : > { %10948 = vmatmul.mubr.msk.f32.gmra.mrb[28].mxu0 %vm409_vm0, %v1346_v61  ;;  %v8988_v61 = vld [vmem:[#allocation2 + $0x113] sm:$0xff] }
 0x189   : > { %10950 = vmatprep.mubr.msk.f32.mxu0 %vm409_vm0, %v1347_v62  ;;  %v8989_v62 = vld [vmem:[#allocation2 + $0x11b] sm:$0xff] }
 0x18c   : > { %10951 = vmatmul.mubr.msk.f32.gmra.mrb[30].mxu0 %vm409_vm0, %v1348_v63  ;;  %v8990_v63 = vld [vmem:[#allocation2 + $0x123] sm:$0xff] }
 0x18d   : > { %10953 = vmatprep.mubr.msk.f32.mxu0 %vm409_vm0, %v1349_v1  ;;  %v8991_v1 = vld [vmem:[#allocation2 + $0x12b] sm:$0xff] }
 0x190   : > { %10954 = vmatmul.mubr.msk.f32.gmra.mrb[32].mxu0 %vm409_vm0, %v1350_v2  ;;  %v2617_v2 = vld [vmem:[#allocation2 + $0x14] sm:$0xff] }
 0x191   : > { %10956 = vmatprep.mubr.msk.f32.mxu0 %vm409_vm0, %v1783_v15  ;;  %v13702_v15 = vld [vmem:[#allocation2 + $0x3c] sm:$0xff] }
 0x194   : > { %10957 = vmatmul.mubr.msk.f32.gmra.mrb[34].mxu0 %vm409_vm0, %v1784_v16  ;;  %v13704_v16 = vld [vmem:[#allocation2 + $0x44] sm:$0xff] }
 0x195   : > { %10975 = vmatprep.mubr.msk.f32.mxu0 %vm409_vm0, %v8956_v17 }
 0x198   : > { %10976 = vmatmul.mubr.msk.f32.vlgmr.msra.gmra.mrb[0].mxu0 %vm409_vm0, %v8957_v20  ;;  %v13710_v20 = vld [vmem:[#allocation2 + $0x4c] sm:$0xff] }
 0x199   : > { %12022 = vmatpush3.bf16.msra.mxu0 %v12019_v14  ;;  %10978 = vmatprep.mubr.msk.f32.mxu0 %vm409_vm0, %v8958_v21  ;;  %v3095_v14 = vld [vmem:[#allocation6 + $0x1b8] sm:$0xff]  ;;  %v13714_v21 = vpack.c.bf16 %v3523_v19, %v3522_v18 }
 0x19a   : > { %12024 = vmatprep.subr.bf16.mxu0 %v12023_v22  ;;  %v12047_v17 = vpack.c.bf16 %v3095_v14, %v3094_v13  ;;  %v3527_v13 = vld [vmem:[#allocation6 + $0x1e8] sm:$0xff]  ;;  %v3529_v18 = vld [vmem:[#allocation6 + $0x1f8] sm:$0xff] }
 0x19b   : > { %v13950_v14 = vld [vmem:[%s15293_s1 + $0x98] sm:$0xff]  ;;  %v13967_v19 = vld [vmem:[%s15293_s1 + $0xa8] sm:$0xff] }
 0x19c   : > { %10979 = vmatmul.mubr.msk.f32.gmra.mrb[2].mxu0 %vm409_vm0, %v8959_v25  ;;  %v13731_v25 = vld [vmem:[#allocation2 + $0x74] sm:$0xff] }
 0x19d   : > { %10981 = vmatprep.mubr.msk.f32.mxu0 %vm409_vm0, %v8960_v26  ;;  %12026 = vmatpush3.bf16.msra.mxu0 %v12023_v22  ;;  %v13720_v22 = vld [vmem:[#allocation2 + $0x5c] sm:$0xff] }
 0x19e   : > { %12028 = vmatprep.subr.bf16.mxu0 %v12027_v27  ;;  %v13737_v26 = vld [vmem:[#allocation2 + $0x7c] sm:$0xff] }
 0x1a0   : > { %10982 = vmatmul.mubr.msk.f32.gmra.mrb[4].mxu0 %vm409_vm0, %v8961_v30  ;;  %v13753_v30 = vld [vmem:[#allocation2 + $0x9c] sm:$0xff] }
 0x1a1   : > { %10984 = vmatprep.mubr.msk.f32.mxu0 %vm409_vm0, %v8962_v31  ;;  %12030 = vmatpush3.bf16.msra.mxu0 %v12027_v27  ;;  %v13739_v27 = vld [vmem:[#allocation2 + $0x84] sm:$0xff] }
 0x1a2   : > { %12032 = vmatprep.subr.bf16.mxu0 %v12031_v32  ;;  %v13755_v31 = vld [vmem:[#allocation2 + $0xa4] sm:$0xff] }
 0x1a4   : > { %10985 = vmatmul.mubr.msk.f32.gmra.mrb[6].mxu0 %vm409_vm0, %v8963_v35  ;;  %v13768_v35 = vld [vmem:[#allocation2 + $0xb4] sm:$0xff] }
 0x1a5   : > { %10987 = vmatprep.mubr.msk.f32.mxu0 %vm409_vm0, %v8964_v36  ;;  %12034 = vmatpush3.bf16.msra.mxu0 %v12031_v32  ;;  %v13762_v32 = vld [vmem:[%s15293_s1] sm:$0xff]  ;;  %v13776_v36 = vld [vmem:[%s15293_s1 + $0x10] sm:$0xff] }
 0x1a6   : > { %12036 = vmatprep.subr.bf16.mxu0 %v13651_v37  ;;  %4470 = vperm.xlu0 %12868, %v13762_v32  }
 0x1a7   : > { %4480 = vperm.xlu1 %12869, %v13776_v36  }
 0x1a8   : > { %10988 = vmatmul.mubr.msk.f32.gmra.mrb[8].mxu0 %vm409_vm0, %v8965_v38  ;;  %v13785_v38 = vld [vmem:[#allocation2 + $0xbc] sm:$0xff] }
 0x1a9   : > { %10990 = vmatprep.mubr.msk.f32.mxu0 %vm409_vm0, %v8966_v39  ;;  %v13788_v39 = vld [vmem:[#allocation2 + $0xc4] sm:$0xff] }
 0x1ac   : > { %10991 = vmatmul.mubr.msk.f32.gmra.mrb[10].mxu0 %vm409_vm0, %v8967_v40  ;;  %v13796_v40 = vld [vmem:[%s15293_s1 + $0x18] sm:$0xff] }
 0x1ad   : > { %10993 = vmatprep.mubr.msk.f32.mxu0 %vm409_vm0, %v8968_v41  ;;  %v13801_v41 = vld [vmem:[%s15293_s1 + $0x20] sm:$0xff]  ;;  %4485 = vperm.xlu1 %12869, %v13796_v40  }
 0x1b0   : > { %10994 = vmatmul.mubr.msk.f32.gmra.mrb[12].mxu0 %vm409_vm0, %v8969_v42  ;;  %v13805_v42 = vld [vmem:[#allocation2 + $0xcc] sm:$0xff] }
 0x1b1   : > { %10996 = vmatprep.mubr.msk.f32.mxu0 %vm409_vm0, %v8970_v43  ;;  %v13808_v43 = vld [vmem:[#allocation2 + $0xd4] sm:$0xff] }
 0x1b4   : > { %10997 = vmatmul.mubr.msk.f32.gmra.mrb[14].mxu0 %vm409_vm0, %v8971_v44  ;;  %v13816_v44 = vld [vmem:[%s15293_s1 + $0x28] sm:$0xff] }
 0x1b5   : > { %10999 = vmatprep.mubr.msk.f32.mxu0 %vm409_vm0, %v8972_v45  ;;  %v13821_v45 = vld [vmem:[%s15293_s1 + $0x30] sm:$0xff]  ;;  %4495 = vperm.xlu1 %12869, %v13816_v44  }
 0x1b8   : > { %11000 = vmatmul.mubr.msk.f32.gmra.mrb[16].mxu0 %vm409_vm0, %v8973_v46  ;;  %v13825_v46 = vld [vmem:[#allocation2 + $0xdc] sm:$0xff] }
 0x1b9   : > { %11002 = vmatprep.mubr.msk.f32.mxu0 %vm409_vm0, %v8974_v47  ;;  %v13828_v47 = vld [vmem:[#allocation2 + $0xe4] sm:$0xff] }
 0x1bc   : > { %11003 = vmatmul.mubr.msk.f32.gmra.mrb[18].mxu0 %vm409_vm0, %v8975_v48  ;;  %v13836_v48 = vld [vmem:[%s15293_s1 + $0x38] sm:$0xff] }
 0x1bd   : > { %11005 = vmatprep.mubr.msk.f32.mxu0 %vm409_vm0, %v8976_v49  ;;  %v13841_v49 = vld [vmem:[%s15293_s1 + $0x40] sm:$0xff]  ;;  %4505 = vperm.xlu1 %12869, %v13836_v48  }
 0x1c0   : > { %11006 = vmatmul.mubr.msk.f32.gmra.mrb[20].mxu0 %vm409_vm0, %v8977_v50  ;;  %v13845_v50 = vld [vmem:[#allocation2 + $0xec] sm:$0xff] }
 0x1c1   : > { %11008 = vmatprep.mubr.msk.f32.mxu0 %vm409_vm0, %v8978_v51  ;;  %v13848_v51 = vld [vmem:[#allocation2 + $0xf4] sm:$0xff] }
 0x1c4   : > { %11009 = vmatmul.mubr.msk.f32.gmra.mrb[22].mxu0 %vm409_vm0, %v8979_v52  ;;  %v13856_v52 = vld [vmem:[%s15293_s1 + $0x48] sm:$0xff] }
 0x1c5   : > { %11011 = vmatprep.mubr.msk.f32.mxu0 %vm409_vm0, %v8980_v53  ;;  %v13860_v53 = vld [vmem:[#allocation2 + $0xfc] sm:$0xff]  ;;  %4515 = vperm.xlu1 %12869, %v13856_v52  }
 0x1c8   : > { %11012 = vmatmul.mubr.msk.f32.gmra.mrb[24].mxu0 %vm409_vm0, %v8981_v54  ;;  %v13866_v54 = vld [vmem:[%s15293_s1 + $0x50] sm:$0xff] }
 0x1c9   : > { %11014 = vmatprep.mubr.msk.f32.mxu0 %vm409_vm0, %v8982_v55  ;;  %v13868_v55 = vld [vmem:[#allocation2 + $0x104] sm:$0xff] }
 0x1cc   : > { %11015 = vmatmul.mubr.msk.f32.gmra.mrb[26].mxu0 %vm409_vm0, %v8983_v56  ;;  %v13876_v56 = vld [vmem:[%s15293_s1 + $0x58] sm:$0xff] }
 0x1cd   : > { %11017 = vmatprep.mubr.msk.f32.mxu0 %vm409_vm0, %v8984_v57  ;;  %v13881_v57 = vld [vmem:[%s15293_s1 + $0x60] sm:$0xff]  ;;  %4525 = vperm.xlu1 %12869, %v13876_v56  }
 0x1d0   : > { %11018 = vmatmul.mubr.msk.f32.gmra.mrb[28].mxu0 %vm409_vm0, %v8985_v58  ;;  %v13885_v58 = vld [vmem:[#allocation2 + $0x10c] sm:$0xff] }
 0x1d1   : > { %11020 = vmatprep.mubr.msk.f32.mxu0 %vm409_vm0, %v8986_v59  ;;  %v13888_v59 = vld [vmem:[#allocation2 + $0x114] sm:$0xff] }
 0x1d4   : > { %11021 = vmatmul.mubr.msk.f32.gmra.mrb[30].mxu0 %vm409_vm0, %v8987_v60  ;;  %v13896_v60 = vld [vmem:[%s15293_s1 + $0x68] sm:$0xff] }
 0x1d5   : > { %11023 = vmatprep.mubr.msk.f32.mxu0 %vm409_vm0, %v8988_v61  ;;  %v13901_v61 = vld [vmem:[%s15293_s1 + $0x70] sm:$0xff]  ;;  %4535 = vperm.xlu1 %12869, %v13896_v60  }
 0x1d8   : > { %11024 = vmatmul.mubr.msk.f32.gmra.mrb[32].mxu0 %vm409_vm0, %v8989_v62  ;;  %v13905_v62 = vld [vmem:[#allocation2 + $0x11c] sm:$0xff] }
 0x1d9   : > { %11026 = vmatprep.mubr.msk.f32.mxu0 %vm409_vm0, %v8990_v63  ;;  %v13908_v63 = vld [vmem:[#allocation2 + $0x124] sm:$0xff] }
 0x1dc   : > { %11027 = vmatmul.mubr.msk.f32.gmra.mrb[34].mxu0 %vm409_vm0, %v8991_v1  ;;  %v13916_v1 = vld [vmem:[%s15293_s1 + $0x78] sm:$0xff] }
 0x1dd   : > { %11045 = vmatprep.mubr.msk.f32.mxu0 %vm409_vm0, %v2617_v2  ;;  %v13921_v2 = vld [vmem:[%s15293_s1 + $0x80] sm:$0xff]  ;;  %4545 = vperm.xlu1 %12869, %v13916_v1  }
 0x1e0   : > { %11046 = vmatmul.mubr.msk.f32.vlgmr.msra.gmra.mrb[0].mxu0 %vm409_vm0, %v2618_v5  ;;  %v3525_v5 = vld [vmem:[#allocation6 + $0x1d8] sm:$0xff] }
 0x1e1   : > { %12038 = vmatpush3.bf16.msra.mxu0 %v13651_v37  ;;  %11048 = vmatprep.mubr.msk.f32.mxu0 %vm409_vm0, %v13684_v6  ;;  %v13781_v37 = vld [vmem:[%s15293_s1 + $0x8] sm:$0xff]  ;;  %v12055_v9 = vpack.c.bf16 %v3525_v5, %v3524_v4  ;;  %v13983_v4 = vld [vmem:[%s15293_s1 + $0xb8] sm:$0xff] }
 0x1e2   : > { %12040 = vmatprep.subr.bf16.mxu0 %v12039_v7  ;;  %4475 = vperm.xlu0 %12868, %v13781_v37  }
 0x1e4   : > { %11049 = vmatmul.mubr.msk.f32.gmra.mrb[2].mxu0 %vm409_vm0, %v13690_v10 }
 0x1e5   : > { %11051 = vmatprep.mubr.msk.f32.mxu0 %vm409_vm0, %v13692_v11  ;;  %12042 = vmatpush3.bf16.msra.mxu0 %v12039_v7  ;;  %v13934_v7 = vld [vmem:[%s15293_s1 + $0x88] sm:$0xff] }
 0x1e6   : > { %12044 = vmatprep.subr.bf16.mxu0 %v12043_v12  ;;  %4490 = vperm.xlu0 %12868, %v13801_v41  }
 0x1e7   : > { %4555 = vperm.xlu1 %12869, %v13934_v7  }
 0x1e8   : > { %11052 = vmatmul.mubr.msk.f32.gmra.mrb[4].mxu0 %vm409_vm0, %v13702_v15 }
 0x1e9   : > { %11054 = vmatprep.mubr.msk.f32.mxu0 %vm409_vm0, %v13704_v16  ;;  %12046 = vmatpush3.bf16.msra.mxu0 %v12043_v12  ;;  %v3526_v12 = vld [vmem:[#allocation6 + $0x1e0] sm:$0xff] }
 0x1ea   : > { %12048 = vmatprep.subr.bf16.mxu0 %v12047_v17  ;;  %4500 = vperm.xlu0 %12868, %v13821_v45  }
 0x1eb   : > { %4565 = vperm.xlu1 %12869, %v13950_v14  }
 0x1ec   : > { %11055 = vmatmul.mubr.msk.f32.gmra.mrb[6].mxu0 %vm409_vm0, %v13710_v20 }
 0x1ed   : > { %11057 = vmatprep.mubr.msk.f32.mxu0 %vm409_vm0, %v13712_v0  ;;  %12050 = vmatpush3.bf16.msra.mxu0 %v12047_v17  ;;  %v12059_v17 = vpack.c.bf16 %v3527_v13, %v3526_v12  ;;  %v3509_v12 = vld [vmem:[#allocation2 + $0xe5] sm:$0xff]  ;;  %v3510_v13 = vld [vmem:[#allocation2 + $0xed] sm:$0xff] }
 0x1ee   : > { %12052 = vmatprep.subr.bf16.mxu0 %v13714_v21  ;;  %4510 = vperm.xlu0 %12868, %v13841_v49  }
 0x1ef   : > { %4575 = vperm.xlu1 %12869, %v13967_v19  }
 0x1f0   : > { %11058 = vmatmul.mubr.msk.f32.gmra.mrb[8].mxu0 %vm409_vm0, %v13720_v22 }
 0x1f1   : > { %11060 = vmatprep.mubr.msk.f32.mxu0 %vm409_vm0, %v13722_v23 }
 0x1f2   : > { %4520 = vperm.xlu0 %12868, %v13866_v54  }
 0x1f3   : > { %4585 = vperm.xlu1 %12869, %v13983_v4  }
 0x1f4   : > { %11061 = vmatmul.mubr.msk.f32.gmra.mrb[10].mxu0 %vm409_vm0, %v13729_v24 }
 0x1f5   : > { %11063 = vmatprep.mubr.msk.f32.mxu0 %vm409_vm0, %v13731_v25 }
 0x1f6   : > { %4530 = vperm.xlu0 %12868, %v13881_v57  }
 0x1f8   : > { %11064 = vmatmul.mubr.msk.f32.gmra.mrb[12].mxu0 %vm409_vm0, %v13737_v26 }
 0x1f9   : > { %11066 = vmatprep.mubr.msk.f32.mxu0 %vm409_vm0, %v13739_v27 }
 0x1fa   : > { %4540 = vperm.xlu0 %12868, %v13901_v61  }
 0x1fc   : > { %11067 = vmatmul.mubr.msk.f32.gmra.mrb[14].mxu0 %vm409_vm0, %v13745_v28 }
 0x1fd   : > { %11069 = vmatprep.mubr.msk.f32.mxu0 %vm409_vm0, %v13747_v29 }
 0x1fe   : > { %4550 = vperm.xlu0 %12868, %v13921_v2  }
 0x200   : > { %11070 = vmatmul.mubr.msk.f32.gmra.mrb[16].mxu0 %vm409_vm0, %v13753_v30 }
 0x201   : > { %11072 = vmatprep.mubr.msk.f32.mxu0 %vm409_vm0, %v13755_v31 }
 0x202   : > { %4560 = vperm.xlu0 %12868, %v13942_v8  }
 0x204   : > { %11073 = vmatmul.mubr.msk.f32.gmra.mrb[18].mxu0 %vm409_vm0, %v13766_v33 }
 0x205   : > { %11075 = vmatprep.mubr.msk.f32.mxu0 %vm409_vm0, %v13768_v35 }
 0x208   : > { %11076 = vmatmul.mubr.msk.f32.gmra.mrb[20].mxu0 %vm409_vm0, %v13785_v38 }
 0x209   : > { %11078 = vmatprep.mubr.msk.f32.mxu0 %vm409_vm0, %v13788_v39 }
 0x20c   : > { %11079 = vmatmul.mubr.msk.f32.gmra.mrb[22].mxu0 %vm409_vm0, %v13805_v42 }
 0x20d   : > { %11081 = vmatprep.mubr.msk.f32.mxu0 %vm409_vm0, %v13808_v43 }
 0x210   : > { %11082 = vmatmul.mubr.msk.f32.gmra.mrb[24].mxu0 %vm409_vm0, %v13825_v46 }
 0x211   : > { %11084 = vmatprep.mubr.msk.f32.mxu0 %vm409_vm0, %v13828_v47 }
 0x214   : > { %11085 = vmatmul.mubr.msk.f32.gmra.mrb[26].mxu0 %vm409_vm0, %v13845_v50 }
 0x215   : > { %11087 = vmatprep.mubr.msk.f32.mxu0 %vm409_vm0, %v13848_v51 }
 0x218   : > { %11088 = vmatmul.mubr.msk.f32.gmra.mrb[28].mxu0 %vm409_vm0, %v13860_v53 }
 0x219   : > { %11090 = vmatprep.mubr.msk.f32.mxu0 %vm409_vm0, %v13868_v55 }
 0x21c   : > { %11091 = vmatmul.mubr.msk.f32.gmra.mrb[30].mxu0 %vm409_vm0, %v13885_v58 }
 0x21d   : > { %11093 = vmatprep.mubr.msk.f32.mxu0 %vm409_vm0, %v13888_v59 }
 0x220   : > { %11094 = vmatmul.mubr.msk.f32.gmra.mrb[32].mxu0 %vm409_vm0, %v13905_v62 }
 0x221   : > { %11096 = vmatprep.mubr.msk.f32.mxu0 %vm409_vm0, %v13908_v63 }
 0x224   : > { %11097 = vmatmul.mubr.msk.f32.gmra.mrb[34].mxu0 %vm409_vm0, %v13925_v3 }
 0x225   : > { %11115 = vmatprep.mubr.msk.f32.mxu0 %vm409_vm0, %v13684_v6  ;;  %v13955_v6 = vld [vmem:[%s15293_s1 + $0xa0] sm:$0xff] }
 0x226   : > { %4570 = vperm.xlu0 %12868, %v13955_v6  }
 0x228   : > { %11116 = vmatmul.mubr.msk.f32.vlgmr.msra.gmra.mrb[0].mxu0 %vm409_vm0, %v13690_v10  ;;  %v3528_v10 = vld [vmem:[#allocation6 + $0x1f0] sm:$0xff] }
 0x229   : > { %12054 = vmatpush3.bf16.msra.mxu0 %v13714_v21  ;;  %11118 = vmatprep.mubr.msk.f32.mxu0 %vm409_vm0, %v13692_v11  ;;  %v13972_v11 = vld [vmem:[%s15293_s1 + $0xb0] sm:$0xff]  ;;  %v12063_v21 = vpack.c.bf16 %v3529_v18, %v3528_v10 }
 0x22a   : > { %12056 = vmatprep.subr.bf16.mxu0 %v12055_v9  ;;  %4580 = vperm.xlu0 %12868, %v13972_v11   ;;  %v3514_v10 = vld [vmem:[#allocation2 + $0x10d] sm:$0xff]  ;;  %v3515_v18 = vld [vmem:[#allocation2 + $0x115] sm:$0xff] }
 0x22c   : > { %11119 = vmatmul.mubr.msk.f32.gmra.mrb[2].mxu0 %vm409_vm0, %v13702_v15  ;;  %v3957_v15 = vld [vmem:[#allocation6 + $0x208] sm:$0xff] }
 0x22d   : > { %11121 = vmatprep.mubr.msk.f32.mxu0 %vm409_vm0, %v13704_v16  ;;  %12058 = vmatpush3.bf16.msra.mxu0 %v12055_v9  ;;  %v13988_v16 = vld [vmem:[%s15293_s1 + $0xc0] sm:$0xff]  ;;  %v13992_v5 = vpack.c.bf16 %v3957_v15, %v3956_v34  ;;  %v3519_v34 = vld [vmem:[#allocation2 + $0x135] sm:$0xff] }
 0x22e   : > { %12060 = vmatprep.subr.bf16.mxu0 %v12059_v17  ;;  %4590 = vperm.xlu0 %12868, %v13988_v16   ;;  %v14023_v9 = vld [vmem:[%s15293_s1 + $0xe0] sm:$0xff] }
 0x22f   : > { %v3520_v15 = vld [vmem:[#allocation2 + $0x13d] sm:$0xff] }
 0x230   : > { %11122 = vmatmul.mubr.msk.f32.gmra.mrb[4].mxu0 %vm409_vm0, %v13710_v20  ;;  %v14001_v20 = vld [vmem:[%s15293_s1 + $0xc8] sm:$0xff] }
 0x231   : > { %11124 = vmatprep.mubr.msk.f32.mxu0 %vm409_vm0, %v13712_v0  ;;  %12062 = vmatpush3.bf16.msra.mxu0 %v12059_v17  ;;  %v14006_v0 = vld [vmem:[%s15293_s1 + $0xd0] sm:$0xff]  ;;  %v3513_v17 = vld [vmem:[#allocation2 + $0x105] sm:$0xff] }
 0x232   : > { %12064 = vmatprep.subr.bf16.mxu0 %v12063_v21  ;;  %4595 = vperm.xlu1 %12869, %v14001_v20  }
 0x233   : > { %4600 = vperm.xlu0 %12868, %v14006_v0  }
 0x234   : > { %11125 = vmatmul.mubr.msk.f32.gmra.mrb[6].mxu0 %vm409_vm0, %v13720_v22  ;;  %v14018_v22 = vld [vmem:[%s15293_s1 + $0xd8] sm:$0xff] }
 0x235   : > { %11127 = vmatprep.mubr.msk.f32.mxu0 %vm409_vm0, %v13722_v23  ;;  %12066 = vmatpush3.bf16.msra.mxu0 %v12063_v21  ;;  %v14034_v23 = vld [vmem:[%s15293_s1 + $0xe8] sm:$0xff] }
 0x236   : > { %12068 = vmatprep.subr.bf16.mxu0 %v13992_v5  ;;  %4605 = vperm.xlu1 %12869, %v14018_v22   ;;  %v3518_v21 = vld [vmem:[#allocation2 + $0x12d] sm:$0xff] }
 0x237   : > { %4610 = vperm.xlu0 %12868, %v14023_v9  }
 0x238   : > { %11128 = vmatmul.mubr.msk.f32.gmra.mrb[8].mxu0 %vm409_vm0, %v13729_v24  ;;  %v14039_v24 = vld [vmem:[%s15293_s1 + $0xf0] sm:$0xff] }
 0x239   : > { %11130 = vmatprep.mubr.msk.f32.mxu0 %vm409_vm0, %v13731_v25  ;;  %v14050_v25 = vld [vmem:[%s15293_s1 + $0xf8] sm:$0xff] }
 0x23a   : > { %4615 = vperm.xlu1 %12869, %v14034_v23  }
 0x23b   : > { %4620 = vperm.xlu0 %12868, %v14039_v24  }
 0x23c   : > { %11131 = vmatmul.mubr.msk.f32.gmra.mrb[10].mxu0 %vm409_vm0, %v13737_v26  ;;  %v14055_v26 = vld [vmem:[%s15293_s1 + $0x100] sm:$0xff] }
 0x23d   : > { %11133 = vmatprep.mubr.msk.f32.mxu0 %vm409_vm0, %v13739_v27  ;;  %v14066_v27 = vld [vmem:[%s15293_s1 + $0x108] sm:$0xff] }
 0x23e   : > { %4625 = vperm.xlu1 %12869, %v14050_v25  }
 0x23f   : > { %4630 = vperm.xlu0 %12868, %v14055_v26  }
 0x240   : > { %11134 = vmatmul.mubr.msk.f32.gmra.mrb[12].mxu0 %vm409_vm0, %v13745_v28  ;;  %v14071_v28 = vld [vmem:[%s15293_s1 + $0x110] sm:$0xff] }
 0x241   : > { %11136 = vmatprep.mubr.msk.f32.mxu0 %vm409_vm0, %v13747_v29  ;;  %v14082_v29 = vld [vmem:[%s15293_s1 + $0x118] sm:$0xff] }
 0x242   : > { %4635 = vperm.xlu1 %12869, %v14066_v27  }
 0x243   : > { %4640 = vperm.xlu0 %12868, %v14071_v28  }
 0x244   : > { %11137 = vmatmul.mubr.msk.f32.gmra.mrb[14].mxu0 %vm409_vm0, %v13753_v30  ;;  %v3085_v30 = vld [vmem:[#allocation2 + $0x134] sm:$0xff] }
 0x245   : > { %11139 = vmatprep.mubr.msk.f32.mxu0 %vm409_vm0, %v13755_v31  ;;  %v3086_v31 = vld [vmem:[#allocation2 + $0x13c] sm:$0xff] }
 0x246   : > { %4645 = vperm.xlu1 %12869, %v14082_v29  }
 0x247   : > { %8634 = vperm.xlu0 %12868, %v13762_v32   ;;  %v3485_v32 = vld [vmem:[#allocation2 + $0x25] sm:$0xff] }
 0x248   : > { %11140 = vmatmul.mubr.msk.f32.gmra.mrb[16].mxu0 %vm409_vm0, %v13766_v33  ;;  %v3958_v33 = vld [vmem:[#allocation6 + $0x210] sm:$0xff] }
 0x249   : > { %11142 = vmatprep.mubr.msk.f32.mxu0 %vm409_vm0, %v13768_v35  ;;  %v3959_v35 = vld [vmem:[#allocation6 + $0x218] sm:$0xff] }
 0x24a   : > { %8639 = vperm.xlu1 %12869, %v13781_v37   ;;  %v3487_v37 = vld [vmem:[#allocation2 + $0x35] sm:$0xff] }
 0x24b   : > { %8644 = vperm.xlu0 %12868, %v13776_v36   ;;  %v3486_v36 = vld [vmem:[#allocation2 + $0x2d] sm:$0xff] }
 0x24c   : > { %11143 = vmatmul.mubr.msk.f32.gmra.mrb[18].mxu0 %vm409_vm0, %v13785_v38  ;;  %v12071_v38 = vpack.c.bf16 %v3959_v35, %v3958_v33  ;;  %v3936_v33 = vld [vmem:[#allocation2 + $0xae] sm:$0xff]  ;;  %v3937_v35 = vld [vmem:[#allocation2 + $0xb6] sm:$0xff] }
 0x24d   : > { %11145 = vmatprep.mubr.msk.f32.mxu0 %vm409_vm0, %v13788_v39  ;;  %v3960_v39 = vld [vmem:[#allocation6 + $0x220] sm:$0xff] }
 0x24e   : > { %8649 = vperm.xlu1 %12869, %v13796_v40   ;;  %v3961_v40 = vld [vmem:[#allocation6 + $0x228] sm:$0xff] }
 0x24f   : > { %8654 = vperm.xlu0 %12868, %v13801_v41   ;;  %v3488_v41 = vld [vmem:[#allocation2 + $0x3d] sm:$0xff] }
 0x250   : > { %11146 = vmatmul.mubr.msk.f32.gmra.mrb[20].mxu0 %vm409_vm0, %v13805_v42  ;;  %v3489_v42 = vld [vmem:[#allocation2 + $0x45] sm:$0xff] }
 0x251   : > { %11148 = vmatprep.mubr.msk.f32.mxu0 %vm409_vm0, %v13808_v43  ;;  %v12075_v43 = vpack.c.bf16 %v3961_v40, %v3960_v39  ;;  %v3941_v39 = vld [vmem:[#allocation2 + $0xd6] sm:$0xff]  ;;  %v3942_v40 = vld [vmem:[#allocation2 + $0xde] sm:$0xff] }
 0x252   : > { %8659 = vperm.xlu1 %12869, %v13816_v44   ;;  %v3962_v44 = vld [vmem:[#allocation6 + $0x230] sm:$0xff] }
 0x253   : > { %8664 = vperm.xlu0 %12868, %v13821_v45   ;;  %v3963_v45 = vld [vmem:[#allocation6 + $0x238] sm:$0xff] }
 0x254   : > { %11149 = vmatmul.mubr.msk.f32.gmra.mrb[22].mxu0 %vm409_vm0, %v13825_v46  ;;  %v3490_v46 = vld [vmem:[#allocation2 + $0x4d] sm:$0xff] }
 0x255   : > { %11151 = vmatprep.mubr.msk.f32.mxu0 %vm409_vm0, %v13828_v47  ;;  %v3491_v47 = vld [vmem:[#allocation2 + $0x55] sm:$0xff] }
 0x256   : > { %8669 = vperm.xlu1 %12869, %v13836_v48   ;;  %v12079_v48 = vpack.c.bf16 %v3963_v45, %v3962_v44  ;;  %v3946_v44 = vld [vmem:[#allocation2 + $0xfe] sm:$0xff]  ;;  %v3947_v45 = vld [vmem:[#allocation2 + $0x106] sm:$0xff] }
 0x257   : > { %8674 = vperm.xlu0 %12868, %v13841_v49   ;;  %v3492_v49 = vld [vmem:[#allocation2 + $0x5d] sm:$0xff] }
 0x258   : > { %11152 = vmatmul.mubr.msk.f32.gmra.mrb[24].mxu0 %vm409_vm0, %v13845_v50  ;;  %v3493_v50 = vld [vmem:[#allocation2 + $0x65] sm:$0xff] }
 0x259   : > { %11154 = vmatprep.mubr.msk.f32.mxu0 %vm409_vm0, %v13848_v51  ;;  %v3494_v51 = vld [vmem:[#allocation2 + $0x6d] sm:$0xff] }
 0x25a   : > { %8679 = vperm.xlu1 %12869, %v13856_v52   ;;  %v3495_v52 = vld [vmem:[#allocation2 + $0x75] sm:$0xff] }
 0x25b   : > { %8684 = vperm.xlu0 %12868, %v13866_v54   ;;  %v3497_v54 = vld [vmem:[#allocation2 + $0x85] sm:$0xff] }
 0x25c   : > { %11155 = vmatmul.mubr.msk.f32.gmra.mrb[26].mxu0 %vm409_vm0, %v13860_v53  ;;  %v3496_v53 = vld [vmem:[#allocation2 + $0x7d] sm:$0xff] }
 0x25d   : > { %11157 = vmatprep.mubr.msk.f32.mxu0 %vm409_vm0, %v13868_v55  ;;  %v3498_v55 = vld [vmem:[#allocation2 + $0x8d] sm:$0xff] }
 0x25e   : > { %8689 = vperm.xlu1 %12869, %v13876_v56   ;;  %v3499_v56 = vld [vmem:[#allocation2 + $0x95] sm:$0xff] }
 0x25f   : > { %8694 = vperm.xlu0 %12868, %v13881_v57   ;;  %v4801_v57 = vld [vmem:[#allocation8 + $0x40] sm:$0xff] }
 0x260   : > { %11158 = vmatmul.mubr.msk.f32.gmra.mrb[28].mxu0 %vm409_vm0, %v13885_v58  ;;  %v4802_v58 = vld [vmem:[#allocation8 + $0x48] sm:$0xff] }
 0x261   : > { %11160 = vmatprep.mubr.msk.f32.mxu0 %vm409_vm0, %v13888_v59  ;;  %v12083_v59 = vpack.c.bf16 %v4802_v58, %v4801_v57  ;;  %v4806_v57 = vld [vmem:[#allocation8 + $0x68] sm:$0xff] }
 0x262   : > { %8699 = vperm.xlu1 %12869, %v13896_v60   ;;  %v3500_v60 = vld [vmem:[#allocation2 + $0x9d] sm:$0xff] }
 0x263   : > { %8704 = vperm.xlu0 %12868, %v13901_v61   ;;  %12084 = vmatprep.subr.bf16.mxu1 %v12083_v59  ;;  %v3501_v61 = vld [vmem:[#allocation2 + $0xa5] sm:$0xff] }
 0x264   : > { %11161 = vmatmul.mubr.msk.f32.gmra.mrb[30].mxu0 %vm409_vm0, %v13905_v62  ;;  %12086 = vmatpush3.bf16.msra.mxu1 %v12083_v59  ;;  %v3502_v62 = vld [vmem:[#allocation2 + $0xad] sm:$0xff]  ;;  %v4807_v59 = vld [vmem:[#allocation8 + $0x70] sm:$0xff] }
 0x265   : > { %11163 = vmatprep.mubr.msk.f32.mxu0 %vm409_vm0, %v13908_v63  ;;  %v3503_v63 = vld [vmem:[#allocation2 + $0xb5] sm:$0xff] }
 0x266   : > { %8709 = vperm.xlu1 %12869, %v13916_v1   ;;  %v3504_v1 = vld [vmem:[#allocation2 + $0xbd] sm:$0xff] }
 0x267   : > { %8714 = vperm.xlu0 %12868, %v13921_v2   ;;  %v3505_v2 = vld [vmem:[#allocation2 + $0xc5] sm:$0xff] }
 0x268   : > { %11164 = vmatmul.mubr.msk.f32.gmra.mrb[32].mxu0 %vm409_vm0, %v13925_v3  ;;  %v3506_v3 = vld [vmem:[#allocation2 + $0xcd] sm:$0xff] }
 0x269   : > { %11166 = vmatprep.mubr.msk.f32.mxu0 %vm409_vm0, %v3085_v30  ;;  %v3933_v30 = vld [vmem:[#allocation2 + $0x96] sm:$0xff] }
 0x26a   : > { %8719 = vperm.xlu1 %12869, %v13934_v7   ;;  %v3507_v7 = vld [vmem:[#allocation2 + $0xd5] sm:$0xff] }
 0x26b   : > { %8724 = vperm.xlu0 %12868, %v13942_v8   ;;  %v3508_v8 = vld [vmem:[#allocation2 + $0xdd] sm:$0xff] }
 0x26c   : > { %11167 = vmatmul.mubr.msk.f32.gmra.mrb[34].mxu0 %vm409_vm0, %v3086_v31  ;;  %v3934_v31 = vld [vmem:[#allocation2 + $0x9e] sm:$0xff] }
 0x26d   : > { %11185 = vmatprep.mubr.msk.f32.mxu0 %vm409_vm0, %v3485_v32  ;;  %v3935_v32 = vld [vmem:[#allocation2 + $0xa6] sm:$0xff] }
 0x26e   : > { %8729 = vperm.xlu1 %12869, %v13950_v14   ;;  %v3511_v14 = vld [vmem:[#allocation2 + $0xf5] sm:$0xff] }
 0x26f   : > { %8734 = vperm.xlu0 %12868, %v13955_v6   ;;  %v3512_v6 = vld [vmem:[#allocation2 + $0xfd] sm:$0xff] }
 0x270   : > { %11186 = vmatmul.mubr.msk.f32.vlgmr.msra.gmra.mrb[0].mxu0 %vm409_vm0, %v3486_v36  ;;  %v3938_v36 = vld [vmem:[#allocation2 + $0xbe] sm:$0xff] }
 0x271   : > { %12070 = vmatpush3.bf16.msra.mxu0 %v13992_v5  ;;  %11188 = vmatprep.mubr.msk.f32.mxu0 %vm409_vm0, %v3487_v37  ;;  %v3921_v5 = vld [vmem:[#allocation2 + $0x36] sm:$0xff]  ;;  %v3939_v37 = vld [vmem:[#allocation2 + $0xc6] sm:$0xff] }
 0x272   : > { %12072 = vmatprep.subr.bf16.mxu0 %v12071_v38  ;;  %8739 = vperm.xlu1 %12869, %v13967_v19   ;;  %v3516_v19 = vld [vmem:[#allocation2 + $0x11d] sm:$0xff] }
 0x273   : > { %8744 = vperm.xlu0 %12868, %v13972_v11   ;;  %v3517_v11 = vld [vmem:[#allocation2 + $0x125] sm:$0xff] }
 0x274   : > { %11189 = vmatmul.mubr.msk.f32.gmra.mrb[2].mxu0 %vm409_vm0, %v3488_v41  ;;  %v3943_v41 = vld [vmem:[#allocation2 + $0xe6] sm:$0xff] }
 0x275   : > { %11191 = vmatprep.mubr.msk.f32.mxu0 %vm409_vm0, %v3489_v42  ;;  %12074 = vmatpush3.bf16.msra.mxu0 %v12071_v38  ;;  %v3940_v38 = vld [vmem:[#allocation2 + $0xce] sm:$0xff] }
 0x276   : > { %12076 = vmatprep.subr.bf16.mxu0 %v12075_v43  ;;  %8749 = vperm.xlu1 %12869, %v13983_v4   ;;  %v3919_v4 = vld [vmem:[#allocation2 + $0x26] sm:$0xff]  ;;  %v3944_v42 = vld [vmem:[#allocation2 + $0xee] sm:$0xff] }
 0x277   : > { %8754 = vperm.xlu0 %12868, %v13988_v16   ;;  %v3920_v16 = vld [vmem:[#allocation2 + $0x2e] sm:$0xff] }
 0x278   : > { %11192 = vmatmul.mubr.msk.f32.gmra.mrb[4].mxu0 %vm409_vm0, %v3490_v46  ;;  %v3948_v46 = vld [vmem:[#allocation2 + $0x10e] sm:$0xff] }
 0x279   : > { %11194 = vmatprep.mubr.msk.f32.mxu0 %vm409_vm0, %v3491_v47  ;;  %12078 = vmatpush3.bf16.msra.mxu0 %v12075_v43  ;;  %v3945_v43 = vld [vmem:[#allocation2 + $0xf6] sm:$0xff] }
 0x27a   : > { %12080 = vmatprep.subr.bf16.mxu0 %v12079_v48  ;;  %8759 = vperm.xlu1 %12869, %v14001_v20   ;;  %v3922_v20 = vld [vmem:[#allocation2 + $0x3e] sm:$0xff]  ;;  %v3949_v47 = vld [vmem:[#allocation2 + $0x116] sm:$0xff] }
 0x27b   : > { %8764 = vperm.xlu0 %12868, %v14006_v0   ;;  %v3923_v0 = vld [vmem:[#allocation2 + $0x46] sm:$0xff] }
 0x27c   : > { %11195 = vmatmul.mubr.msk.f32.gmra.mrb[6].mxu0 %vm409_vm0, %v3492_v49  ;;  %v3951_v49 = vld [vmem:[#allocation2 + $0x126] sm:$0xff] }
 0x27d   : > { %11197 = vmatprep.mubr.msk.f32.mxu0 %vm409_vm0, %v3493_v50  ;;  %12082 = vmatpush3.bf16.msra.mxu0 %v12079_v48  ;;  %v3950_v48 = vld [vmem:[#allocation2 + $0x11e] sm:$0xff]  ;;  %v3952_v50 = vld [vmem:[#allocation2 + $0x12e] sm:$0xff] }
 0x27e   : > { %8769 = vperm.xlu1 %12869, %v14018_v22   ;;  %v3924_v22 = vld [vmem:[#allocation2 + $0x4e] sm:$0xff] }
 0x27f   : > { %8774 = vperm.xlu0 %12868, %v14023_v9   ;;  %v3925_v9 = vld [vmem:[#allocation2 + $0x56] sm:$0xff] }
 0x280   : > { %11198 = vmatmul.mubr.msk.f32.gmra.mrb[8].mxu0 %vm409_vm0, %v3494_v51  ;;  %v3953_v51 = vld [vmem:[#allocation2 + $0x136] sm:$0xff] }
 0x281   : > { %11200 = vmatprep.mubr.msk.f32.mxu0 %vm409_vm0, %v3495_v52  ;;  %v3954_v52 = vld [vmem:[#allocation2 + $0x13e] sm:$0xff] }
 0x282   : > { %8779 = vperm.xlu1 %12869, %v14034_v23   ;;  %v3926_v23 = vld [vmem:[#allocation2 + $0x5e] sm:$0xff] }
 0x283   : > { %8784 = vperm.xlu0 %12868, %v14039_v24   ;;  %v3927_v24 = vld [vmem:[#allocation2 + $0x66] sm:$0xff] }
 0x284   : > { %11201 = vmatmul.mubr.msk.f32.gmra.mrb[10].mxu0 %vm409_vm0, %v3496_v53  ;;  %v4803_v53 = vld [vmem:[#allocation8 + $0x50] sm:$0xff] }
 0x285   : > { %11203 = vmatprep.mubr.msk.f32.mxu0 %vm409_vm0, %v3497_v54  ;;  %v4804_v54 = vld [vmem:[#allocation8 + $0x58] sm:$0xff] }
 0x286   : > { %8789 = vperm.xlu1 %12869, %v14050_v25   ;;  %v3928_v25 = vld [vmem:[#allocation2 + $0x6e] sm:$0xff] }
 0x287   : > { %8794 = vperm.xlu0 %12868, %v14055_v26   ;;  %v3929_v26 = vld [vmem:[#allocation2 + $0x76] sm:$0xff] }
 0x288   : > { %11204 = vmatmul.mubr.msk.f32.gmra.mrb[12].mxu0 %vm409_vm0, %v3498_v55  ;;  %v12087_v55 = vpack.c.bf16 %v4804_v54, %v4803_v53 }
 0x289   : > { %11206 = vmatprep.mubr.msk.f32.mxu0 %vm409_vm0, %v3499_v56  ;;  %v4805_v56 = vld [vmem:[#allocation8 + $0x60] sm:$0xff] }
 0x28a   : > { %8799 = vperm.xlu1 %12869, %v14066_v27   ;;  %v3930_v27 = vld [vmem:[#allocation2 + $0x7e] sm:$0xff]  ;;  %12088 = vmatprep.subr.bf16.mxu1 %v12087_v55  ;;  %v12091_v58 = vpack.c.bf16 %v4806_v57, %v4805_v56 }
 0x28b   : > { %8804 = vperm.xlu0 %12868, %v14071_v28   ;;  %v3931_v28 = vld [vmem:[#allocation2 + $0x86] sm:$0xff]  ;;  %12090 = vmatpush3.bf16.msra.mxu1 %v12087_v55 }
 0x28c   : > { %11207 = vmatmul.mubr.msk.f32.gmra.mrb[14].mxu0 %vm409_vm0, %v3500_v60  ;;  %12092 = vmatprep.subr.bf16.mxu1 %v12091_v58  ;;  %v4808_v60 = vld [vmem:[#allocation8 + $0x78] sm:$0xff] }
 0x28d   : > { %11209 = vmatprep.mubr.msk.f32.mxu0 %vm409_vm0, %v3501_v61  ;;  %v12095_v61 = vpack.c.bf16 %v4808_v60, %v4807_v59 }
 0x28e   : > { %8809 = vperm.xlu1 %12869, %v14082_v29   ;;  %v3932_v29 = vld [vmem:[#allocation2 + $0x8e] sm:$0xff] }
 0x28f   : > { %12094 = vmatpush3.bf16.msra.mxu1 %v12091_v58 }
 0x290   : > { %11210 = vmatmul.mubr.msk.f32.gmra.mrb[16].mxu0 %vm409_vm0, %v3502_v62  ;;  %12096 = vmatprep.subr.bf16.mxu1 %v12095_v61  ;;  %v4764_v62 = vld [vmem:[#allocation3 + $0x1] sm:$0xff] }
 0x291   : > { %11212 = vmatprep.mubr.msk.f32.mxu0 %vm409_vm0, %v3503_v63  ;;  %11325 = vmatprep.mubr.msk.f32.mxu1 %vm409_vm0, %v4764_v62  ;;  %v4765_v63 = vld [vmem:[#allocation3 + $0x9] sm:$0xff] }
 0x293   : > { %12098 = vmatpush3.bf16.msra.mxu1 %v12095_v61 }
 0x294   : > { %11213 = vmatmul.mubr.msk.f32.gmra.mrb[18].mxu0 %vm409_vm0, %v3504_v1  ;;  %v4756_v1 = vld [vmem:[#allocation8] sm:$0xff] }
 0x295   : > { %11215 = vmatprep.mubr.msk.f32.mxu0 %vm409_vm0, %v3505_v2  ;;  %v4757_v2 = vld [vmem:[#allocation8 + $0x8] sm:$0xff] }
 0x296   : > { %11326 = vmatmul.mubr.msk.f32.vlgmr.msra.gmra.mrb[0].mxu1 %vm409_vm0, %v4765_v63 }
 0x298   : > { %11216 = vmatmul.mubr.msk.f32.gmra.mrb[20].mxu0 %vm409_vm0, %v3506_v3  ;;  %v12099_v3 = vpack.c.bf16 %v4757_v2, %v4756_v1 }
 0x299   : > { %11218 = vmatprep.mubr.msk.f32.mxu0 %vm409_vm0, %v3507_v7  ;;  %v4758_v7 = vld [vmem:[#allocation8 + $0x10] sm:$0xff] }
 0x29a   : > { %12100 = vmatprep.subr.bf16.mxu1 %v12099_v3 }
 0x29b   : > { %12102 = vmatpush3.bf16.msra.mxu1 %v12099_v3 }
 0x29c   : > { %11219 = vmatmul.mubr.msk.f32.gmra.mrb[22].mxu0 %vm409_vm0, %v3508_v8  ;;  %v4759_v8 = vld [vmem:[#allocation8 + $0x18] sm:$0xff] }
 0x29d   : > { %11221 = vmatprep.mubr.msk.f32.mxu0 %vm409_vm0, %v3509_v12  ;;  %v12103_v12 = vpack.c.bf16 %v4759_v8, %v4758_v7 }
 0x29f   : > { %12104 = vmatprep.subr.bf16.mxu1 %v12103_v12 }
 0x2a0   : > { %11222 = vmatmul.mubr.msk.f32.gmra.mrb[24].mxu0 %vm409_vm0, %v3510_v13  ;;  %12106 = vmatpush3.bf16.msra.mxu1 %v12103_v12  ;;  %v4760_v13 = vld [vmem:[#allocation8 + $0x20] sm:$0xff] }
 0x2a1   : > { %11224 = vmatprep.mubr.msk.f32.mxu0 %vm409_vm0, %v3511_v14  ;;  %v4761_v14 = vld [vmem:[#allocation8 + $0x28] sm:$0xff] }
 0x2a4   : > { %11225 = vmatmul.mubr.msk.f32.gmra.mrb[26].mxu0 %vm409_vm0, %v3512_v6  ;;  %v12107_v6 = vpack.c.bf16 %v4761_v14, %v4760_v13 }
 0x2a5   : > { %11227 = vmatprep.mubr.msk.f32.mxu0 %vm409_vm0, %v3513_v17  ;;  %v4762_v17 = vld [vmem:[#allocation8 + $0x30] sm:$0xff] }
 0x2a6   : > { %12108 = vmatprep.subr.bf16.mxu1 %v12107_v6 }
 0x2a7   : > { %12110 = vmatpush3.bf16.msra.mxu1 %v12107_v6 }
 0x2a8   : > { %11228 = vmatmul.mubr.msk.f32.gmra.mrb[28].mxu0 %vm409_vm0, %v3514_v10  ;;  %v4763_v10 = vld [vmem:[#allocation8 + $0x38] sm:$0xff] }
 0x2a9   : > { %11230 = vmatprep.mubr.msk.f32.mxu0 %vm409_vm0, %v3515_v18  ;;  %v12111_v18 = vpack.c.bf16 %v4763_v10, %v4762_v17 }
 0x2ab   : > { %12112 = vmatprep.subr.bf16.mxu1 %v12111_v18 }
 0x2ac   : > { %11231 = vmatmul.mubr.msk.f32.gmra.mrb[30].mxu0 %vm409_vm0, %v3516_v19  ;;  %12114 = vmatpush3.bf16.msra.mxu1 %v12111_v18  ;;  %v5552_v19 = vld [vmem:[#allocation8 + $0x80] sm:$0xff] }
 0x2ad   : > { %11233 = vmatprep.mubr.msk.f32.mxu0 %vm409_vm0, %v3517_v11  ;;  %v5553_v11 = vld [vmem:[#allocation8 + $0x88] sm:$0xff] }
 0x2b0   : > { %11234 = vmatmul.mubr.msk.f32.gmra.mrb[32].mxu0 %vm409_vm0, %v3518_v21  ;;  %v14230_v21 = vpack.c.bf16 %v5553_v11, %v5552_v19 }
 0x2b1   : > { %11236 = vmatprep.mubr.msk.f32.mxu0 %vm409_vm0, %v3519_v34  ;;  %v4481_v34 = vpop.permute.xlu1 %4480 }
 0x2b2   : > { %12116 = vmatprep.subr.bf16.mxu1 %v14230_v21 }
 0x2b4   : > { %11237 = vmatmul.mubr.msk.f32.gmra.mrb[34].mxu0 %vm409_vm0, %v3520_v15  ;;  %v4471_v15 = vpop.permute.xlu0 %4470 }
 0x2b5   : > { %11255 = vmatprep.mubr.msk.f32.mxu0 %vm409_vm0, %v3919_v4  ;;  %v4486_v4 = vpop.permute.xlu1 %4485 }
 0x2b8   : > { %11256 = vmatmul.mubr.msk.f32.vlgmr.msra.gmra.mrb[0].mxu0 %vm409_vm0, %v3920_v16  ;;  %v4476_v16 = vpop.permute.xlu0 %4475 }
 0x2b9   : > { %11258 = vmatprep.mubr.msk.f32.mxu0 %vm409_vm0, %v3921_v5  ;;  %v4496_v5 = vpop.permute.xlu1 %4495 }
 0x2bc   : > { %11259 = vmatmul.mubr.msk.f32.gmra.mrb[2].mxu0 %vm409_vm0, %v3922_v20  ;;  %v4491_v20 = vpop.permute.xlu0 %4490 }
 0x2bd   : > { %11261 = vmatprep.mubr.msk.f32.mxu0 %vm409_vm0, %v3923_v0  ;;  %v4506_v0 = vpop.permute.xlu1 %4505 }
 0x2c0   : > { %11262 = vmatmul.mubr.msk.f32.gmra.mrb[4].mxu0 %vm409_vm0, %v3924_v22  ;;  %v4501_v22 = vpop.permute.xlu0 %4500 }
 0x2c1   : > { %11264 = vmatprep.mubr.msk.f32.mxu0 %vm409_vm0, %v3925_v9  ;;  %v14233_v9 = vpop.permute.xlu1 %4515 }
 0x2c4   : > { %11265 = vmatmul.mubr.msk.f32.gmra.mrb[6].mxu0 %vm409_vm0, %v3926_v23  ;;  %v14235_v23 = vpop.permute.xlu0 %4510 }
 0x2c5   : > { %11267 = vmatprep.mubr.msk.f32.mxu0 %vm409_vm0, %v3927_v24  ;;  %v14240_v24 = vld [vmem:[%s15295_s3] ss:$0 sm:$0xff] }
 0x2c8   : > { %11268 = vmatmul.mubr.msk.f32.gmra.mrb[8].mxu0 %vm409_vm0, %v3928_v25  ;;  %v14242_v25 = vpop.permute.xlu1 %4525 }
 0x2c9   : > { %11270 = vmatprep.mubr.msk.f32.mxu0 %vm409_vm0, %v3929_v26 }
 0x2cc   : > { %11271 = vmatmul.mubr.msk.f32.gmra.mrb[10].mxu0 %vm409_vm0, %v3930_v27  ;;  %v14244_v27 = vpop.permute.xlu0 %4520 }
 0x2cd   : > { %11273 = vmatprep.mubr.msk.f32.mxu0 %vm409_vm0, %v3931_v28 }
 0x2d0   : > { %11274 = vmatmul.mubr.msk.f32.gmra.mrb[12].mxu0 %vm409_vm0, %v3932_v29 }
 0x2d1   : > { %11276 = vmatprep.mubr.msk.f32.mxu0 %vm409_vm0, %v3933_v30 }
 0x2d4   : > { %11277 = vmatmul.mubr.msk.f32.gmra.mrb[14].mxu0 %vm409_vm0, %v3934_v31 }
 0x2d5   : > { %11279 = vmatprep.mubr.msk.f32.mxu0 %vm409_vm0, %v3935_v32 }
 0x2d8   : > { %11280 = vmatmul.mubr.msk.f32.gmra.mrb[16].mxu0 %vm409_vm0, %v3936_v33 }
 0x2d9   : > { %11282 = vmatprep.mubr.msk.f32.mxu0 %vm409_vm0, %v3937_v35 }
 0x2dc   : > { %11283 = vmatmul.mubr.msk.f32.gmra.mrb[18].mxu0 %vm409_vm0, %v3938_v36 }
 0x2dd   : > { %11285 = vmatprep.mubr.msk.f32.mxu0 %vm409_vm0, %v3939_v37 }
 0x2e0   : > { %11286 = vmatmul.mubr.msk.f32.gmra.mrb[20].mxu0 %vm409_vm0, %v3940_v38  ;;  %v14249_v38 = vpop.permute.xlu1 %4535 }
 0x2e1   : > { %11288 = vmatprep.mubr.msk.f32.mxu0 %vm409_vm0, %v3941_v39 }
 0x2e4   : > { %11289 = vmatmul.mubr.msk.f32.gmra.mrb[22].mxu0 %vm409_vm0, %v3942_v40 }
 0x2e5   : > { %11291 = vmatprep.mubr.msk.f32.mxu0 %vm409_vm0, %v3943_v41  ;;  %v14252_v41 = vpop.permute.xlu0 %4530 }
 0x2e8   : > { %11292 = vmatmul.mubr.msk.f32.gmra.mrb[24].mxu0 %vm409_vm0, %v3944_v42 }
 0x2e9   : > { %11294 = vmatprep.mubr.msk.f32.mxu0 %vm409_vm0, %v3945_v43  ;;  %v14262_v54 = vpop.permute.xlu0 %4540 }
 0x2ec   : > { %11295 = vmatmul.mubr.msk.f32.gmra.mrb[26].mxu0 %vm409_vm0, %v3946_v44 }
 0x2ed   : > { %11297 = vmatprep.mubr.msk.f32.mxu0 %vm409_vm0, %v3947_v45  ;;  %v14274_v14 = vpop.permute.xlu0 %4550 }
 0x2f0   : > { %11298 = vmatmul.mubr.msk.f32.gmra.mrb[28].mxu0 %vm409_vm0, %v3948_v46 }
 0x2f1   : > { %11300 = vmatprep.mubr.msk.f32.mxu0 %vm409_vm0, %v3949_v47 }
 0x2f4   : > { %11301 = vmatmul.mubr.msk.f32.gmra.mrb[30].mxu0 %vm409_vm0, %v3950_v48 }
 0x2f5   : > { %11303 = vmatprep.mubr.msk.f32.mxu0 %vm409_vm0, %v3951_v49 }
 0x2f8   : > { %11304 = vmatmul.mubr.msk.f32.gmra.mrb[32].mxu0 %vm409_vm0, %v3952_v50 }
 0x2f9   : > { %11306 = vmatprep.mubr.msk.f32.mxu0 %vm409_vm0, %v3953_v51  ;;  %v14259_v51 = vpop.permute.xlu1 %4545 }
 0x2fc   : > { %11307 = vmatmul.mubr.msk.f32.gmra.mrb[34].mxu0 %vm409_vm0, %v3954_v52 }
 0x2fd   : > { %v14271_v8 = vpop.permute.xlu1 %4555 }
 0x38b   : > { %v11257_v26 = vpop.f32.mrb[0].mxu0 }
 0x38c   : > { %v4361_v28 = vadd.f32 %v11257_v26, %v14240_v24  ;;  %v4138_v29 = vpop.f32.mrb[1].mxu0 }
 0x38d   : > { %v4360_v30 = vadd.f32 %v14240_v24, %v4138_v29 }
 0x38e   : > { %v4397_v31 = vmax.f32 %v4361_v28, 0.0  ;;  %v14289_v28 = vpop.permute.xlu0 %4560 }
 0x38f   : > { %v4396_v32 = vmax.f32 %v4360_v30, 0.0  ;;  %v11260_v33 = vpop.f32.mrb[2].mxu0 }
 0x390   : > { %v4649_v35 = vmul.f32 %v4476_v16, %v4397_v31  ;;  %v4363_v36 = vadd.f32 %v11260_v33, %v14240_v24  ;;  %v4148_v37 = vpop.f32.mrb[3].mxu0 }
 0x391   : > { %v4648_v39 = vmul.f32 %v4471_v15, %v4396_v32  ;;  %v4362_v40 = vadd.f32 %v14240_v24, %v4148_v37 }
 0x392   : > { %4685 = vst.msk [vmem:[#allocation3 + $0x1b] sm:$0xff] %vm409_vm0, %v4649_v35  ;;  %v4399_v42 = vmax.f32 %v4363_v36, 0.0 }
 0x393   : > { %4684 = vst.msk [vmem:[#allocation3 + $0x13] sm:$0xff] %vm409_vm0, %v4648_v39  ;;  %v4398_v43 = vmax.f32 %v4362_v40, 0.0  ;;  %v11263_v44 = vpop.f32.mrb[4].mxu0 }
 0x394   : > { %v4651_v45 = vmul.f32 %v4486_v4, %v4399_v42  ;;  %v4365_v46 = vadd.f32 %v11263_v44, %v14240_v24  ;;  %v4158_v47 = vpop.f32.mrb[5].mxu0 }
 0x395   : > { %v4650_v48 = vmul.f32 %v4481_v34, %v4398_v43  ;;  %v4364_v49 = vadd.f32 %v14240_v24, %v4158_v47 }
 0x396   : > { %4687 = vst.msk [vmem:[#allocation3 + $0x2b] sm:$0xff] %vm409_vm0, %v4651_v45  ;;  %v4401_v50 = vmax.f32 %v4365_v46, 0.0  ;;  %v4571_v45 = vpop.permute.xlu0 %4570 }
 0x397   : > { %4686 = vst.msk [vmem:[#allocation3 + $0x23] sm:$0xff] %vm409_vm0, %v4650_v48  ;;  %v4400_v52 = vmax.f32 %v4364_v49, 0.0  ;;  %v11266_v53 = vpop.f32.mrb[6].mxu0 }
 0x398   : > { %v4653_v55 = vmul.f32 %v4496_v5, %v4401_v50  ;;  %v4367_v56 = vadd.f32 %v11266_v53, %v14240_v24  ;;  %v4168_v57 = vpop.f32.mrb[7].mxu0 }
 0x399   : > { %v4652_v58 = vmul.f32 %v4491_v20, %v4400_v52  ;;  %v4366_v59 = vadd.f32 %v14240_v24, %v4168_v57 }
 0x39a   : > { %4689 = vst.msk [vmem:[#allocation3 + $0x3b] sm:$0xff] %vm409_vm0, %v4653_v55  ;;  %v4403_v60 = vmax.f32 %v4367_v56, 0.0  ;;  %v4766_v61 = vld [vmem:[#allocation3 + $0x11] sm:$0xff]  ;;  %v4767_v62 = vld [vmem:[#allocation3 + $0x19] sm:$0xff] }
 0x39b   : > { %4688 = vst.msk [vmem:[#allocation3 + $0x33] sm:$0xff] %vm409_vm0, %v4652_v58  ;;  %v4402_v63 = vmax.f32 %v4366_v59, 0.0  ;;  %v11269_v1 = vpop.f32.mrb[8].mxu0  ;;  %11328 = vmatprep.mubr.msk.f32.mxu1 %vm409_vm0, %v4766_v61 }
 0x39c   : > { %v4655_v2 = vmul.f32 %v4506_v0, %v4403_v60  ;;  %v4369_v3 = vadd.f32 %v11269_v1, %v14240_v24  ;;  %v4178_v7 = vpop.f32.mrb[9].mxu0  ;;  %11329 = vmatmul.mubr.msk.f32.gmra.mrb[2].mxu1 %vm409_vm0, %v4767_v62 }
 0x39d   : > { %v4654_v12 = vmul.f32 %v4501_v22, %v4402_v63  ;;  %v4368_v13 = vadd.f32 %v14240_v24, %v4178_v7  ;;  %v14285_v22 = vpop.permute.xlu1 %4565 }
 0x39e   : > { %4691 = vst.msk [vmem:[#allocation3 + $0x4b] sm:$0xff] %vm409_vm0, %v4655_v2  ;;  %v4405_v6 = vmax.f32 %v4369_v3, 0.0  ;;  %v4768_v17 = vld [vmem:[#allocation3 + $0x21] sm:$0xff]  ;;  %v4769_v10 = vld [vmem:[#allocation3 + $0x29] sm:$0xff] }
 0x39f   : > { %4690 = vst.msk [vmem:[#allocation3 + $0x43] sm:$0xff] %vm409_vm0, %v4654_v12  ;;  %v4404_v18 = vmax.f32 %v4368_v13, 0.0  ;;  %v11272_v19 = vpop.f32.mrb[10].mxu0  ;;  %11331 = vmatprep.mubr.msk.f32.mxu1 %vm409_vm0, %v4768_v17 }
 0x3a0   : > { %v4657_v11 = vmul.f32 %v14233_v9, %v4405_v6  ;;  %v4371_v34 = vadd.f32 %v11272_v19, %v14240_v24  ;;  %v4188_v15 = vpop.f32.mrb[11].mxu0  ;;  %11332 = vmatmul.mubr.msk.f32.gmra.mrb[4].mxu1 %vm409_vm0, %v4769_v10 }
 0x3a1   : > { %v4656_v4 = vmul.f32 %v14235_v23, %v4404_v18  ;;  %v4370_v16 = vadd.f32 %v14240_v24, %v4188_v15 }
 0x3a2   : > { %4693 = vst.msk [vmem:[#allocation3 + $0x5b] sm:$0xff] %vm409_vm0, %v4657_v11  ;;  %v4407_v5 = vmax.f32 %v4371_v34, 0.0  ;;  %v4770_v20 = vld [vmem:[#allocation3 + $0x31] sm:$0xff]  ;;  %v4771_v0 = vld [vmem:[#allocation3 + $0x39] sm:$0xff] }
 0x3a3   : > { %4692 = vst.msk [vmem:[#allocation3 + $0x53] sm:$0xff] %vm409_vm0, %v4656_v4  ;;  %v4406_v26 = vmax.f32 %v4370_v16, 0.0  ;;  %v11275_v9 = vpop.f32.mrb[12].mxu0  ;;  %11334 = vmatprep.mubr.msk.f32.mxu1 %vm409_vm0, %v4770_v20 }
 0x3a4   : > { %v4659_v29 = vmul.f32 %v14242_v25, %v4407_v5  ;;  %v4373_v23 = vadd.f32 %v11275_v9, %v14240_v24  ;;  %v4198_v30 = vpop.f32.mrb[13].mxu0  ;;  %11335 = vmatmul.mubr.msk.f32.gmra.mrb[6].mxu1 %vm409_vm0, %v4771_v0 }
 0x3a5   : > { %v4658_v31 = vmul.f32 %v14244_v27, %v4406_v26  ;;  %v4372_v32 = vadd.f32 %v14240_v24, %v4198_v30  ;;  %v4576_v27 = vpop.permute.xlu1 %4575 }
 0x3a6   : > { %4695 = vst.msk [vmem:[#allocation3 + $0x6b] sm:$0xff] %vm409_vm0, %v4659_v29  ;;  %v4409_v33 = vmax.f32 %v4373_v23, 0.0  ;;  %v4772_v35 = vld [vmem:[#allocation3 + $0x41] sm:$0xff]  ;;  %v4773_v36 = vld [vmem:[#allocation3 + $0x49] sm:$0xff] }
 0x3a7   : > { %4694 = vst.msk [vmem:[#allocation3 + $0x63] sm:$0xff] %vm409_vm0, %v4658_v31  ;;  %v4408_v37 = vmax.f32 %v4372_v32, 0.0  ;;  %v11278_v39 = vpop.f32.mrb[14].mxu0  ;;  %11337 = vmatprep.mubr.msk.f32.mxu1 %vm409_vm0, %v4772_v35 }
 0x3a8   : > { %v4661_v25 = vmul.f32 %v14249_v38, %v4409_v33  ;;  %v4375_v40 = vadd.f32 %v11278_v39, %v14240_v24  ;;  %v4208_v42 = vpop.f32.mrb[15].mxu0  ;;  %11338 = vmatmul.mubr.msk.f32.gmra.mrb[8].mxu1 %vm409_vm0, %v4773_v36 }
 0x3a9   : > { %v4660_v43 = vmul.f32 %v14252_v41, %v4408_v37  ;;  %v4374_v44 = vadd.f32 %v14240_v24, %v4208_v42  ;;  %v4586_v59 = vpop.permute.xlu1 %4585 }
 0x3aa   : > { %4697 = vst.msk [vmem:[#allocation3 + $0x7b] sm:$0xff] %vm409_vm0, %v4661_v25  ;;  %v4411_v46 = vmax.f32 %v4375_v40, 0.0  ;;  %v4774_v47 = vld [vmem:[#allocation3 + $0x51] sm:$0xff]  ;;  %v4775_v48 = vld [vmem:[#allocation3 + $0x59] sm:$0xff] }
 0x3ab   : > { %4696 = vst.msk [vmem:[#allocation3 + $0x73] sm:$0xff] %vm409_vm0, %v4660_v43  ;;  %v4410_v49 = vmax.f32 %v4374_v44, 0.0  ;;  %v11281_v38 = vpop.f32.mrb[16].mxu0  ;;  %11340 = vmatprep.mubr.msk.f32.mxu1 %vm409_vm0, %v4774_v47 }
 0x3ac   : > { %v4663_v50 = vmul.f32 %v14259_v51, %v4411_v46  ;;  %v4377_v52 = vadd.f32 %v11281_v38, %v14240_v24  ;;  %v4218_v53 = vpop.f32.mrb[17].mxu0  ;;  %11341 = vmatmul.mubr.msk.f32.gmra.mrb[10].mxu1 %vm409_vm0, %v4775_v48  ;;  %v4581_v51 = vpop.permute.xlu0 %4580 }
 0x3ad   : > { %v4662_v41 = vmul.f32 %v14262_v54, %v4410_v49  ;;  %v4376_v55 = vadd.f32 %v14240_v24, %v4218_v53 }
 0x3ae   : > { %4699 = vst.msk [vmem:[#allocation3 + $0x8b] sm:$0xff] %vm409_vm0, %v4663_v50  ;;  %v4413_v56 = vmax.f32 %v4377_v52, 0.0  ;;  %v4776_v57 = vld [vmem:[#allocation3 + $0x61] sm:$0xff]  ;;  %v4777_v58 = vld [vmem:[#allocation3 + $0x69] sm:$0xff] }
 0x3af   : > { %4698 = vst.msk [vmem:[#allocation3 + $0x83] sm:$0xff] %vm409_vm0, %v4662_v41  ;;  %v4412_v60 = vmax.f32 %v4376_v55, 0.0  ;;  %v11284_v61 = vpop.f32.mrb[18].mxu0  ;;  %11343 = vmatprep.mubr.msk.f32.mxu1 %vm409_vm0, %v4776_v57 }
 0x3b0   : > { %v4665_v62 = vmul.f32 %v14271_v8, %v4413_v56  ;;  %v4379_v63 = vadd.f32 %v11284_v61, %v14240_v24  ;;  %v4228_v54 = vpop.f32.mrb[19].mxu0  ;;  %11344 = vmatmul.mubr.msk.f32.gmra.mrb[12].mxu1 %vm409_vm0, %v4777_v58  ;;  %v4591_v11 = vpop.permute.xlu0 %4590 }
 0x3b1   : > { %v4664_v1 = vmul.f32 %v14274_v14, %v4412_v60  ;;  %v4378_v2 = vadd.f32 %v14240_v24, %v4228_v54  ;;  %v4596_v14 = vpop.permute.xlu1 %4595 }
 0x3b2   : > { %4701 = vst.msk [vmem:[#allocation3 + $0x9b] sm:$0xff] %vm409_vm0, %v4665_v62  ;;  %v4415_v3 = vmax.f32 %v4379_v63, 0.0  ;;  %v4778_v7 = vld [vmem:[#allocation3 + $0x71] sm:$0xff]  ;;  %v4779_v12 = vld [vmem:[#allocation3 + $0x79] sm:$0xff] }
 0x3b3   : > { %4700 = vst.msk [vmem:[#allocation3 + $0x93] sm:$0xff] %vm409_vm0, %v4664_v1  ;;  %v4414_v13 = vmax.f32 %v4378_v2, 0.0  ;;  %v11287_v6 = vpop.f32.mrb[20].mxu0  ;;  %11346 = vmatprep.mubr.msk.f32.mxu1 %vm409_vm0, %v4778_v7 }
 0x3b4   : > { %v4667_v8 = vmul.f32 %v14285_v22, %v4415_v3  ;;  %v4381_v17 = vadd.f32 %v11287_v6, %v14240_v24  ;;  %v4238_v10 = vpop.f32.mrb[21].mxu0  ;;  %11347 = vmatmul.mubr.msk.f32.gmra.mrb[14].mxu1 %vm409_vm0, %v4779_v12  ;;  %v4601_v33 = vpop.permute.xlu0 %4600 }
 0x3b5   : > { %v4666_v18 = vmul.f32 %v14289_v28, %v4414_v13  ;;  %v4380_v19 = vadd.f32 %v14240_v24, %v4238_v10  ;;  %v4606_v30 = vpop.permute.xlu1 %4605 }
 0x3b6   : > { %4703 = vst.msk [vmem:[#allocation3 + $0xab] sm:$0xff] %vm409_vm0, %v4667_v8  ;;  %v4417_v34 = vmax.f32 %v4381_v17, 0.0  ;;  %v4780_v15 = vld [vmem:[#allocation3 + $0x81] sm:$0xff]  ;;  %v4781_v4 = vld [vmem:[#allocation3 + $0x89] sm:$0xff] }
 0x3b7   : > { %4702 = vst.msk [vmem:[#allocation3 + $0xa3] sm:$0xff] %vm409_vm0, %v4666_v18  ;;  %v4416_v16 = vmax.f32 %v4380_v19, 0.0  ;;  %v11290_v5 = vpop.f32.mrb[22].mxu0  ;;  %11349 = vmatprep.mubr.msk.f32.mxu1 %vm409_vm0, %v4780_v15 }
 0x3b8   : > { %v4669_v20 = vmul.f32 %v4576_v27, %v4417_v34  ;;  %v4383_v0 = vadd.f32 %v11290_v5, %v14240_v24  ;;  %v4248_v22 = vpop.f32.mrb[23].mxu0  ;;  %11350 = vmatmul.mubr.msk.f32.gmra.mrb[16].mxu1 %vm409_vm0, %v4781_v4  ;;  %v4611_v50 = vpop.permute.xlu0 %4610 }
 0x3b9   : > { %v4668_v26 = vmul.f32 %v4571_v45, %v4416_v16  ;;  %v4382_v9 = vadd.f32 %v14240_v24, %v4248_v22  ;;  %v4616_v48 = vpop.permute.xlu1 %4615 }
 0x3ba   : > { %4705 = vst.msk [vmem:[#allocation3 + $0xbb] sm:$0xff] %vm409_vm0, %v4669_v20  ;;  %v4419_v28 = vmax.f32 %v4383_v0, 0.0  ;;  %v4782_v29 = vld [vmem:[#allocation3 + $0x91] sm:$0xff]  ;;  %v4783_v23 = vld [vmem:[#allocation3 + $0x99] sm:$0xff] }
 0x3bb   : > { %4704 = vst.msk [vmem:[#allocation3 + $0xb3] sm:$0xff] %vm409_vm0, %v4668_v26  ;;  %v4418_v31 = vmax.f32 %v4382_v9, 0.0  ;;  %v11293_v32 = vpop.f32.mrb[24].mxu0  ;;  %11352 = vmatprep.mubr.msk.f32.mxu1 %vm409_vm0, %v4782_v29 }
 0x3bc   : > { %v4671_v35 = vmul.f32 %v4586_v59, %v4419_v28  ;;  %v4385_v36 = vadd.f32 %v11293_v32, %v14240_v24  ;;  %v4258_v37 = vpop.f32.mrb[25].mxu0  ;;  %11353 = vmatmul.mubr.msk.f32.gmra.mrb[18].mxu1 %vm409_vm0, %v4783_v23  ;;  %v4621_v3 = vpop.permute.xlu0 %4620 }
 0x3bd   : > { %v4670_v39 = vmul.f32 %v4581_v51, %v4418_v31  ;;  %v4384_v25 = vadd.f32 %v14240_v24, %v4258_v37  ;;  %v4626_v54 = vpop.permute.xlu1 %4625 }
 0x3be   : > { %4707 = vst.msk [vmem:[#allocation3 + $0xcb] sm:$0xff] %vm409_vm0, %v4671_v35  ;;  %v4421_v40 = vmax.f32 %v4385_v36, 0.0  ;;  %v4784_v42 = vld [vmem:[#allocation3 + $0xa1] sm:$0xff]  ;;  %v4785_v27 = vld [vmem:[#allocation3 + $0xa9] sm:$0xff] }
 0x3bf   : > { %4706 = vst.msk [vmem:[#allocation3 + $0xc3] sm:$0xff] %vm409_vm0, %v4670_v39  ;;  %v4420_v43 = vmax.f32 %v4384_v25, 0.0  ;;  %v11296_v44 = vpop.f32.mrb[26].mxu0  ;;  %11355 = vmatprep.mubr.msk.f32.mxu1 %vm409_vm0, %v4784_v42 }
 0x3c0   : > { %v4673_v45 = vmul.f32 %v4596_v14, %v4421_v40  ;;  %v4387_v46 = vadd.f32 %v11296_v44, %v14240_v24  ;;  %v4268_v47 = vpop.f32.mrb[27].mxu0  ;;  %11356 = vmatmul.mubr.msk.f32.gmra.mrb[20].mxu1 %vm409_vm0, %v4785_v27  ;;  %v4631_v20 = vpop.permute.xlu0 %4630 }
 0x3c1   : > { %v4672_v49 = vmul.f32 %v4591_v11, %v4420_v43  ;;  %v4386_v38 = vadd.f32 %v14240_v24, %v4268_v47  ;;  %v4636_v4 = vpop.permute.xlu1 %4635  ;;  %v5555_v47 = vld [vmem:[#allocation8 + $0x98] sm:$0xff] }
 0x3c2   : > { %4709 = vst.msk [vmem:[#allocation3 + $0xdb] sm:$0xff] %vm409_vm0, %v4673_v45  ;;  %v4423_v52 = vmax.f32 %v4387_v46, 0.0  ;;  %v4786_v53 = vld [vmem:[#allocation3 + $0xb1] sm:$0xff]  ;;  %v4787_v41 = vld [vmem:[#allocation3 + $0xb9] sm:$0xff] }
 0x3c3   : > { %4708 = vst.msk [vmem:[#allocation3 + $0xd3] sm:$0xff] %vm409_vm0, %v4672_v49  ;;  %v4422_v55 = vmax.f32 %v4386_v38, 0.0  ;;  %v11299_v56 = vpop.f32.mrb[28].mxu0  ;;  %11358 = vmatprep.mubr.msk.f32.mxu1 %vm409_vm0, %v4786_v53  ;;  %v4720_v45 = vld [vmem:[#allocation3] sm:$0xff]  ;;  %v5554_v46 = vld [vmem:[#allocation8 + $0x90] sm:$0xff]  ;;  %v5556_v38 = vld [vmem:[#allocation8 + $0xa0] sm:$0xff] }
 0x3c4   : > { %v4675_v57 = vmul.f32 %v4606_v30, %v4423_v52  ;;  %v4389_v58 = vadd.f32 %v11299_v56, %v14240_v24  ;;  %v4278_v59 = vpop.f32.mrb[29].mxu0  ;;  %11359 = vmatmul.mubr.msk.f32.gmra.mrb[22].mxu1 %vm409_vm0, %v4787_v41  ;;  %v4641_v25 = vpop.permute.xlu0 %4640  ;;  %v12119_v49 = vpack.c.bf16 %v5555_v47, %v5554_v46  ;;  %v4722_v52 = vld [vmem:[#allocation3 + $0x10] sm:$0xff]  ;;  %v4723_v41 = vld [vmem:[#allocation3 + $0x18] sm:$0xff]  ;;  %v5559_v56 = vld [vmem:[#allocation8 + $0xb8] sm:$0xff] }
 0x3c5   : > { %v4674_v60 = vmul.f32 %v4601_v33, %v4422_v55  ;;  %v4388_v61 = vadd.f32 %v14240_v24, %v4278_v59  ;;  %v4646_v37 = vpop.permute.xlu1 %4645  ;;  %v5558_v55 = vld [vmem:[#allocation8 + $0xb0] sm:$0xff]  ;;  %v4725_v59 = vld [vmem:[#allocation3 + $0x28] sm:$0xff] }
 0x3c6   : > { %4711 = vst.msk [vmem:[#allocation3 + $0xeb] sm:$0xff] %vm409_vm0, %v4675_v57  ;;  %v4425_v51 = vmax.f32 %v4389_v58, 0.0  ;;  %v4788_v62 = vld [vmem:[#allocation3 + $0xc1] sm:$0xff]  ;;  %v4789_v63 = vld [vmem:[#allocation3 + $0xc9] sm:$0xff]  ;;  %v12127_v58 = vpack.c.bf16 %v5559_v56, %v5558_v55  ;;  %v14439_v46 = vld [vmem:[#allocation3 + $0x32] sm:$0xff] }
 0x3c7   : > { %4710 = vst.msk [vmem:[#allocation3 + $0xe3] sm:$0xff] %vm409_vm0, %v4674_v60  ;;  %v4424_v1 = vmax.f32 %v4388_v61, 0.0  ;;  %v11302_v2 = vpop.f32.mrb[30].mxu0  ;;  %11361 = vmatprep.mubr.msk.f32.mxu1 %vm409_vm0, %v4788_v62  ;;  %v4724_v57 = vld [vmem:[#allocation3 + $0x20] sm:$0xff]  ;;  %v5986_v60 = vld [vmem:[#allocation8 + $0xc0] sm:$0xff]  ;;  %v5987_v61 = vld [vmem:[#allocation8 + $0xc8] sm:$0xff] }
 0x3c8   : > { %v4677_v7 = vmul.f32 %v4616_v48, %v4425_v51  ;;  %v4391_v12 = vadd.f32 %v11302_v2, %v14240_v24  ;;  %v4288_v13 = vpop.f32.mrb[31].mxu0  ;;  %11362 = vmatmul.mubr.msk.f32.gmra.mrb[24].mxu1 %vm409_vm0, %v4789_v63  ;;  %v4721_v48 = vld [vmem:[#allocation3 + $0x8] sm:$0xff]  ;;  %v4726_v51 = vld [vmem:[#allocation3 + $0x30] sm:$0xff]  ;;  %v4727_v62 = vld [vmem:[#allocation3 + $0x38] sm:$0xff] }
 0x3c9   : > { %v4676_v6 = vmul.f32 %v4611_v50, %v4424_v1  ;;  %v4390_v8 = vadd.f32 %v14240_v24, %v4288_v13  ;;  %v5557_v50 = vld [vmem:[#allocation8 + $0xa8] sm:$0xff]  ;;  %v4728_v63 = vld [vmem:[#allocation3 + $0x40] sm:$0xff]  ;;  %v4731_v2 = vld [vmem:[#allocation3 + $0x58] sm:$0xff] }
 0x3ca   : > { %4713 = vst.msk [vmem:[#allocation3 + $0xfb] sm:$0xff] %vm409_vm0, %v4677_v7  ;;  %v4427_v17 = vmax.f32 %v4391_v12, 0.0  ;;  %v4790_v10 = vld [vmem:[#allocation3 + $0xd1] sm:$0xff]  ;;  %v4791_v14 = vld [vmem:[#allocation3 + $0xd9] sm:$0xff]  ;;  %v12123_v53 = vpack.c.bf16 %v5557_v50, %v5556_v38  ;;  %v4733_v7 = vld [vmem:[#allocation3 + $0x68] sm:$0xff] }
 0x3cb   : > { %4712 = vst.msk [vmem:[#allocation3 + $0xf3] sm:$0xff] %vm409_vm0, %v4676_v6  ;;  %v4426_v18 = vmax.f32 %v4390_v8, 0.0  ;;  %v11305_v19 = vpop.f32.mrb[32].mxu0  ;;  %11364 = vmatprep.mubr.msk.f32.mxu1 %vm409_vm0, %v4790_v10  ;;  %v4730_v1 = vld [vmem:[#allocation3 + $0x50] sm:$0xff]  ;;  %v4735_v13 = vld [vmem:[#allocation3 + $0x78] sm:$0xff]  ;;  %v4736_v6 = vld [vmem:[#allocation3 + $0x80] sm:$0xff] }
 0x3cc   : > { %v4679_v11 = vmul.f32 %v4626_v54, %v4427_v17  ;;  %v4393_v34 = vadd.f32 %v11305_v19, %v14240_v24  ;;  %v4298_v15 = vpop.f32.mrb[33].mxu0  ;;  %11365 = vmatmul.mubr.msk.f32.gmra.mrb[26].mxu1 %vm409_vm0, %v4791_v14  ;;  %v4729_v54 = vld [vmem:[#allocation3 + $0x48] sm:$0xff]  ;;  %v4734_v12 = vld [vmem:[#allocation3 + $0x70] sm:$0xff]  ;;  %v4739_v10 = vld [vmem:[#allocation3 + $0x98] sm:$0xff] }
 0x3cd   : > { %v4678_v16 = vmul.f32 %v4621_v3, %v4426_v18  ;;  %v4392_v5 = vadd.f32 %v14240_v24, %v4298_v15  ;;  %v4732_v3 = vld [vmem:[#allocation3 + $0x60] sm:$0xff]  ;;  %v4737_v8 = vld [vmem:[#allocation3 + $0x88] sm:$0xff]  ;;  %v4738_v17 = vld [vmem:[#allocation3 + $0x90] sm:$0xff] }
 0x3ce   : > { %4715 = vst.msk [vmem:[#allocation3 + $0x10b] sm:$0xff] %vm409_vm0, %v4679_v11  ;;  %v4429_v0 = vmax.f32 %v4393_v34, 0.0  ;;  %v4792_v22 = vld [vmem:[#allocation3 + $0xe1] sm:$0xff]  ;;  %v4793_v26 = vld [vmem:[#allocation3 + $0xe9] sm:$0xff]  ;;  %v4743_v11 = vld [vmem:[#allocation3 + $0xb8] sm:$0xff] }
 0x3cf   : > { %4714 = vst.msk [vmem:[#allocation3 + $0x103] sm:$0xff] %vm409_vm0, %v4678_v16  ;;  %v4428_v9 = vmax.f32 %v4392_v5, 0.0  ;;  %v11308_v28 = vpop.f32.mrb[34].mxu0  ;;  %11367 = vmatprep.mubr.msk.f32.mxu1 %vm409_vm0, %v4792_v22  ;;  %v4740_v14 = vld [vmem:[#allocation3 + $0xa0] sm:$0xff]  ;;  %v4741_v18 = vld [vmem:[#allocation3 + $0xa8] sm:$0xff]  ;;  %v4742_v19 = vld [vmem:[#allocation3 + $0xb0] sm:$0xff] }
 0x3d0   : > { %v4681_v29 = vmul.f32 %v4636_v4, %v4429_v0  ;;  %v4395_v23 = vadd.f32 %v11308_v28, %v14240_v24  ;;  %v4308_v30 = vpop.f32.mrb[35].mxu0  ;;  %11368 = vmatmul.mubr.msk.f32.gmra.mrb[28].mxu1 %vm409_vm0, %v4793_v26  ;;  %v4744_v34 = vld [vmem:[#allocation3 + $0xc0] sm:$0xff]  ;;  %v4745_v15 = vld [vmem:[#allocation3 + $0xc8] sm:$0xff]  ;;  %v4746_v4 = vld [vmem:[#allocation3 + $0xd0] sm:$0xff] }
 0x3d1   : > { %v4680_v31 = vmul.f32 %v4631_v20, %v4428_v9  ;;  %v4394_v32 = vadd.f32 %v14240_v24, %v4308_v30  ;;  %v4747_v16 = vld [vmem:[#allocation3 + $0xd8] sm:$0xff]  ;;  %v4748_v5 = vld [vmem:[#allocation3 + $0xe0] sm:$0xff]  ;;  %v4749_v20 = vld [vmem:[#allocation3 + $0xe8] sm:$0xff] }
 0x3d2   : > { %4717 = vst.msk [vmem:[#allocation3 + $0x11b] sm:$0xff] %vm409_vm0, %v4681_v29  ;;  %v4431_v33 = vmax.f32 %v4395_v23, 0.0  ;;  %v4794_v35 = vld [vmem:[#allocation3 + $0xf1] sm:$0xff]  ;;  %v4795_v36 = vld [vmem:[#allocation3 + $0xf9] sm:$0xff]  ;;  %v5515_v29 = vld [vmem:[#allocation3 + $0x2] sm:$0xff] }
 0x3d3   : > { %4716 = vst.msk [vmem:[#allocation3 + $0x113] sm:$0xff] %vm409_vm0, %v4680_v31  ;;  %v4430_v39 = vmax.f32 %v4394_v32, 0.0  ;;  %11370 = vmatprep.mubr.msk.f32.mxu1 %vm409_vm0, %v4794_v35  ;;  %v4750_v0 = vld [vmem:[#allocation3 + $0xf0] sm:$0xff]  ;;  %v4751_v22 = vld [vmem:[#allocation3 + $0xf8] sm:$0xff]  ;;  %v5989_v31 = vld [vmem:[#allocation8 + $0xd8] sm:$0xff] }
 0x3d4   : > { %v4683_v40 = vmul.f32 %v4646_v37, %v4431_v33  ;;  %11371 = vmatmul.mubr.msk.f32.gmra.mrb[30].mxu1 %vm409_vm0, %v4795_v36  ;;  %v5988_v30 = vld [vmem:[#allocation8 + $0xd0] sm:$0xff]  ;;  %v5516_v32 = vld [vmem:[#allocation3 + $0xa] sm:$0xff] }
 0x3d5   : > { %v4682_v42 = vmul.f32 %v4641_v25, %v4430_v39  ;;  %v12135_v33 = vpack.c.bf16 %v5989_v31, %v5988_v30  ;;  %v5990_v35 = vld [vmem:[#allocation8 + $0xe0] sm:$0xff]  ;;  %v5991_v36 = vld [vmem:[#allocation8 + $0xe8] sm:$0xff]  ;;  %v14427_v25 = vld [vmem:[#allocation3 + $0x1a] sm:$0xff] }
 0x3d6   : > { %4719 = vst.msk [vmem:[#allocation3 + $0x12b] sm:$0xff] %vm409_vm0, %v4683_v40  ;;  %v4796_v27 = vld [vmem:[#allocation3 + $0x101] sm:$0xff]  ;;  %v4797_v24 = vld [vmem:[#allocation3 + $0x109] sm:$0xff]  ;;  %v14422_v37 = vld [vmem:[#allocation3 + $0x12] sm:$0xff]  ;;  %v12139_v39 = vpack.c.bf16 %v5991_v36, %v5990_v35 }
 0x3d7   : > { %4718 = vst.msk [vmem:[#allocation3 + $0x123] sm:$0xff] %vm409_vm0, %v4682_v42  ;;  %11373 = vmatprep.mubr.msk.f32.mxu1 %vm409_vm0, %v4796_v27  ;;  %v4752_v26 = vld [vmem:[#allocation3 + $0x100] sm:$0xff]  ;;  %v4753_v9 = vld [vmem:[#allocation3 + $0x108] sm:$0xff]  ;;  %v5992_v40 = vld [vmem:[#allocation8 + $0xf0] sm:$0xff] }
 0x3d8   : > { %11374 = vmatmul.mubr.msk.f32.gmra.mrb[32].mxu1 %vm409_vm0, %v4797_v24  ;;  %v5993_v42 = vld [vmem:[#allocation8 + $0xf8] sm:$0xff]  ;;  %v14454_v38 = vld [vmem:[#allocation3 + $0x4a] sm:$0xff]  ;;  %v14458_v50 = vld [vmem:[#allocation3 + $0x52] sm:$0xff] }
 0x3d9   : > { %v14431_v27 = vld [vmem:[#allocation3 + $0x22] sm:$0xff]  ;;  %v12143_v24 = vpack.c.bf16 %v5993_v42, %v5992_v40  ;;  %v14474_v55 = vld [vmem:[#allocation3 + $0x72] sm:$0xff]  ;;  %v14478_v56 = vld [vmem:[#allocation3 + $0x7a] sm:$0xff] }
 0x3da   : > { %v4798_v43 = vld [vmem:[#allocation3 + $0x111] sm:$0xff]  ;;  %v4799_v44 = vld [vmem:[#allocation3 + $0x119] sm:$0xff]  ;;  %v6385_v35 = vld [vmem:[#allocation3 + $0x23] sm:$0xff] }
 0x3db   : > { %11376 = vmatprep.mubr.msk.f32.mxu1 %vm409_vm0, %v4798_v43  ;;  %v4754_v28 = vld [vmem:[#allocation3 + $0x110] sm:$0xff]  ;;  %v4755_v23 = vld [vmem:[#allocation3 + $0x118] sm:$0xff] }
 0x3dc   : > { %11377 = vmatmul.mubr.msk.f32.gmra.mrb[34].mxu1 %vm409_vm0, %v4799_v44  ;;  %v14435_v43 = vld [vmem:[#allocation3 + $0x2a] sm:$0xff]  ;;  %v6384_v31 = vld [vmem:[#allocation3 + $0x1b] sm:$0xff]  ;;  %v6387_v40 = vld [vmem:[#allocation3 + $0x33] sm:$0xff] }
 0x3dd   : > { %11395 = vmatprep.mubr.msk.f32.mxu1 %vm409_vm0, %v4720_v45  ;;  %v6420_v44 = vld [vmem:[#allocation8 + $0x100] sm:$0xff]  ;;  %v6421_v45 = vld [vmem:[#allocation8 + $0x108] sm:$0xff] }
 0x3de   : > { %v14443_v47 = vpack.c.bf16 %v6421_v45, %v6420_v44  ;;  %v6389_v44 = vld [vmem:[#allocation3 + $0x43] sm:$0xff] }
 0x3e0   : > { %11396 = vmatmul.mubr.msk.f32.vlgmr.msra.gmra.mrb[0].mxu1 %vm409_vm0, %v4721_v48  ;;  %v14445_v48 = vld [vmem:[#allocation3 + $0x3a] sm:$0xff] }
 0x3e1   : > { %11398 = vmatprep.mubr.msk.f32.mxu1 %vm409_vm0, %v4722_v52  ;;  %12118 = vmatpush3.bf16.msra.mxu1 %v14230_v21  ;;  %v14388_v21 = vpack.c.bf16 %v5987_v61, %v5986_v60  ;;  %v14462_v52 = vld [vmem:[#allocation3 + $0x5a] sm:$0xff]  ;;  %v14498_v61 = vld [vmem:[#allocation3 + $0xa2] sm:$0xff] }
 0x3e2   : > { %12120 = vmatprep.subr.bf16.mxu1 %v12119_v49  ;;  %v14494_v60 = vld [vmem:[#allocation3 + $0x9a] sm:$0xff] }
 0x3e4   : > { %11399 = vmatmul.mubr.msk.f32.gmra.mrb[2].mxu1 %vm409_vm0, %v4723_v41  ;;  %v14470_v41 = vld [vmem:[#allocation3 + $0x6a] sm:$0xff] }
 0x3e5   : > { %11401 = vmatprep.mubr.msk.f32.mxu1 %vm409_vm0, %v4724_v57  ;;  %12122 = vmatpush3.bf16.msra.mxu1 %v12119_v49  ;;  %v14449_v49 = vld [vmem:[#allocation3 + $0x42] sm:$0xff] }
 0x3e6   : > { %12124 = vmatprep.subr.bf16.mxu1 %v12123_v53  ;;  %v14482_v57 = vld [vmem:[#allocation3 + $0x82] sm:$0xff] }
 0x3e8   : > { %11402 = vmatmul.mubr.msk.f32.gmra.mrb[4].mxu1 %vm409_vm0, %v4725_v59  ;;  %v14490_v59 = vld [vmem:[#allocation3 + $0x92] sm:$0xff] }
 0x3e9   : > { %11404 = vmatprep.mubr.msk.f32.mxu1 %vm409_vm0, %v4726_v51  ;;  %12126 = vmatpush3.bf16.msra.mxu1 %v12123_v53  ;;  %v14466_v53 = vld [vmem:[#allocation3 + $0x62] sm:$0xff]  ;;  %v14502_v51 = vld [vmem:[#allocation3 + $0xaa] sm:$0xff] }
 0x3ea   : > { %12128 = vmatprep.subr.bf16.mxu1 %v12127_v58 }
 0x3ec   : > { %11405 = vmatmul.mubr.msk.f32.gmra.mrb[6].mxu1 %vm409_vm0, %v4727_v62  ;;  %v14510_v62 = vld [vmem:[#allocation3 + $0xba] sm:$0xff] }
 0x3ed   : > { %11407 = vmatprep.mubr.msk.f32.mxu1 %vm409_vm0, %v4728_v63  ;;  %12130 = vmatpush3.bf16.msra.mxu1 %v12127_v58  ;;  %v14486_v58 = vld [vmem:[#allocation3 + $0x8a] sm:$0xff]  ;;  %v14514_v63 = vld [vmem:[#allocation3 + $0xc2] sm:$0xff] }
 0x3ee   : > { %12132 = vmatprep.subr.bf16.mxu1 %v14388_v21 }
 0x3f0   : > { %11408 = vmatmul.mubr.msk.f32.gmra.mrb[8].mxu1 %vm409_vm0, %v4729_v54  ;;  %v14518_v54 = vld [vmem:[#allocation3 + $0xca] sm:$0xff] }
 0x3f1   : > { %11410 = vmatprep.mubr.msk.f32.mxu1 %vm409_vm0, %v4730_v1  ;;  %v14522_v1 = vld [vmem:[#allocation3 + $0xd2] sm:$0xff] }
 0x3f4   : > { %11411 = vmatmul.mubr.msk.f32.gmra.mrb[10].mxu1 %vm409_vm0, %v4731_v2  ;;  %v14526_v2 = vld [vmem:[#allocation3 + $0xda] sm:$0xff] }
 0x3f5   : > { %11413 = vmatprep.mubr.msk.f32.mxu1 %vm409_vm0, %v4732_v3  ;;  %v5543_v3 = vld [vmem:[#allocation3 + $0xe2] sm:$0xff] }
 0x3f8   : > { %11414 = vmatmul.mubr.msk.f32.gmra.mrb[12].mxu1 %vm409_vm0, %v4733_v7  ;;  %v5544_v7 = vld [vmem:[#allocation3 + $0xea] sm:$0xff] }
 0x3f9   : > { %11416 = vmatprep.mubr.msk.f32.mxu1 %vm409_vm0, %v4734_v12  ;;  %v5545_v12 = vld [vmem:[#allocation3 + $0xf2] sm:$0xff] }
 0x3fc   : > { %11417 = vmatmul.mubr.msk.f32.gmra.mrb[14].mxu1 %vm409_vm0, %v4735_v13  ;;  %v5546_v13 = vld [vmem:[#allocation3 + $0xfa] sm:$0xff] }
 0x3fd   : > { %11419 = vmatprep.mubr.msk.f32.mxu1 %vm409_vm0, %v4736_v6  ;;  %v5547_v6 = vld [vmem:[#allocation3 + $0x102] sm:$0xff] }
 0x400   : > { %11420 = vmatmul.mubr.msk.f32.gmra.mrb[16].mxu1 %vm409_vm0, %v4737_v8  ;;  %v5548_v8 = vld [vmem:[#allocation3 + $0x10a] sm:$0xff] }
 0x401   : > { %11422 = vmatprep.mubr.msk.f32.mxu1 %vm409_vm0, %v4738_v17  ;;  %v5549_v17 = vld [vmem:[#allocation3 + $0x112] sm:$0xff] }
 0x404   : > { %11423 = vmatmul.mubr.msk.f32.gmra.mrb[18].mxu1 %vm409_vm0, %v4739_v10  ;;  %v5550_v10 = vld [vmem:[#allocation3 + $0x11a] sm:$0xff] }
 0x405   : > { %11425 = vmatprep.mubr.msk.f32.mxu1 %vm409_vm0, %v4740_v14  ;;  %v6422_v14 = vld [vmem:[#allocation8 + $0x110] sm:$0xff] }
 0x408   : > { %11426 = vmatmul.mubr.msk.f32.gmra.mrb[20].mxu1 %vm409_vm0, %v4741_v18  ;;  %v6423_v18 = vld [vmem:[#allocation8 + $0x118] sm:$0xff] }
 0x409   : > { %11428 = vmatprep.mubr.msk.f32.mxu1 %vm409_vm0, %v4742_v19  ;;  %v12151_v19 = vpack.c.bf16 %v6423_v18, %v6422_v14  ;;  %v6817_v14 = vld [vmem:[#allocation3 + $0x14] sm:$0xff] }
 0x40c   : > { %11429 = vmatmul.mubr.msk.f32.gmra.mrb[22].mxu1 %vm409_vm0, %v4743_v11  ;;  %v6424_v11 = vld [vmem:[#allocation8 + $0x120] sm:$0xff] }
 0x40d   : > { %11431 = vmatprep.mubr.msk.f32.mxu1 %vm409_vm0, %v4744_v34  ;;  %v6425_v34 = vld [vmem:[#allocation8 + $0x128] sm:$0xff] }
 0x410   : > { %11432 = vmatmul.mubr.msk.f32.gmra.mrb[24].mxu1 %vm409_vm0, %v4745_v15  ;;  %v12155_v15 = vpack.c.bf16 %v6425_v34, %v6424_v11  ;;  %v7292_v11 = vld [vmem:[#allocation8 + $0x1a0] sm:$0xff]  ;;  %v7293_v34 = vld [vmem:[#allocation8 + $0x1a8] sm:$0xff] }
 0x411   : > { %11434 = vmatprep.mubr.msk.f32.mxu1 %vm409_vm0, %v4746_v4  ;;  %v6426_v4 = vld [vmem:[#allocation8 + $0x130] sm:$0xff] }
 0x414   : > { %11435 = vmatmul.mubr.msk.f32.gmra.mrb[26].mxu1 %vm409_vm0, %v4747_v16  ;;  %v6427_v16 = vld [vmem:[#allocation8 + $0x138] sm:$0xff] }
 0x415   : > { %11437 = vmatprep.mubr.msk.f32.mxu1 %vm409_vm0, %v4748_v5  ;;  %v12159_v5 = vpack.c.bf16 %v6427_v16, %v6426_v4  ;;  %v12187_v4 = vpack.c.bf16 %v7293_v34, %v7292_v11  ;;  %v14647_v16 = vld [vmem:[#allocation3 + $0x2c] sm:$0xff]  ;;  %v7687_v11 = vld [vmem:[#allocation3 + $0x35] sm:$0xff] }
 0x418   : > { %11438 = vmatmul.mubr.msk.f32.gmra.mrb[28].mxu1 %vm409_vm0, %v4749_v20  ;;  %v6854_v20 = vld [vmem:[#allocation8 + $0x140] sm:$0xff] }
 0x419   : > { %11440 = vmatprep.mubr.msk.f32.mxu1 %vm409_vm0, %v4750_v0  ;;  %v6855_v0 = vld [vmem:[#allocation8 + $0x148] sm:$0xff] }
 0x41c   : > { %11441 = vmatmul.mubr.msk.f32.gmra.mrb[30].mxu1 %vm409_vm0, %v4751_v22  ;;  %v12163_v22 = vpack.c.bf16 %v6855_v0, %v6854_v20  ;;  %v7295_v20 = vld [vmem:[#allocation8 + $0x1b8] sm:$0xff]  ;;  %v14651_v0 = vld [vmem:[#allocation3 + $0x34] sm:$0xff] }
 0x41d   : > { %11443 = vmatprep.mubr.msk.f32.mxu1 %vm409_vm0, %v4752_v26  ;;  %v5983_v26 = vld [vmem:[#allocation3 + $0x122] sm:$0xff] }
 0x420   : > { %11444 = vmatmul.mubr.msk.f32.gmra.mrb[32].mxu1 %vm409_vm0, %v4753_v9  ;;  %v5984_v9 = vld [vmem:[#allocation3 + $0x12a] sm:$0xff] }
 0x421   : > { %11446 = vmatprep.mubr.msk.f32.mxu1 %vm409_vm0, %v4754_v28  ;;  %v6856_v28 = vld [vmem:[#allocation8 + $0x150] sm:$0xff] }
 0x424   : > { %11447 = vmatmul.mubr.msk.f32.gmra.mrb[34].mxu1 %vm409_vm0, %v4755_v23  ;;  %v6383_v23 = vld [vmem:[#allocation3 + $0x13] sm:$0xff] }
 0x425   : > { %11465 = vmatprep.mubr.msk.f32.mxu1 %vm409_vm0, %v5515_v29  ;;  %v6857_v29 = vld [vmem:[#allocation8 + $0x158] sm:$0xff] }
 0x426   : > { %v12167_v30 = vpack.c.bf16 %v6857_v29, %v6856_v28  ;;  %v7723_v28 = vld [vmem:[#allocation8 + $0x1c8] sm:$0xff]  ;;  %v14659_v29 = vld [vmem:[#allocation3 + $0x44] sm:$0xff] }
 0x428   : > { %11466 = vmatmul.mubr.msk.f32.vlgmr.msra.gmra.mrb[0].mxu1 %vm409_vm0, %v5516_v32  ;;  %v6858_v32 = vld [vmem:[#allocation8 + $0x160] sm:$0xff] }
 0x429   : > { %11468 = vmatprep.mubr.msk.f32.mxu1 %vm409_vm0, %v14422_v37  ;;  %12134 = vmatpush3.bf16.msra.mxu1 %v14388_v21  ;;  %v14506_v21 = vld [vmem:[#allocation3 + $0xb2] sm:$0xff] }
 0x42a   : > { %12136 = vmatprep.subr.bf16.mxu1 %v12135_v33 }
 0x42c   : > { %11469 = vmatmul.mubr.msk.f32.gmra.mrb[2].mxu1 %vm409_vm0, %v14427_v25 }
 0x42d   : > { %11471 = vmatprep.mubr.msk.f32.mxu1 %vm409_vm0, %v14431_v27  ;;  %12138 = vmatpush3.bf16.msra.mxu1 %v12135_v33  ;;  %v6859_v33 = vld [vmem:[#allocation8 + $0x168] sm:$0xff] }
 0x42e   : > { %12140 = vmatprep.subr.bf16.mxu1 %v12139_v39  ;;  %v12171_v36 = vpack.c.bf16 %v6859_v33, %v6858_v32  ;;  %v14674_v32 = vld [vmem:[#allocation3 + $0x5c] sm:$0xff]  ;;  %v14678_v33 = vld [vmem:[#allocation3 + $0x64] sm:$0xff] }
 0x430   : > { %11472 = vmatmul.mubr.msk.f32.gmra.mrb[4].mxu1 %vm409_vm0, %v14435_v43 }
 0x431   : > { %11474 = vmatprep.mubr.msk.f32.mxu1 %vm409_vm0, %v14439_v46  ;;  %12142 = vmatpush3.bf16.msra.mxu1 %v12139_v39  ;;  %v6860_v39 = vld [vmem:[#allocation8 + $0x170] sm:$0xff] }
 0x432   : > { %12144 = vmatprep.subr.bf16.mxu1 %v12143_v24 }
 0x434   : > { %11475 = vmatmul.mubr.msk.f32.gmra.mrb[6].mxu1 %vm409_vm0, %v14445_v48 }
 0x435   : > { %11477 = vmatprep.mubr.msk.f32.mxu1 %vm409_vm0, %v14449_v49  ;;  %12146 = vmatpush3.bf16.msra.mxu1 %v12143_v24  ;;  %v7288_v24 = vld [vmem:[#allocation8 + $0x180] sm:$0xff] }
 0x436   : > { %12148 = vmatprep.subr.bf16.mxu1 %v14443_v47 }
 0x438   : > { %11478 = vmatmul.mubr.msk.f32.gmra.mrb[8].mxu1 %vm409_vm0, %v14454_v38 }
 0x439   : > { %11480 = vmatprep.mubr.msk.f32.mxu1 %vm409_vm0, %v14458_v50 }
 0x43c   : > { %11481 = vmatmul.mubr.msk.f32.gmra.mrb[10].mxu1 %vm409_vm0, %v14462_v52 }
 0x43d   : > { %11483 = vmatprep.mubr.msk.f32.mxu1 %vm409_vm0, %v14466_v53 }
 0x440   : > { %11484 = vmatmul.mubr.msk.f32.gmra.mrb[12].mxu1 %vm409_vm0, %v14470_v41 }
 0x441   : > { %11486 = vmatprep.mubr.msk.f32.mxu1 %vm409_vm0, %v14474_v55 }
 0x444   : > { %11487 = vmatmul.mubr.msk.f32.gmra.mrb[14].mxu1 %vm409_vm0, %v14478_v56 }
 0x445   : > { %11489 = vmatprep.mubr.msk.f32.mxu1 %vm409_vm0, %v14482_v57 }
 0x448   : > { %11490 = vmatmul.mubr.msk.f32.gmra.mrb[16].mxu1 %vm409_vm0, %v14486_v58 }
 0x449   : > { %11492 = vmatprep.mubr.msk.f32.mxu1 %vm409_vm0, %v14490_v59 }
 0x44c   : > { %11493 = vmatmul.mubr.msk.f32.gmra.mrb[18].mxu1 %vm409_vm0, %v14494_v60 }
 0x44d   : > { %11495 = vmatprep.mubr.msk.f32.mxu1 %vm409_vm0, %v14498_v61 }
 0x450   : > { %11496 = vmatmul.mubr.msk.f32.gmra.mrb[20].mxu1 %vm409_vm0, %v14502_v51 }
 0x451   : > { %11498 = vmatprep.mubr.msk.f32.mxu1 %vm409_vm0, %v14506_v21 }
 0x454   : > { %11499 = vmatmul.mubr.msk.f32.gmra.mrb[22].mxu1 %vm409_vm0, %v14510_v62 }
 0x455   : > { %11501 = vmatprep.mubr.msk.f32.mxu1 %vm409_vm0, %v14514_v63 }
 0x458   : > { %11502 = vmatmul.mubr.msk.f32.gmra.mrb[24].mxu1 %vm409_vm0, %v14518_v54 }
 0x459   : > { %11504 = vmatprep.mubr.msk.f32.mxu1 %vm409_vm0, %v14522_v1 }
 0x45c   : > { %11505 = vmatmul.mubr.msk.f32.gmra.mrb[26].mxu1 %vm409_vm0, %v14526_v2 }
 0x45d   : > { %11507 = vmatprep.mubr.msk.f32.mxu1 %vm409_vm0, %v5543_v3 }
 0x460   : > { %11508 = vmatmul.mubr.msk.f32.gmra.mrb[28].mxu1 %vm409_vm0, %v5544_v7 }
 0x461   : > { %11510 = vmatprep.mubr.msk.f32.mxu1 %vm409_vm0, %v5545_v12 }
 0x464   : > { %11511 = vmatmul.mubr.msk.f32.gmra.mrb[30].mxu1 %vm409_vm0, %v5546_v13 }
 0x465   : > { %11513 = vmatprep.mubr.msk.f32.mxu1 %vm409_vm0, %v5547_v6 }
 0x468   : > { %11514 = vmatmul.mubr.msk.f32.gmra.mrb[32].mxu1 %vm409_vm0, %v5548_v8 }
 0x469   : > { %11516 = vmatprep.mubr.msk.f32.mxu1 %vm409_vm0, %v5549_v17 }
 0x46c   : > { %11517 = vmatmul.mubr.msk.f32.gmra.mrb[34].mxu1 %vm409_vm0, %v5550_v10 }
 0x46d   : > { %11535 = vmatprep.mubr.msk.f32.mxu1 %vm409_vm0, %v14422_v37  ;;  %v6386_v37 = vld [vmem:[#allocation3 + $0x2b] sm:$0xff] }
 0x470   : > { %11536 = vmatmul.mubr.msk.f32.vlgmr.msra.gmra.mrb[0].mxu1 %vm409_vm0, %v14427_v25  ;;  %v6861_v25 = vld [vmem:[#allocation8 + $0x178] sm:$0xff] }
 0x471   : > { %11538 = vmatprep.mubr.msk.f32.mxu1 %vm409_vm0, %v14431_v27  ;;  %12150 = vmatpush3.bf16.msra.mxu1 %v14443_v47  ;;  %v12175_v42 = vpack.c.bf16 %v6861_v25, %v6860_v39  ;;  %v6388_v27 = vld [vmem:[#allocation3 + $0x3b] sm:$0xff]  ;;  %v6391_v47 = vld [vmem:[#allocation3 + $0x53] sm:$0xff]  ;;  %v14694_v39 = vld [vmem:[#allocation3 + $0x84] sm:$0xff] }
 0x472   : > { %12152 = vmatprep.subr.bf16.mxu1 %v12151_v19  ;;  %v14698_v25 = vld [vmem:[#allocation3 + $0x8c] sm:$0xff] }
 0x474   : > { %11539 = vmatmul.mubr.msk.f32.gmra.mrb[2].mxu1 %vm409_vm0, %v14435_v43  ;;  %v7289_v43 = vld [vmem:[#allocation8 + $0x188] sm:$0xff] }
 0x475   : > { %11541 = vmatprep.mubr.msk.f32.mxu1 %vm409_vm0, %v14439_v46  ;;  %12154 = vmatpush3.bf16.msra.mxu1 %v12151_v19  ;;  %v14608_v45 = vpack.c.bf16 %v7289_v43, %v7288_v24  ;;  %v6390_v46 = vld [vmem:[#allocation3 + $0x4b] sm:$0xff]  ;;  %v6818_v19 = vld [vmem:[#allocation3 + $0x1c] sm:$0xff]  ;;  %v14718_v43 = vld [vmem:[#allocation3 + $0xb4] sm:$0xff] }
 0x476   : > { %12156 = vmatprep.subr.bf16.mxu1 %v12155_v15  ;;  %v14714_v24 = vld [vmem:[#allocation3 + $0xac] sm:$0xff] }
 0x478   : > { %11542 = vmatmul.mubr.msk.f32.gmra.mrb[4].mxu1 %vm409_vm0, %v14445_v48  ;;  %v6392_v48 = vld [vmem:[#allocation3 + $0x5b] sm:$0xff] }
 0x479   : > { %11544 = vmatprep.mubr.msk.f32.mxu1 %vm409_vm0, %v14449_v49  ;;  %12158 = vmatpush3.bf16.msra.mxu1 %v12155_v15  ;;  %v6393_v49 = vld [vmem:[#allocation3 + $0x63] sm:$0xff] }
 0x47a   : > { %12160 = vmatprep.subr.bf16.mxu1 %v12159_v5  ;;  %v14642_v15 = vld [vmem:[#allocation3 + $0x24] sm:$0xff] }
 0x47c   : > { %11545 = vmatmul.mubr.msk.f32.gmra.mrb[6].mxu1 %vm409_vm0, %v14454_v38  ;;  %v6394_v38 = vld [vmem:[#allocation3 + $0x6b] sm:$0xff] }
 0x47d   : > { %11547 = vmatprep.mubr.msk.f32.mxu1 %vm409_vm0, %v14458_v50  ;;  %12162 = vmatpush3.bf16.msra.mxu1 %v12159_v5  ;;  %v6395_v50 = vld [vmem:[#allocation3 + $0x73] sm:$0xff] }
 0x47e   : > { %12164 = vmatprep.subr.bf16.mxu1 %v12163_v22  ;;  %v7294_v5 = vld [vmem:[#allocation8 + $0x1b0] sm:$0xff] }
 0x480   : > { %11548 = vmatmul.mubr.msk.f32.gmra.mrb[8].mxu1 %vm409_vm0, %v14462_v52  ;;  %v6396_v52 = vld [vmem:[#allocation3 + $0x7b] sm:$0xff] }
 0x481   : > { %11550 = vmatprep.mubr.msk.f32.mxu1 %vm409_vm0, %v14466_v53  ;;  %v6397_v53 = vld [vmem:[#allocation3 + $0x83] sm:$0xff] }
 0x484   : > { %11551 = vmatmul.mubr.msk.f32.gmra.mrb[10].mxu1 %vm409_vm0, %v14470_v41  ;;  %v6398_v41 = vld [vmem:[#allocation3 + $0x8b] sm:$0xff] }
 0x485   : > { %11553 = vmatprep.mubr.msk.f32.mxu1 %vm409_vm0, %v14474_v55  ;;  %v6399_v55 = vld [vmem:[#allocation3 + $0x93] sm:$0xff] }
 0x488   : > { %11554 = vmatmul.mubr.msk.f32.gmra.mrb[12].mxu1 %vm409_vm0, %v14478_v56  ;;  %v6400_v56 = vld [vmem:[#allocation3 + $0x9b] sm:$0xff] }
 0x489   : > { %11556 = vmatprep.mubr.msk.f32.mxu1 %vm409_vm0, %v14482_v57  ;;  %v6401_v57 = vld [vmem:[#allocation3 + $0xa3] sm:$0xff] }
 0x48c   : > { %11557 = vmatmul.mubr.msk.f32.gmra.mrb[14].mxu1 %vm409_vm0, %v14486_v58  ;;  %v6402_v58 = vld [vmem:[#allocation3 + $0xab] sm:$0xff] }
 0x48d   : > { %11559 = vmatprep.mubr.msk.f32.mxu1 %vm409_vm0, %v14490_v59  ;;  %v6403_v59 = vld [vmem:[#allocation3 + $0xb3] sm:$0xff] }
 0x490   : > { %11560 = vmatmul.mubr.msk.f32.gmra.mrb[16].mxu1 %vm409_vm0, %v14494_v60  ;;  %v6404_v60 = vld [vmem:[#allocation3 + $0xbb] sm:$0xff] }
 0x491   : > { %11562 = vmatprep.mubr.msk.f32.mxu1 %vm409_vm0, %v14498_v61  ;;  %v6405_v61 = vld [vmem:[#allocation3 + $0xc3] sm:$0xff] }
 0x494   : > { %11563 = vmatmul.mubr.msk.f32.gmra.mrb[18].mxu1 %vm409_vm0, %v14502_v51  ;;  %v6406_v51 = vld [vmem:[#allocation3 + $0xcb] sm:$0xff] }
 0x495   : > { %11565 = vmatprep.mubr.msk.f32.mxu1 %vm409_vm0, %v14506_v21  ;;  %v6407_v21 = vld [vmem:[#allocation3 + $0xd3] sm:$0xff] }
 0x498   : > { %11566 = vmatmul.mubr.msk.f32.gmra.mrb[20].mxu1 %vm409_vm0, %v14510_v62  ;;  %v6408_v62 = vld [vmem:[#allocation3 + $0xdb] sm:$0xff] }
 0x499   : > { %11568 = vmatprep.mubr.msk.f32.mxu1 %vm409_vm0, %v14514_v63  ;;  %v6409_v63 = vld [vmem:[#allocation3 + $0xe3] sm:$0xff] }
 0x49c   : > { %11569 = vmatmul.mubr.msk.f32.gmra.mrb[22].mxu1 %vm409_vm0, %v14518_v54  ;;  %v6410_v54 = vld [vmem:[#allocation3 + $0xeb] sm:$0xff] }
 0x49d   : > { %11571 = vmatprep.mubr.msk.f32.mxu1 %vm409_vm0, %v14522_v1  ;;  %v6411_v1 = vld [vmem:[#allocation3 + $0xf3] sm:$0xff] }
 0x4a0   : > { %11572 = vmatmul.mubr.msk.f32.gmra.mrb[24].mxu1 %vm409_vm0, %v14526_v2  ;;  %v6412_v2 = vld [vmem:[#allocation3 + $0xfb] sm:$0xff] }
 0x4a1   : > { %11574 = vmatprep.mubr.msk.f32.mxu1 %vm409_vm0, %v5543_v3  ;;  %v6413_v3 = vld [vmem:[#allocation3 + $0x103] sm:$0xff] }
 0x4a4   : > { %11575 = vmatmul.mubr.msk.f32.gmra.mrb[26].mxu1 %vm409_vm0, %v5544_v7  ;;  %v6414_v7 = vld [vmem:[#allocation3 + $0x10b] sm:$0xff] }
 0x4a5   : > { %11577 = vmatprep.mubr.msk.f32.mxu1 %vm409_vm0, %v5545_v12  ;;  %v6415_v12 = vld [vmem:[#allocation3 + $0x113] sm:$0xff] }
 0x4a8   : > { %11578 = vmatmul.mubr.msk.f32.gmra.mrb[28].mxu1 %vm409_vm0, %v5546_v13  ;;  %v6416_v13 = vld [vmem:[#allocation3 + $0x11b] sm:$0xff] }
 0x4a9   : > { %11580 = vmatprep.mubr.msk.f32.mxu1 %vm409_vm0, %v5547_v6  ;;  %v6417_v6 = vld [vmem:[#allocation3 + $0x123] sm:$0xff] }
 0x4ac   : > { %11581 = vmatmul.mubr.msk.f32.gmra.mrb[30].mxu1 %vm409_vm0, %v5548_v8  ;;  %v6418_v8 = vld [vmem:[#allocation3 + $0x12b] sm:$0xff] }
 0x4ad   : > { %11583 = vmatprep.mubr.msk.f32.mxu1 %vm409_vm0, %v5549_v17  ;;  %v7290_v17 = vld [vmem:[#allocation8 + $0x190] sm:$0xff] }
 0x4b0   : > { %11584 = vmatmul.mubr.msk.f32.gmra.mrb[32].mxu1 %vm409_vm0, %v5550_v10  ;;  %v7291_v10 = vld [vmem:[#allocation8 + $0x198] sm:$0xff] }
 0x4b1   : > { %11586 = vmatprep.mubr.msk.f32.mxu1 %vm409_vm0, %v5983_v26  ;;  %v12183_v18 = vpack.c.bf16 %v7291_v10, %v7290_v17  ;;  %v14655_v26 = vld [vmem:[#allocation3 + $0x3c] sm:$0xff]  ;;  %v7685_v17 = vld [vmem:[#allocation3 + $0x25] sm:$0xff] }
 0x4b4   : > { %11587 = vmatmul.mubr.msk.f32.gmra.mrb[34].mxu1 %vm409_vm0, %v5984_v9  ;;  %v7722_v9 = vld [vmem:[#allocation8 + $0x1c0] sm:$0xff] }
 0x4b5   : > { %11605 = vmatprep.mubr.msk.f32.mxu1 %vm409_vm0, %v6383_v23  ;;  %v14663_v23 = vpack.c.bf16 %v7723_v28, %v7722_v9  ;;  %v7693_v9 = vld [vmem:[#allocation3 + $0x65] sm:$0xff]  ;;  %v7694_v28 = vld [vmem:[#allocation3 + $0x6d] sm:$0xff] }
 0x4b8   : > { %11606 = vmatmul.mubr.msk.f32.vlgmr.msra.gmra.mrb[0].mxu1 %vm409_vm0, %v6384_v31  ;;  %v14669_v31 = vld [vmem:[#allocation3 + $0x54] sm:$0xff] }
 0x4b9   : > { %11608 = vmatprep.mubr.msk.f32.mxu1 %vm409_vm0, %v6385_v35  ;;  %12166 = vmatpush3.bf16.msra.mxu1 %v12163_v22  ;;  %v12191_v22 = vpack.c.bf16 %v7295_v20, %v7294_v5  ;;  %v14682_v35 = vld [vmem:[#allocation3 + $0x6c] sm:$0xff] }
 0x4ba   : > { %12168 = vmatprep.subr.bf16.mxu1 %v12167_v30  ;;  %v7689_v5 = vld [vmem:[#allocation3 + $0x45] sm:$0xff] }
 0x4bc   : > { %11609 = vmatmul.mubr.msk.f32.gmra.mrb[2].mxu1 %vm409_vm0, %v6386_v37  ;;  %v14690_v37 = vld [vmem:[#allocation3 + $0x7c] sm:$0xff] }
 0x4bd   : > { %11611 = vmatprep.mubr.msk.f32.mxu1 %vm409_vm0, %v6387_v40  ;;  %12170 = vmatpush3.bf16.msra.mxu1 %v12167_v30  ;;  %v14665_v30 = vld [vmem:[#allocation3 + $0x4c] sm:$0xff]  ;;  %v14702_v40 = vld [vmem:[#allocation3 + $0x94] sm:$0xff] }
 0x4be   : > { %12172 = vmatprep.subr.bf16.mxu1 %v12171_v36 }
 0x4c0   : > { %11612 = vmatmul.mubr.msk.f32.gmra.mrb[4].mxu1 %vm409_vm0, %v6388_v27  ;;  %v14710_v27 = vld [vmem:[#allocation3 + $0xa4] sm:$0xff] }
 0x4c1   : > { %11614 = vmatprep.mubr.msk.f32.mxu1 %vm409_vm0, %v6389_v44  ;;  %12174 = vmatpush3.bf16.msra.mxu1 %v12171_v36  ;;  %v14686_v36 = vld [vmem:[#allocation3 + $0x74] sm:$0xff]  ;;  %v14722_v44 = vld [vmem:[#allocation3 + $0xbc] sm:$0xff] }
 0x4c2   : > { %12176 = vmatprep.subr.bf16.mxu1 %v12175_v42 }
 0x4c4   : > { %11615 = vmatmul.mubr.msk.f32.gmra.mrb[6].mxu1 %vm409_vm0, %v6390_v46  ;;  %v14730_v46 = vld [vmem:[#allocation3 + $0xcc] sm:$0xff] }
 0x4c5   : > { %11617 = vmatprep.mubr.msk.f32.mxu1 %vm409_vm0, %v6391_v47  ;;  %12178 = vmatpush3.bf16.msra.mxu1 %v12175_v42  ;;  %v14706_v42 = vld [vmem:[#allocation3 + $0x9c] sm:$0xff]  ;;  %v14734_v47 = vld [vmem:[#allocation3 + $0xd4] sm:$0xff] }
 0x4c6   : > { %12180 = vmatprep.subr.bf16.mxu1 %v14608_v45 }
 0x4c8   : > { %11618 = vmatmul.mubr.msk.f32.gmra.mrb[8].mxu1 %vm409_vm0, %v6392_v48  ;;  %v14738_v48 = vld [vmem:[#allocation3 + $0xdc] sm:$0xff] }
 0x4c9   : > { %11620 = vmatprep.mubr.msk.f32.mxu1 %vm409_vm0, %v6393_v49  ;;  %v14742_v49 = vld [vmem:[#allocation3 + $0xe4] sm:$0xff] }
 0x4cc   : > { %11621 = vmatmul.mubr.msk.f32.gmra.mrb[10].mxu1 %vm409_vm0, %v6394_v38  ;;  %v14746_v38 = vld [vmem:[#allocation3 + $0xec] sm:$0xff] }
 0x4cd   : > { %11623 = vmatprep.mubr.msk.f32.mxu1 %vm409_vm0, %v6395_v50  ;;  %v6845_v50 = vld [vmem:[#allocation3 + $0xf4] sm:$0xff] }
 0x4d0   : > { %11624 = vmatmul.mubr.msk.f32.gmra.mrb[12].mxu1 %vm409_vm0, %v6396_v52  ;;  %v6846_v52 = vld [vmem:[#allocation3 + $0xfc] sm:$0xff] }
 0x4d1   : > { %11626 = vmatprep.mubr.msk.f32.mxu1 %vm409_vm0, %v6397_v53  ;;  %v6847_v53 = vld [vmem:[#allocation3 + $0x104] sm:$0xff] }
 0x4d4   : > { %11627 = vmatmul.mubr.msk.f32.gmra.mrb[14].mxu1 %vm409_vm0, %v6398_v41  ;;  %v6848_v41 = vld [vmem:[#allocation3 + $0x10c] sm:$0xff] }
 0x4d5   : > { %11629 = vmatprep.mubr.msk.f32.mxu1 %vm409_vm0, %v6399_v55  ;;  %v6849_v55 = vld [vmem:[#allocation3 + $0x114] sm:$0xff] }
 0x4d8   : > { %11630 = vmatmul.mubr.msk.f32.gmra.mrb[16].mxu1 %vm409_vm0, %v6400_v56  ;;  %v6850_v56 = vld [vmem:[#allocation3 + $0x11c] sm:$0xff] }
 0x4d9   : > { %11632 = vmatprep.mubr.msk.f32.mxu1 %vm409_vm0, %v6401_v57  ;;  %v6851_v57 = vld [vmem:[#allocation3 + $0x124] sm:$0xff] }
 0x4dc   : > { %11633 = vmatmul.mubr.msk.f32.gmra.mrb[18].mxu1 %vm409_vm0, %v6402_v58  ;;  %v6852_v58 = vld [vmem:[#allocation3 + $0x12c] sm:$0xff] }
 0x4dd   : > { %11635 = vmatprep.mubr.msk.f32.mxu1 %vm409_vm0, %v6403_v59  ;;  %v7724_v59 = vld [vmem:[#allocation8 + $0x1d0] sm:$0xff] }
 0x4e0   : > { %11636 = vmatmul.mubr.msk.f32.gmra.mrb[20].mxu1 %vm409_vm0, %v6404_v60  ;;  %v7725_v60 = vld [vmem:[#allocation8 + $0x1d8] sm:$0xff] }
 0x4e1   : > { %11638 = vmatprep.mubr.msk.f32.mxu1 %vm409_vm0, %v6405_v61  ;;  %v12199_v61 = vpack.c.bf16 %v7725_v60, %v7724_v59  ;;  %v8124_v59 = vld [vmem:[#allocation3 + $0x4e] sm:$0xff]  ;;  %v8125_v60 = vld [vmem:[#allocation3 + $0x56] sm:$0xff] }
 0x4e4   : > { %11639 = vmatmul.mubr.msk.f32.gmra.mrb[22].mxu1 %vm409_vm0, %v6406_v51  ;;  %v7726_v51 = vld [vmem:[#allocation8 + $0x1e0] sm:$0xff] }
 0x4e5   : > { %11641 = vmatprep.mubr.msk.f32.mxu1 %vm409_vm0, %v6407_v21  ;;  %v7727_v21 = vld [vmem:[#allocation8 + $0x1e8] sm:$0xff] }
 0x4e8   : > { %11642 = vmatmul.mubr.msk.f32.gmra.mrb[24].mxu1 %vm409_vm0, %v6408_v62  ;;  %v12203_v62 = vpack.c.bf16 %v7727_v21, %v7726_v51  ;;  %v8127_v51 = vld [vmem:[#allocation3 + $0x66] sm:$0xff]  ;;  %v8128_v21 = vld [vmem:[#allocation3 + $0x6e] sm:$0xff] }
 0x4e9   : > { %11644 = vmatprep.mubr.msk.f32.mxu1 %vm409_vm0, %v6409_v63  ;;  %v7728_v63 = vld [vmem:[#allocation8 + $0x1f0] sm:$0xff] }
 0x4ec   : > { %11645 = vmatmul.mubr.msk.f32.gmra.mrb[26].mxu1 %vm409_vm0, %v6410_v54  ;;  %v7729_v54 = vld [vmem:[#allocation8 + $0x1f8] sm:$0xff] }
 0x4ed   : > { %11647 = vmatprep.mubr.msk.f32.mxu1 %vm409_vm0, %v6411_v1  ;;  %v12207_v1 = vpack.c.bf16 %v7729_v54, %v7728_v63  ;;  %v8130_v63 = vld [vmem:[#allocation3 + $0x7e] sm:$0xff]  ;;  %v8131_v54 = vld [vmem:[#allocation3 + $0x86] sm:$0xff] }
 0x4f0   : > { %11648 = vmatmul.mubr.msk.f32.gmra.mrb[28].mxu1 %vm409_vm0, %v6412_v2  ;;  %v8156_v2 = vld [vmem:[#allocation8 + $0x200] sm:$0xff] }
 0x4f1   : > { %11650 = vmatprep.mubr.msk.f32.mxu1 %vm409_vm0, %v6413_v3  ;;  %v8157_v3 = vld [vmem:[#allocation8 + $0x208] sm:$0xff] }
 0x4f4   : > { %11651 = vmatmul.mubr.msk.f32.gmra.mrb[30].mxu1 %vm409_vm0, %v6414_v7  ;;  %v12211_v7 = vpack.c.bf16 %v8157_v3, %v8156_v2  ;;  %v8133_v2 = vld [vmem:[#allocation3 + $0x96] sm:$0xff]  ;;  %v8134_v3 = vld [vmem:[#allocation3 + $0x9e] sm:$0xff] }
 0x4f5   : > { %11653 = vmatprep.mubr.msk.f32.mxu1 %vm409_vm0, %v6415_v12  ;;  %v7285_v12 = vld [vmem:[#allocation3 + $0x134] sm:$0xff] }
 0x4f8   : > { %11654 = vmatmul.mubr.msk.f32.gmra.mrb[32].mxu1 %vm409_vm0, %v6416_v13  ;;  %v7286_v13 = vld [vmem:[#allocation3 + $0x13c] sm:$0xff] }
 0x4f9   : > { %11656 = vmatprep.mubr.msk.f32.mxu1 %vm409_vm0, %v6417_v6  ;;  %v8158_v6 = vld [vmem:[#allocation8 + $0x210] sm:$0xff] }
 0x4fc   : > { %11657 = vmatmul.mubr.msk.f32.gmra.mrb[34].mxu1 %vm409_vm0, %v6418_v8  ;;  %v8159_v8 = vld [vmem:[#allocation8 + $0x218] sm:$0xff] }
 0x4fd   : > { %11675 = vmatprep.mubr.msk.f32.mxu1 %vm409_vm0, %v6817_v14  ;;  %v12215_v10 = vpack.c.bf16 %v8159_v8, %v8158_v6  ;;  %v7686_v14 = vld [vmem:[#allocation3 + $0x2d] sm:$0xff]  ;;  %v8138_v6 = vld [vmem:[#allocation3 + $0xbe] sm:$0xff] }
 0x4fe   : > { %v8139_v8 = vld [vmem:[#allocation3 + $0xc6] sm:$0xff] }
 0x500   : > { %11676 = vmatmul.mubr.msk.f32.vlgmr.msra.gmra.mrb[0].mxu1 %vm409_vm0, %v6818_v19  ;;  %v8161_v19 = vld [vmem:[#allocation8 + $0x228] sm:$0xff] }
 0x501   : > { %11678 = vmatprep.mubr.msk.f32.mxu1 %vm409_vm0, %v14642_v15  ;;  %12182 = vmatpush3.bf16.msra.mxu1 %v14608_v45  ;;  %v14726_v45 = vld [vmem:[#allocation3 + $0xc4] sm:$0xff] }
 0x502   : > { %12184 = vmatprep.subr.bf16.mxu1 %v12183_v18 }
 0x504   : > { %11679 = vmatmul.mubr.msk.f32.gmra.mrb[2].mxu1 %vm409_vm0, %v14647_v16 }
 0x505   : > { %11681 = vmatprep.mubr.msk.f32.mxu1 %vm409_vm0, %v14651_v0  ;;  %12186 = vmatpush3.bf16.msra.mxu1 %v12183_v18  ;;  %v8160_v18 = vld [vmem:[#allocation8 + $0x220] sm:$0xff] }
 0x506   : > { %12188 = vmatprep.subr.bf16.mxu1 %v12187_v4  ;;  %v12219_v34 = vpack.c.bf16 %v8161_v19, %v8160_v18  ;;  %v8143_v18 = vld [vmem:[#allocation3 + $0xe6] sm:$0xff]  ;;  %v8144_v19 = vld [vmem:[#allocation3 + $0xee] sm:$0xff] }
 0x508   : > { %11682 = vmatmul.mubr.msk.f32.gmra.mrb[4].mxu1 %vm409_vm0, %v14655_v26 }
 0x509   : > { %11684 = vmatprep.mubr.msk.f32.mxu1 %vm409_vm0, %v14659_v29  ;;  %12190 = vmatpush3.bf16.msra.mxu1 %v12187_v4  ;;  %v8162_v4 = vld [vmem:[#allocation8 + $0x230] sm:$0xff] }
 0x50a   : > { %12192 = vmatprep.subr.bf16.mxu1 %v12191_v22 }
 0x50c   : > { %11685 = vmatmul.mubr.msk.f32.gmra.mrb[6].mxu1 %vm409_vm0, %v14665_v30 }
 0x50d   : > { %11687 = vmatprep.mubr.msk.f32.mxu1 %vm409_vm0, %v14669_v31  ;;  %12194 = vmatpush3.bf16.msra.mxu1 %v12191_v22  ;;  %v7691_v22 = vld [vmem:[#allocation3 + $0x55] sm:$0xff] }
 0x50e   : > { %12196 = vmatprep.subr.bf16.mxu1 %v14663_v23 }
 0x510   : > { %11688 = vmatmul.mubr.msk.f32.gmra.mrb[8].mxu1 %vm409_vm0, %v14674_v32 }
 0x511   : > { %11690 = vmatprep.mubr.msk.f32.mxu1 %vm409_vm0, %v14678_v33 }
 0x514   : > { %11691 = vmatmul.mubr.msk.f32.gmra.mrb[10].mxu1 %vm409_vm0, %v14682_v35 }
 0x515   : > { %11693 = vmatprep.mubr.msk.f32.mxu1 %vm409_vm0, %v14686_v36 }
 0x518   : > { %11694 = vmatmul.mubr.msk.f32.gmra.mrb[12].mxu1 %vm409_vm0, %v14690_v37 }
 0x519   : > { %11696 = vmatprep.mubr.msk.f32.mxu1 %vm409_vm0, %v14694_v39 }
 0x51c   : > { %11697 = vmatmul.mubr.msk.f32.gmra.mrb[14].mxu1 %vm409_vm0, %v14698_v25 }
 0x51d   : > { %11699 = vmatprep.mubr.msk.f32.mxu1 %vm409_vm0, %v14702_v40 }
 0x520   : > { %11700 = vmatmul.mubr.msk.f32.gmra.mrb[16].mxu1 %vm409_vm0, %v14706_v42 }
 0x521   : > { %11702 = vmatprep.mubr.msk.f32.mxu1 %vm409_vm0, %v14710_v27 }
 0x524   : > { %11703 = vmatmul.mubr.msk.f32.gmra.mrb[18].mxu1 %vm409_vm0, %v14714_v24 }
 0x525   : > { %11705 = vmatprep.mubr.msk.f32.mxu1 %vm409_vm0, %v14718_v43 }
 0x528   : > { %11706 = vmatmul.mubr.msk.f32.gmra.mrb[20].mxu1 %vm409_vm0, %v14722_v44 }
 0x529   : > { %11708 = vmatprep.mubr.msk.f32.mxu1 %vm409_vm0, %v14726_v45 }
 0x52c   : > { %11709 = vmatmul.mubr.msk.f32.gmra.mrb[22].mxu1 %vm409_vm0, %v14730_v46 }
 0x52d   : > { %11711 = vmatprep.mubr.msk.f32.mxu1 %vm409_vm0, %v14734_v47 }
 0x530   : > { %11712 = vmatmul.mubr.msk.f32.gmra.mrb[24].mxu1 %vm409_vm0, %v14738_v48 }
 0x531   : > { %11714 = vmatprep.mubr.msk.f32.mxu1 %vm409_vm0, %v14742_v49 }
 0x534   : > { %11715 = vmatmul.mubr.msk.f32.gmra.mrb[26].mxu1 %vm409_vm0, %v14746_v38 }
 0x535   : > { %11717 = vmatprep.mubr.msk.f32.mxu1 %vm409_vm0, %v6845_v50 }
 0x538   : > { %11718 = vmatmul.mubr.msk.f32.gmra.mrb[28].mxu1 %vm409_vm0, %v6846_v52 }
 0x539   : > { %11720 = vmatprep.mubr.msk.f32.mxu1 %vm409_vm0, %v6847_v53 }
 0x53c   : > { %11721 = vmatmul.mubr.msk.f32.gmra.mrb[30].mxu1 %vm409_vm0, %v6848_v41 }
 0x53d   : > { %11723 = vmatprep.mubr.msk.f32.mxu1 %vm409_vm0, %v6849_v55 }
 0x540   : > { %11724 = vmatmul.mubr.msk.f32.gmra.mrb[32].mxu1 %vm409_vm0, %v6850_v56 }
 0x541   : > { %11726 = vmatprep.mubr.msk.f32.mxu1 %vm409_vm0, %v6851_v57 }
 0x544   : > { %11727 = vmatmul.mubr.msk.f32.gmra.mrb[34].mxu1 %vm409_vm0, %v6852_v58 }
 0x545   : > { %11745 = vmatprep.mubr.msk.f32.mxu1 %vm409_vm0, %v14642_v15  ;;  %v7688_v15 = vld [vmem:[#allocation3 + $0x3d] sm:$0xff] }
 0x548   : > { %11746 = vmatmul.mubr.msk.f32.vlgmr.msra.gmra.mrb[0].mxu1 %vm409_vm0, %v14647_v16  ;;  %v8163_v16 = vld [vmem:[#allocation8 + $0x238] sm:$0xff] }
 0x549   : > { %11748 = vmatprep.mubr.msk.f32.mxu1 %vm409_vm0, %v14651_v0  ;;  %12198 = vmatpush3.bf16.msra.mxu1 %v14663_v23  ;;  %v12223_v20 = vpack.c.bf16 %v8163_v16, %v8162_v4  ;;  %v7690_v0 = vld [vmem:[#allocation3 + $0x4d] sm:$0xff]  ;;  %v7696_v23 = vld [vmem:[#allocation3 + $0x7d] sm:$0xff] }
 0x54a   : > { %12200 = vmatprep.subr.bf16.mxu1 %v12199_v61  ;;  %v8148_v4 = vld [vmem:[#allocation3 + $0x10e] sm:$0xff]  ;;  %v8149_v16 = vld [vmem:[#allocation3 + $0x116] sm:$0xff] }
 0x54c   : > { %11749 = vmatmul.mubr.msk.f32.gmra.mrb[2].mxu1 %vm409_vm0, %v14655_v26  ;;  %v7692_v26 = vld [vmem:[#allocation3 + $0x5d] sm:$0xff] }
 0x54d   : > { %11751 = vmatprep.mubr.msk.f32.mxu1 %vm409_vm0, %v14659_v29  ;;  %12202 = vmatpush3.bf16.msra.mxu1 %v12199_v61  ;;  %v7695_v29 = vld [vmem:[#allocation3 + $0x75] sm:$0xff]  ;;  %v8126_v61 = vld [vmem:[#allocation3 + $0x5e] sm:$0xff] }
 0x54e   : > { %12204 = vmatprep.subr.bf16.mxu1 %v12203_v62 }
 0x550   : > { %11752 = vmatmul.mubr.msk.f32.gmra.mrb[4].mxu1 %vm409_vm0, %v14665_v30  ;;  %v7697_v30 = vld [vmem:[#allocation3 + $0x85] sm:$0xff] }
 0x551   : > { %11754 = vmatprep.mubr.msk.f32.mxu1 %vm409_vm0, %v14669_v31  ;;  %12206 = vmatpush3.bf16.msra.mxu1 %v12203_v62  ;;  %v7698_v31 = vld [vmem:[#allocation3 + $0x8d] sm:$0xff]  ;;  %v8129_v62 = vld [vmem:[#allocation3 + $0x76] sm:$0xff] }
 0x552   : > { %12208 = vmatprep.subr.bf16.mxu1 %v12207_v1 }
 0x554   : > { %11755 = vmatmul.mubr.msk.f32.gmra.mrb[6].mxu1 %vm409_vm0, %v14674_v32  ;;  %v7699_v32 = vld [vmem:[#allocation3 + $0x95] sm:$0xff] }
 0x555   : > { %11757 = vmatprep.mubr.msk.f32.mxu1 %vm409_vm0, %v14678_v33  ;;  %12210 = vmatpush3.bf16.msra.mxu1 %v12207_v1  ;;  %v7700_v33 = vld [vmem:[#allocation3 + $0x9d] sm:$0xff]  ;;  %v8132_v1 = vld [vmem:[#allocation3 + $0x8e] sm:$0xff] }
 0x556   : > { %12212 = vmatprep.subr.bf16.mxu1 %v12211_v7 }
 0x558   : > { %11758 = vmatmul.mubr.msk.f32.gmra.mrb[8].mxu1 %vm409_vm0, %v14682_v35  ;;  %v7701_v35 = vld [vmem:[#allocation3 + $0xa5] sm:$0xff] }
 0x559   : > { %11760 = vmatprep.mubr.msk.f32.mxu1 %vm409_vm0, %v14686_v36  ;;  %v7702_v36 = vld [vmem:[#allocation3 + $0xad] sm:$0xff] }
 0x55c   : > { %11761 = vmatmul.mubr.msk.f32.gmra.mrb[10].mxu1 %vm409_vm0, %v14690_v37  ;;  %v7703_v37 = vld [vmem:[#allocation3 + $0xb5] sm:$0xff] }
 0x55d   : > { %11763 = vmatprep.mubr.msk.f32.mxu1 %vm409_vm0, %v14694_v39  ;;  %v7704_v39 = vld [vmem:[#allocation3 + $0xbd] sm:$0xff] }
 0x560   : > { %11764 = vmatmul.mubr.msk.f32.gmra.mrb[12].mxu1 %vm409_vm0, %v14698_v25  ;;  %v7705_v25 = vld [vmem:[#allocation3 + $0xc5] sm:$0xff] }
 0x561   : > { %11766 = vmatprep.mubr.msk.f32.mxu1 %vm409_vm0, %v14702_v40  ;;  %v7706_v40 = vld [vmem:[#allocation3 + $0xcd] sm:$0xff] }
 0x564   : > { %11767 = vmatmul.mubr.msk.f32.gmra.mrb[14].mxu1 %vm409_vm0, %v14706_v42  ;;  %v7707_v42 = vld [vmem:[#allocation3 + $0xd5] sm:$0xff] }
 0x565   : > { %11769 = vmatprep.mubr.msk.f32.mxu1 %vm409_vm0, %v14710_v27  ;;  %v7708_v27 = vld [vmem:[#allocation3 + $0xdd] sm:$0xff] }
 0x568   : > { %11770 = vmatmul.mubr.msk.f32.gmra.mrb[16].mxu1 %vm409_vm0, %v14714_v24  ;;  %v7709_v24 = vld [vmem:[#allocation3 + $0xe5] sm:$0xff] }
 0x569   : > { %11772 = vmatprep.mubr.msk.f32.mxu1 %vm409_vm0, %v14718_v43  ;;  %v7710_v43 = vld [vmem:[#allocation3 + $0xed] sm:$0xff] }
 0x56c   : > { %11773 = vmatmul.mubr.msk.f32.gmra.mrb[18].mxu1 %vm409_vm0, %v14722_v44  ;;  %v7711_v44 = vld [vmem:[#allocation3 + $0xf5] sm:$0xff] }
 0x56d   : > { %11775 = vmatprep.mubr.msk.f32.mxu1 %vm409_vm0, %v14726_v45  ;;  %v7712_v45 = vld [vmem:[#allocation3 + $0xfd] sm:$0xff] }
 0x570   : > { %11776 = vmatmul.mubr.msk.f32.gmra.mrb[20].mxu1 %vm409_vm0, %v14730_v46  ;;  %v7713_v46 = vld [vmem:[#allocation3 + $0x105] sm:$0xff] }
 0x571   : > { %11778 = vmatprep.mubr.msk.f32.mxu1 %vm409_vm0, %v14734_v47  ;;  %v7714_v47 = vld [vmem:[#allocation3 + $0x10d] sm:$0xff] }
 0x574   : > { %11779 = vmatmul.mubr.msk.f32.gmra.mrb[22].mxu1 %vm409_vm0, %v14738_v48  ;;  %v7715_v48 = vld [vmem:[#allocation3 + $0x115] sm:$0xff] }
 0x575   : > { %11781 = vmatprep.mubr.msk.f32.mxu1 %vm409_vm0, %v14742_v49  ;;  %v7716_v49 = vld [vmem:[#allocation3 + $0x11d] sm:$0xff] }
 0x578   : > { %11782 = vmatmul.mubr.msk.f32.gmra.mrb[24].mxu1 %vm409_vm0, %v14746_v38  ;;  %v7717_v38 = vld [vmem:[#allocation3 + $0x125] sm:$0xff] }
 0x579   : > { %11784 = vmatprep.mubr.msk.f32.mxu1 %vm409_vm0, %v6845_v50  ;;  %v7719_v50 = vld [vmem:[#allocation3 + $0x135] sm:$0xff] }
 0x57c   : > { %11785 = vmatmul.mubr.msk.f32.gmra.mrb[26].mxu1 %vm409_vm0, %v6846_v52  ;;  %v7718_v52 = vld [vmem:[#allocation3 + $0x12d] sm:$0xff] }
 0x57d   : > { %11787 = vmatprep.mubr.msk.f32.mxu1 %vm409_vm0, %v6847_v53  ;;  %v7720_v53 = vld [vmem:[#allocation3 + $0x13d] sm:$0xff] }
 0x580   : > { %11788 = vmatmul.mubr.msk.f32.gmra.mrb[28].mxu1 %vm409_vm0, %v6848_v41  ;;  %v8119_v41 = vld [vmem:[#allocation3 + $0x26] sm:$0xff] }
 0x581   : > { %11790 = vmatprep.mubr.msk.f32.mxu1 %vm409_vm0, %v6849_v55  ;;  %v8120_v55 = vld [vmem:[#allocation3 + $0x2e] sm:$0xff] }
 0x584   : > { %11791 = vmatmul.mubr.msk.f32.gmra.mrb[30].mxu1 %vm409_vm0, %v6850_v56  ;;  %v8121_v56 = vld [vmem:[#allocation3 + $0x36] sm:$0xff] }
 0x585   : > { %11793 = vmatprep.mubr.msk.f32.mxu1 %vm409_vm0, %v6851_v57  ;;  %v8122_v57 = vld [vmem:[#allocation3 + $0x3e] sm:$0xff] }
 0x588   : > { %11794 = vmatmul.mubr.msk.f32.gmra.mrb[32].mxu1 %vm409_vm0, %v6852_v58  ;;  %v8123_v58 = vld [vmem:[#allocation3 + $0x46] sm:$0xff] }
 0x589   : > { %11796 = vmatprep.mubr.msk.f32.mxu1 %vm409_vm0, %v7285_v12  ;;  %v8136_v12 = vld [vmem:[#allocation3 + $0xae] sm:$0xff] }
 0x58c   : > { %11797 = vmatmul.mubr.msk.f32.gmra.mrb[34].mxu1 %vm409_vm0, %v7286_v13  ;;  %v8137_v13 = vld [vmem:[#allocation3 + $0xb6] sm:$0xff] }
 0x58d   : > { %11815 = vmatprep.mubr.msk.f32.mxu1 %vm409_vm0, %v7685_v17  ;;  %v8140_v17 = vld [vmem:[#allocation3 + $0xce] sm:$0xff] }
 0x590   : > { %11816 = vmatmul.mubr.msk.f32.vlgmr.msra.gmra.mrb[0].mxu1 %vm409_vm0, %v7686_v14  ;;  %v8142_v14 = vld [vmem:[#allocation3 + $0xde] sm:$0xff] }
 0x591   : > { %11818 = vmatprep.mubr.msk.f32.mxu1 %vm409_vm0, %v7687_v11  ;;  %12214 = vmatpush3.bf16.msra.mxu1 %v12211_v7  ;;  %v8135_v7 = vld [vmem:[#allocation3 + $0xa6] sm:$0xff]  ;;  %v8145_v11 = vld [vmem:[#allocation3 + $0xf6] sm:$0xff] }
 0x592   : > { %12216 = vmatprep.subr.bf16.mxu1 %v12215_v10 }
 0x594   : > { %11819 = vmatmul.mubr.msk.f32.gmra.mrb[2].mxu1 %vm409_vm0, %v7688_v15  ;;  %v8147_v15 = vld [vmem:[#allocation3 + $0x106] sm:$0xff] }
 0x595   : > { %11821 = vmatprep.mubr.msk.f32.mxu1 %vm409_vm0, %v7689_v5  ;;  %12218 = vmatpush3.bf16.msra.mxu1 %v12215_v10  ;;  %v8141_v10 = vld [vmem:[#allocation3 + $0xd6] sm:$0xff]  ;;  %v8150_v5 = vld [vmem:[#allocation3 + $0x11e] sm:$0xff] }
 0x596   : > { %12220 = vmatprep.subr.bf16.mxu1 %v12219_v34 }
 0x598   : > { %11822 = vmatmul.mubr.msk.f32.gmra.mrb[4].mxu1 %vm409_vm0, %v7690_v0  ;;  %v8153_v0 = vld [vmem:[#allocation3 + $0x136] sm:$0xff] }
 0x599   : > { %11824 = vmatprep.mubr.msk.f32.mxu1 %vm409_vm0, %v7691_v22  ;;  %12222 = vmatpush3.bf16.msra.mxu1 %v12219_v34  ;;  %v8146_v34 = vld [vmem:[#allocation3 + $0xfe] sm:$0xff]  ;;  %v8152_v22 = vld [vmem:[#allocation3 + $0x12e] sm:$0xff] }
 0x59a   : > { %12224 = vmatprep.subr.bf16.mxu1 %v12223_v20 }
 0x59c   : > { %11825 = vmatmul.mubr.msk.f32.gmra.mrb[6].mxu1 %vm409_vm0, %v7692_v26  ;;  %v8154_v26 = vld [vmem:[#allocation3 + $0x13e] sm:$0xff] }
 0x59d   : > { %11827 = vmatprep.mubr.msk.f32.mxu1 %vm409_vm0, %v7693_v9  ;;  %12226 = vmatpush3.bf16.msra.mxu1 %v12223_v20  ;;  %v8151_v20 = vld [vmem:[#allocation3 + $0x126] sm:$0xff]  ;;  %v8635_v9 = vpop.permute.xlu0 %8634 }
 0x5a0   : > { %11828 = vmatmul.mubr.msk.f32.gmra.mrb[8].mxu1 %vm409_vm0, %v7694_v28  ;;  %v8640_v28 = vpop.permute.xlu1 %8639 }
 0x5a1   : > { %11830 = vmatprep.mubr.msk.f32.mxu1 %vm409_vm0, %v7695_v29  ;;  %v8645_v29 = vpop.permute.xlu0 %8644 }
 0x5a4   : > { %11831 = vmatmul.mubr.msk.f32.gmra.mrb[10].mxu1 %vm409_vm0, %v7696_v23  ;;  %v8650_v23 = vpop.permute.xlu1 %8649 }
 0x5a5   : > { %11833 = vmatprep.mubr.msk.f32.mxu1 %vm409_vm0, %v7697_v30  ;;  %v8655_v30 = vpop.permute.xlu0 %8654 }
 0x5a8   : > { %11834 = vmatmul.mubr.msk.f32.gmra.mrb[12].mxu1 %vm409_vm0, %v7698_v31  ;;  %v8660_v31 = vpop.permute.xlu1 %8659 }
 0x5a9   : > { %11836 = vmatprep.mubr.msk.f32.mxu1 %vm409_vm0, %v7699_v32  ;;  %v8665_v32 = vpop.permute.xlu0 %8664 }
 0x5ac   : > { %11837 = vmatmul.mubr.msk.f32.gmra.mrb[14].mxu1 %vm409_vm0, %v7700_v33  ;;  %v8670_v33 = vpop.permute.xlu1 %8669 }
 0x5ad   : > { %11839 = vmatprep.mubr.msk.f32.mxu1 %vm409_vm0, %v7701_v35  ;;  %v8675_v35 = vpop.permute.xlu0 %8674 }
 0x5b0   : > { %11840 = vmatmul.mubr.msk.f32.gmra.mrb[16].mxu1 %vm409_vm0, %v7702_v36  ;;  %v8680_v36 = vpop.permute.xlu1 %8679 }
 0x5b1   : > { %11842 = vmatprep.mubr.msk.f32.mxu1 %vm409_vm0, %v7703_v37  ;;  %v14893_v37 = vpop.permute.xlu0 %8684 }
 0x5b4   : > { %11843 = vmatmul.mubr.msk.f32.gmra.mrb[18].mxu1 %vm409_vm0, %v7704_v39  ;;  %v14898_v39 = vld [vmem:[%s15297_s5] ss:$0 sm:$0xff] }
 0x5b5   : > { %11845 = vmatprep.mubr.msk.f32.mxu1 %vm409_vm0, %v7705_v25  ;;  %v8690_v25 = vpop.permute.xlu1 %8689 }
 0x5b8   : > { %11846 = vmatmul.mubr.msk.f32.gmra.mrb[20].mxu1 %vm409_vm0, %v7706_v40 }
 0x5b9   : > { %11848 = vmatprep.mubr.msk.f32.mxu1 %vm409_vm0, %v7707_v42 }
 0x5bc   : > { %11849 = vmatmul.mubr.msk.f32.gmra.mrb[22].mxu1 %vm409_vm0, %v7708_v27 }
 0x5bd   : > { %11851 = vmatprep.mubr.msk.f32.mxu1 %vm409_vm0, %v7709_v24 }
 0x5c0   : > { %11852 = vmatmul.mubr.msk.f32.gmra.mrb[24].mxu1 %vm409_vm0, %v7710_v43 }
 0x5c1   : > { %11854 = vmatprep.mubr.msk.f32.mxu1 %vm409_vm0, %v7711_v44  ;;  %v14907_v44 = vpop.permute.xlu0 %8694 }
 0x5c4   : > { %11855 = vmatmul.mubr.msk.f32.gmra.mrb[26].mxu1 %vm409_vm0, %v7712_v45 }
 0x5c5   : > { %11857 = vmatprep.mubr.msk.f32.mxu1 %vm409_vm0, %v7713_v46 }
 0x5c8   : > { %11858 = vmatmul.mubr.msk.f32.gmra.mrb[28].mxu1 %vm409_vm0, %v7714_v47  ;;  %v14910_v47 = vpop.permute.xlu1 %8699 }
 0x5c9   : > { %11860 = vmatprep.mubr.msk.f32.mxu1 %vm409_vm0, %v7715_v48 }
 0x5cc   : > { %11861 = vmatmul.mubr.msk.f32.gmra.mrb[30].mxu1 %vm409_vm0, %v7716_v49 }
 0x5cd   : > { %11863 = vmatprep.mubr.msk.f32.mxu1 %vm409_vm0, %v7717_v38 }
 0x5d0   : > { %11864 = vmatmul.mubr.msk.f32.gmra.mrb[32].mxu1 %vm409_vm0, %v7718_v52 }
 0x5d1   : > { %11866 = vmatprep.mubr.msk.f32.mxu1 %vm409_vm0, %v7719_v50 }
 0x5d4   : > { %11867 = vmatmul.mubr.msk.f32.gmra.mrb[34].mxu1 %vm409_vm0, %v7720_v53 }
 0x5d5   : > { %11885 = vmatprep.mubr.msk.f32.mxu1 %vm409_vm0, %v8119_v41 }
 0x5d8   : > { %11886 = vmatmul.mubr.msk.f32.vlgmr.msra.gmra.mrb[0].mxu1 %vm409_vm0, %v8120_v55 }
 0x5d9   : > { %11888 = vmatprep.mubr.msk.f32.mxu1 %vm409_vm0, %v8121_v56 }
 0x5dc   : > { %11889 = vmatmul.mubr.msk.f32.gmra.mrb[2].mxu1 %vm409_vm0, %v8122_v57 }
 0x5dd   : > { %11891 = vmatprep.mubr.msk.f32.mxu1 %vm409_vm0, %v8123_v58 }
 0x5e0   : > { %11892 = vmatmul.mubr.msk.f32.gmra.mrb[4].mxu1 %vm409_vm0, %v8124_v59  ;;  %v14925_v59 = vpop.permute.xlu0 %8704 }
 0x5e1   : > { %11894 = vmatprep.mubr.msk.f32.mxu1 %vm409_vm0, %v8125_v60 }
 0x5e4   : > { %11895 = vmatmul.mubr.msk.f32.gmra.mrb[6].mxu1 %vm409_vm0, %v8126_v61 }
 0x5e5   : > { %11897 = vmatprep.mubr.msk.f32.mxu1 %vm409_vm0, %v8127_v51  ;;  %v8710_v51 = vpop.permute.xlu1 %8709 }
 0x5e8   : > { %11898 = vmatmul.mubr.msk.f32.gmra.mrb[8].mxu1 %vm409_vm0, %v8128_v21 }
 0x5e9   : > { %11900 = vmatprep.mubr.msk.f32.mxu1 %vm409_vm0, %v8129_v62 }
 0x5ec   : > { %11901 = vmatmul.mubr.msk.f32.gmra.mrb[10].mxu1 %vm409_vm0, %v8130_v63 }
 0x5ed   : > { %11903 = vmatprep.mubr.msk.f32.mxu1 %vm409_vm0, %v8131_v54 }
 0x5f0   : > { %11904 = vmatmul.mubr.msk.f32.gmra.mrb[12].mxu1 %vm409_vm0, %v8132_v1 }
 0x5f1   : > { %11906 = vmatprep.mubr.msk.f32.mxu1 %vm409_vm0, %v8133_v2 }
 0x5f4   : > { %11907 = vmatmul.mubr.msk.f32.gmra.mrb[14].mxu1 %vm409_vm0, %v8134_v3 }
 0x5f5   : > { %11909 = vmatprep.mubr.msk.f32.mxu1 %vm409_vm0, %v8135_v7 }
 0x5f8   : > { %11910 = vmatmul.mubr.msk.f32.gmra.mrb[16].mxu1 %vm409_vm0, %v8136_v12 }
 0x5f9   : > { %11912 = vmatprep.mubr.msk.f32.mxu1 %vm409_vm0, %v8137_v13 }
 0x5fc   : > { %11913 = vmatmul.mubr.msk.f32.gmra.mrb[18].mxu1 %vm409_vm0, %v8138_v6 }
 0x5fd   : > { %11915 = vmatprep.mubr.msk.f32.mxu1 %vm409_vm0, %v8139_v8  ;;  %v8715_v8 = vpop.permute.xlu0 %8714 }
 0x600   : > { %11916 = vmatmul.mubr.msk.f32.gmra.mrb[20].mxu1 %vm409_vm0, %v8140_v17 }
 0x601   : > { %11918 = vmatprep.mubr.msk.f32.mxu1 %vm409_vm0, %v8141_v10 }
 0x604   : > { %11919 = vmatmul.mubr.msk.f32.gmra.mrb[22].mxu1 %vm409_vm0, %v8142_v14 }
 0x605   : > { %11921 = vmatprep.mubr.msk.f32.mxu1 %vm409_vm0, %v8143_v18 }
 0x608   : > { %11922 = vmatmul.mubr.msk.f32.gmra.mrb[24].mxu1 %vm409_vm0, %v8144_v19  ;;  %v8720_v19 = vpop.permute.xlu1 %8719 }
 0x609   : > { %11924 = vmatprep.mubr.msk.f32.mxu1 %vm409_vm0, %v8145_v11 }
 0x60c   : > { %11925 = vmatmul.mubr.msk.f32.gmra.mrb[26].mxu1 %vm409_vm0, %v8146_v34 }
 0x60d   : > { %11927 = vmatprep.mubr.msk.f32.mxu1 %vm409_vm0, %v8147_v15 }
 0x610   : > { %11928 = vmatmul.mubr.msk.f32.gmra.mrb[28].mxu1 %vm409_vm0, %v8148_v4 }
 0x611   : > { %11930 = vmatprep.mubr.msk.f32.mxu1 %vm409_vm0, %v8149_v16 }
 0x614   : > { %11931 = vmatmul.mubr.msk.f32.gmra.mrb[30].mxu1 %vm409_vm0, %v8150_v5 }
 0x615   : > { %11933 = vmatprep.mubr.msk.f32.mxu1 %vm409_vm0, %v8151_v20 }
 0x618   : > { %11934 = vmatmul.mubr.msk.f32.gmra.mrb[32].mxu1 %vm409_vm0, %v8152_v22 }
 0x619   : > { %11936 = vmatprep.mubr.msk.f32.mxu1 %vm409_vm0, %v8153_v0 }
 0x61c   : > { %11937 = vmatmul.mubr.msk.f32.gmra.mrb[34].mxu1 %vm409_vm0, %v8154_v26 }
 0x6ab   : > { %v11887_v40 = vpop.f32.mrb[0].mxu1 }
 0x6ac   : > { %v14901_v42 = vadd.f32 %v11887_v40, %v14898_v39  ;;  %v8338_v27 = vpop.f32.mrb[1].mxu1 }
 0x6ad   : > { %v14904_v24 = vadd.f32 %v14898_v39, %v8338_v27 }
 0x6ae   : > { %v8813_v43 = vmul.f32 %v8640_v28, %v14901_v42 }
 0x6af   : > { %v8812_v45 = vmul.f32 %v8635_v9, %v14904_v24  ;;  %v11890_v46 = vpop.f32.mrb[2].mxu1 }
 0x6b0   : > { %v14913_v48 = vadd.f32 %v11890_v46, %v14898_v39  ;;  %v8348_v49 = vpop.f32.mrb[3].mxu1  ;;  %v8849_v38 = vsel %vm409_vm0, %v8813_v43, 0.0 }
 0x6b1   : > { %v8848_v50 = vsel %vm409_vm0, %v8812_v45, 0.0  ;;  %v14918_v52 = vadd.f32 %v14898_v39, %v8348_v49 }
 0x6b2   : > { %v8815_v53 = vmul.f32 %v8650_v23, %v14913_v48  ;;  %v8850_v56 = vadd.f32 %v8849_v38, %v8848_v50  ;;  %v8725_v23 = vpop.permute.xlu0 %8724 }
 0x6b3   : > { %v8814_v41 = vmul.f32 %v8645_v29, %v14918_v52  ;;  %v11893_v55 = vpop.f32.mrb[4].mxu1 }
 0x6b4   : > { %v14923_v57 = vadd.f32 %v11893_v55, %v14898_v39  ;;  %v8358_v58 = vpop.f32.mrb[5].mxu1  ;;  %v8853_v62 = vsel %vm409_vm0, %v8815_v53, 0.0 }
 0x6b5   : > { %v8851_v60 = vsel %vm409_vm0, %v8814_v41, 0.0  ;;  %v14929_v61 = vadd.f32 %v14898_v39, %v8358_v58 }
 0x6b6   : > { %v8852_v21 = vadd.f32 %v8851_v60, %v8850_v56  ;;  %v8817_v63 = vmul.f32 %v8660_v31, %v14923_v57  ;;  %v8735_v53 = vpop.permute.xlu0 %8734 }
 0x6b7   : > { %v8816_v54 = vmul.f32 %v8655_v30, %v14929_v61  ;;  %v11896_v1 = vpop.f32.mrb[6].mxu1 }
 0x6b8   : > { %v8854_v2 = vadd.f32 %v8853_v62, %v8852_v21  ;;  %v14935_v3 = vadd.f32 %v11896_v1, %v14898_v39  ;;  %v8368_v7 = vpop.f32.mrb[7].mxu1  ;;  %v8857_v17 = vsel %vm409_vm0, %v8817_v63, 0.0 }
 0x6b9   : > { %v8855_v12 = vsel %vm409_vm0, %v8816_v54, 0.0  ;;  %v14939_v13 = vadd.f32 %v14898_v39, %v8368_v7 }
 0x6ba   : > { %v8856_v6 = vadd.f32 %v8855_v12, %v8854_v2  ;;  %v8819_v10 = vmul.f32 %v8670_v33, %v14935_v3 }
 0x6bb   : > { %v8818_v14 = vmul.f32 %v8665_v32, %v14939_v13  ;;  %v11899_v18 = vpop.f32.mrb[8].mxu1  ;;  %v8730_v32 = vpop.permute.xlu1 %8729 }
 0x6bc   : > { %v8858_v11 = vadd.f32 %v8857_v17, %v8856_v6  ;;  %v14945_v34 = vadd.f32 %v11899_v18, %v14898_v39  ;;  %v8378_v15 = vpop.f32.mrb[9].mxu1  ;;  %v8861_v20 = vsel %vm409_vm0, %v8819_v10, 0.0  ;;  %v8745_v17 = vpop.permute.xlu0 %8744 }
 0x6bd   : > { %v8859_v4 = vsel %vm409_vm0, %v8818_v14, 0.0  ;;  %v14949_v16 = vadd.f32 %v14898_v39, %v8378_v15 }
 0x6be   : > { %v8860_v5 = vadd.f32 %v8859_v4, %v8858_v11  ;;  %v8821_v0 = vmul.f32 %v8680_v36, %v14945_v34 }
 0x6bf   : > { %v8820_v22 = vmul.f32 %v8675_v35, %v14949_v16  ;;  %v11902_v26 = vpop.f32.mrb[10].mxu1  ;;  %v8740_v56 = vpop.permute.xlu1 %8739 }
 0x6c0   : > { %v8862_v9 = vadd.f32 %v8861_v20, %v8860_v5  ;;  %v14955_v28 = vadd.f32 %v11902_v26, %v14898_v39  ;;  %v8388_v29 = vpop.f32.mrb[11].mxu1  ;;  %v8865_v40 = vsel %vm409_vm0, %v8821_v0, 0.0 }
 0x6c1   : > { %v8863_v30 = vsel %vm409_vm0, %v8820_v22, 0.0  ;;  %v14959_v31 = vadd.f32 %v14898_v39, %v8388_v29  ;;  %v8755_v29 = vpop.permute.xlu0 %8754 }
 0x6c2   : > { %v8864_v33 = vadd.f32 %v8863_v30, %v8862_v9  ;;  %v8823_v36 = vmul.f32 %v8690_v25, %v14955_v28 }
 0x6c3   : > { %v8822_v35 = vmul.f32 %v14893_v37, %v14959_v31  ;;  %v11905_v27 = vpop.f32.mrb[12].mxu1  ;;  %v8750_v18 = vpop.permute.xlu1 %8749 }
 0x6c4   : > { %v8866_v43 = vadd.f32 %v8865_v40, %v8864_v33  ;;  %v14966_v45 = vadd.f32 %v11905_v27, %v14898_v39  ;;  %v8398_v46 = vpop.f32.mrb[13].mxu1  ;;  %v8869_v41 = vsel %vm409_vm0, %v8823_v36, 0.0 }
 0x6c5   : > { %v8867_v49 = vsel %vm409_vm0, %v8822_v35, 0.0  ;;  %v14970_v38 = vadd.f32 %v14898_v39, %v8398_v46 }
 0x6c6   : > { %v8868_v50 = vadd.f32 %v8867_v49, %v8866_v43  ;;  %v8825_v25 = vmul.f32 %v14910_v47, %v14966_v45 }
 0x6c7   : > { %v8824_v37 = vmul.f32 %v14907_v44, %v14970_v38  ;;  %v11908_v55 = vpop.f32.mrb[14].mxu1  ;;  %v8760_v40 = vpop.permute.xlu1 %8759 }
 0x6c8   : > { %v8870_v58 = vadd.f32 %v8869_v41, %v8868_v50  ;;  %v14978_v60 = vadd.f32 %v11908_v55, %v14898_v39  ;;  %v8408_v21 = vpop.f32.mrb[15].mxu1  ;;  %v8873_v1 = vsel %vm409_vm0, %v8825_v25, 0.0 }
 0x6c9   : > { %v8871_v62 = vsel %vm409_vm0, %v8824_v37, 0.0  ;;  %v14982_v63 = vadd.f32 %v14898_v39, %v8408_v21 }
 0x6ca   : > { %v8872_v54 = vadd.f32 %v8871_v62, %v8870_v58  ;;  %v8827_v47 = vmul.f32 %v8710_v51, %v14978_v60  ;;  %v8765_v58 = vpop.permute.xlu0 %8764 }
 0x6cb   : > { %v8826_v44 = vmul.f32 %v14925_v59, %v14982_v63  ;;  %v11911_v2 = vpop.f32.mrb[16].mxu1 }
 0x6cc   : > { %v8874_v7 = vadd.f32 %v8873_v1, %v8872_v54  ;;  %v14989_v12 = vadd.f32 %v11911_v2, %v14898_v39  ;;  %v8418_v6 = vpop.f32.mrb[17].mxu1  ;;  %v8877_v15 = vsel %vm409_vm0, %v8827_v47, 0.0  ;;  %v8770_v54 = vpop.permute.xlu1 %8769 }
 0x6cd   : > { %v8875_v10 = vsel %vm409_vm0, %v8826_v44, 0.0  ;;  %v14993_v14 = vadd.f32 %v14898_v39, %v8418_v6 }
 0x6ce   : > { %v8876_v11 = vadd.f32 %v8875_v10, %v8874_v7  ;;  %v8829_v51 = vmul.f32 %v8720_v19, %v14989_v12 }
 0x6cf   : > { %v8828_v59 = vmul.f32 %v8715_v8, %v14993_v14  ;;  %v11914_v4 = vpop.f32.mrb[18].mxu1 }
 0x6d0   : > { %v8878_v5 = vadd.f32 %v8877_v15, %v8876_v11  ;;  %v14999_v20 = vadd.f32 %v11914_v4, %v14898_v39  ;;  %v8428_v0 = vpop.f32.mrb[19].mxu1  ;;  %v8881_v30 = vsel %vm409_vm0, %v8829_v51, 0.0  ;;  %v8775_v51 = vpop.permute.xlu0 %8774 }
 0x6d1   : > { %v8879_v22 = vsel %vm409_vm0, %v8828_v59, 0.0  ;;  %v15003_v26 = vadd.f32 %v14898_v39, %v8428_v0 }
 0x6d2   : > { %v8880_v9 = vadd.f32 %v8879_v22, %v8878_v5  ;;  %v8831_v33 = vmul.f32 %v8730_v32, %v14999_v20  ;;  %v8780_v5 = vpop.permute.xlu1 %8779 }
 0x6d3   : > { %v8830_v19 = vmul.f32 %v8725_v23, %v15003_v26  ;;  %v11917_v8 = vpop.f32.mrb[20].mxu1 }
 0x6d4   : > { %v8882_v36 = vadd.f32 %v8881_v30, %v8880_v9  ;;  %v15009_v35 = vadd.f32 %v11917_v8, %v14898_v39  ;;  %v8438_v27 = vpop.f32.mrb[21].mxu1  ;;  %v8885_v50 = vsel %vm409_vm0, %v8831_v33, 0.0 }
 0x6d5   : > { %v8883_v43 = vsel %vm409_vm0, %v8830_v19, 0.0  ;;  %v15013_v46 = vadd.f32 %v14898_v39, %v8438_v27 }
 0x6d6   : > { %v8884_v49 = vadd.f32 %v8883_v43, %v8882_v36  ;;  %v8833_v41 = vmul.f32 %v8740_v56, %v15009_v35 }
 0x6d7   : > { %v8832_v32 = vmul.f32 %v8735_v53, %v15013_v46  ;;  %v11920_v23 = vpop.f32.mrb[22].mxu1 }
 0x6d8   : > { %v8886_v25 = vadd.f32 %v8885_v50, %v8884_v49  ;;  %v15019_v37 = vadd.f32 %v11920_v23, %v14898_v39  ;;  %v8448_v55 = vpop.f32.mrb[23].mxu1  ;;  %v8889_v47 = vsel %vm409_vm0, %v8833_v41, 0.0  ;;  %v8785_v50 = vpop.permute.xlu0 %8784 }
 0x6d9   : > { %v8887_v21 = vsel %vm409_vm0, %v8832_v32, 0.0  ;;  %v15023_v62 = vadd.f32 %v14898_v39, %v8448_v55  ;;  %v8790_v23 = vpop.permute.xlu1 %8789 }
 0x6da   : > { %v8888_v1 = vadd.f32 %v8887_v21, %v8886_v25  ;;  %v8835_v56 = vmul.f32 %v8750_v18, %v15019_v37 }
 0x6db   : > { %v8834_v53 = vmul.f32 %v8745_v17, %v15023_v62  ;;  %v11923_v44 = vpop.f32.mrb[24].mxu1 }
 0x6dc   : > { %v8890_v2 = vadd.f32 %v8889_v47, %v8888_v1  ;;  %v15029_v7 = vadd.f32 %v11923_v44, %v14898_v39  ;;  %v8458_v6 = vpop.f32.mrb[25].mxu1  ;;  %v8893_v59 = vsel %vm409_vm0, %v8835_v56, 0.0 }
 0x6dd   : > { %v8891_v10 = vsel %vm409_vm0, %v8834_v53, 0.0  ;;  %v15033_v11 = vadd.f32 %v14898_v39, %v8458_v6  ;;  %v8795_v6 = vpop.permute.xlu0 %8794 }
 0x6de   : > { %v8892_v15 = vadd.f32 %v8891_v10, %v8890_v2  ;;  %v8837_v4 = vmul.f32 %v8760_v40, %v15029_v7 }
 0x6df   : > { %v8836_v18 = vmul.f32 %v8755_v29, %v15033_v11  ;;  %v11926_v17 = vpop.f32.mrb[26].mxu1 }
 0x6e0   : > { %v8894_v0 = vadd.f32 %v8893_v59, %v8892_v15  ;;  %v15039_v22 = vadd.f32 %v11926_v17, %v14898_v39  ;;  %v8468_v9 = vpop.f32.mrb[27].mxu1  ;;  %v8897_v8 = vsel %vm409_vm0, %v8837_v4, 0.0  ;;  %v8800_v4 = vpop.permute.xlu1 %8799 }
 0x6e1   : > { %v8895_v30 = vsel %vm409_vm0, %v8836_v18, 0.0  ;;  %v15043_v33 = vadd.f32 %v14898_v39, %v8468_v9 }
 0x6e2   : > { %v8896_v19 = vadd.f32 %v8895_v30, %v8894_v0  ;;  %v8839_v36 = vmul.f32 %v8770_v54, %v15039_v22 }
 0x6e3   : > { %v8838_v40 = vmul.f32 %v8765_v58, %v15043_v33  ;;  %v11929_v29 = vpop.f32.mrb[28].mxu1 }
 0x6e4   : > { %v8898_v27 = vadd.f32 %v8897_v8, %v8896_v19  ;;  %v15049_v43 = vadd.f32 %v11929_v29, %v14898_v39  ;;  %v8478_v49 = vpop.f32.mrb[29].mxu1  ;;  %v8901_v55 = vsel %vm409_vm0, %v8839_v36, 0.0 }
 0x6e5   : > { %v8899_v41 = vsel %vm409_vm0, %v8838_v40, 0.0  ;;  %v15053_v32 = vadd.f32 %v14898_v39, %v8478_v49 }
 0x6e6   : > { %v8900_v25 = vadd.f32 %v8899_v41, %v8898_v27  ;;  %v8841_v21 = vmul.f32 %v8780_v5, %v15049_v43 }
 0x6e7   : > { %v8840_v58 = vmul.f32 %v8775_v51, %v15053_v32  ;;  %v11932_v54 = vpop.f32.mrb[30].mxu1 }
 0x6e8   : > { %v8902_v1 = vadd.f32 %v8901_v55, %v8900_v25  ;;  %v15059_v47 = vadd.f32 %v11932_v54, %v14898_v39  ;;  %v8488_v56 = vpop.f32.mrb[31].mxu1  ;;  %v8905_v10 = vsel %vm409_vm0, %v8841_v21, 0.0  ;;  %v8810_v25 = vpop.permute.xlu1 %8809 }
 0x6e9   : > { %v8903_v53 = vsel %vm409_vm0, %v8840_v58, 0.0  ;;  %v15063_v44 = vadd.f32 %v14898_v39, %v8488_v56 }
 0x6ea   : > { %v8904_v2 = vadd.f32 %v8903_v53, %v8902_v1  ;;  %v8843_v15 = vmul.f32 %v8790_v23, %v15059_v47  ;;  %v8805_v23 = vpop.permute.xlu0 %8804 }
 0x6eb   : > { %v8842_v59 = vmul.f32 %v8785_v50, %v15063_v44  ;;  %v11935_v51 = vpop.f32.mrb[32].mxu1 }
 0x6ec   : > { %v8906_v18 = vadd.f32 %v8905_v10, %v8904_v2  ;;  %v15069_v17 = vadd.f32 %v11935_v51, %v14898_v39  ;;  %v8498_v5 = vpop.f32.mrb[33].mxu1  ;;  %v8909_v19 = vsel %vm409_vm0, %v8843_v15, 0.0 }
 0x6ed   : > { %v8907_v0 = vsel %vm409_vm0, %v8842_v59, 0.0  ;;  %v15073_v9 = vadd.f32 %v14898_v39, %v8498_v5 }
 0x6ee   : > { %v8908_v30 = vadd.f32 %v8907_v0, %v8906_v18  ;;  %v8845_v8 = vmul.f32 %v8800_v4, %v15069_v17  ;;  %v8926_v18 = vld [vmem:[%s15298_s6] sm:$0xf] }
 0x6ef   : > { %v8844_v36 = vmul.f32 %v8795_v6, %v15073_v9  ;;  %v11938_v40 = vpop.f32.mrb[34].mxu1 }
 0x6f0   : > { %v8910_v29 = vadd.f32 %v8909_v19, %v8908_v30  ;;  %v15079_v27 = vadd.f32 %v11938_v40, %v14898_v39  ;;  %v8508_v49 = vpop.f32.mrb[35].mxu1  ;;  %v8913_v21 = vsel %vm409_vm0, %v8845_v8, 0.0  ;;  %v8931_v19 = vld [vmem:[%s15299_s7] sm:$0xf] }
 0x6f1   : > { %v8911_v50 = vsel %vm409_vm0, %v8844_v36, 0.0  ;;  %v15083_v41 = vadd.f32 %v14898_v39, %v8508_v49 }
 0x6f2   : > { %v8912_v55 = vadd.f32 %v8911_v50, %v8910_v29  ;;  %v8847_v58 = vmul.f32 %v8810_v25, %v15079_v27  ;;  %v8934_v29 = vld [vmem:[%s15300_s8] sm:$0xf] }
 0x6f3   : > { %v8846_v54 = vmul.f32 %v8805_v23, %v15083_v41 }
 0x6f4   : > { %v8914_v1 = vadd.f32 %v8913_v21, %v8912_v55  ;;  %v8917_v2 = vsel %vm409_vm0, %v8847_v58, 0.0 }
 0x6f5   : > { %v8915_v56 = vsel %vm409_vm0, %v8846_v54, 0.0 }
 0x6f6   : > { %v8916_v53 = vadd.f32 %v8915_v56, %v8914_v1  ;;  %v8948_v1 = vld [vmem:[%s15301_s9] sm:$0x1] }
 0x6f8   : > { %v8918_v6 = vadd.f32 %v8917_v2, %v8916_v53 }
 0x6fa   : > { %v8919_v10 = vrot.slane %v8918_v6, 4 }
 0x6fc   : > { %v8920_v15 = vadd.f32 %v8919_v10, %v8918_v6 }
 0x6fe   : > { %v8921_v39 = vrot.slane %v8920_v15, 2 }
 0x700   : > { %v8922_v59 = vadd.f32 %v8921_v39, %v8920_v15  ;;  %v8992_v15 = vlaneseq }
 0x702   : > { %v8923_v51 = vrot.slane %v8922_v59, 1  ;;  %v8993_v39 = vshrl.u32 %v8992_v15, 7 }
 0x704   : > { %v8924_v4 = vadd.f32 %v8923_v51, %v8922_v59  ;;  %v8994_v59 = vsub.s32 0, %v8993_v39  ;;  %v12886_v39 = vld [vmem:[#allocation2 + $0x73] sm:$0xff] }
 0x706   : > { %v8925_v5 = vmul.f32 0.00390625, %v8924_v4 }
 0x708   : > { %v8927_v0 = vmul.f32 %v8926_v18, %v8925_v5 }
 0x70a   : > { %v8928_v30 = vsel %vm416_vm3, %v8927_v0, 0.0 }
 0x70b   : > { %8929 = vadd.xlane.f32.xlu0 %v8928_v30 }
 0x798   : > { %v8930_v8 = vpop.xlane.xlu0 %8929 }
 0x799   : > { %v8932_v36 = vadd.f32 %v8931_v19, %v8930_v8 }
 0x79b   : > { %v8933_v40 = vmax.f32 %v8932_v36, 0.0 }
 0x79d   : > { %8937 = vperm.xlu1 %12869, %v8933_v40  }
 0x81c   : > { %v8938_v49 = vpop.permute.xlu1 %8937 }
 0x81d   : > { %v8940_v50 = vmul.f32 %v8938_v49, %v8934_v29 }
 0x81f   : > { %v8941_v23 = vsel %vm416_vm3, %v8940_v50, 0.0  ;;  %v12877_v50 = vld [vmem:[#allocation2 + $0x2b] sm:$0xff] }
 0x820   : > { %v8942_v25 = vrot.slane %v8941_v23, 4 }
 0x822   : > { %v8943_v55 = vadd.f32 %v8942_v25, %v8941_v23  ;;  %v12878_v25 = vld [vmem:[#allocation2 + $0x33] sm:$0xff] }
 0x824   : > { %v8944_v21 = vrot.slane %v8943_v55, 2 }
 0x826   : > { %v8945_v58 = vadd.f32 %v8944_v21, %v8943_v55 }
 0x828   : > { %v8946_v54 = vrot.slane %v8945_v58, 1 }
 0x82a   : > { %v8947_v56 = vadd.f32 %v8946_v54, %v8945_v58  ;;  %v12882_v54 = vld [vmem:[#allocation2 + $0x53] sm:$0xff] }
 0x82c   : > { %v8949_v53 = vadd.f32 %v8948_v1, %v8947_v56  ;;  %v12883_v56 = vld [vmem:[#allocation2 + $0x5b] sm:$0xff] }
 0x82e   : > { %v9883_v2 = vmul.f32 -1.442695, %v8949_v53 }
 0x830   : > { %12870 = vpow2.f32 %v9883_v2  ;;  %v12884_v2 = vld [vmem:[#allocation2 + $0x63] sm:$0xff] }
 0x83a   : > { %v12871_v6 = vpop.eup %12870 }
 0x83b   : > { %v8953_v10 = vadd.f32 1.0, %v12871_v6 }
 0x83d   : > { %12872 = vrcp.f32 %v8953_v10  ;;  %v12885_v10 = vld [vmem:[#allocation2 + $0x6b] sm:$0xff] }
 0x847   : > { %v12873_v51 = vpop.eup %12872 }
 0x848   : > { %v8995_v4 = vrot.slane %v12873_v51, %v8994_v59  ;;  %v12887_v51 = vld [vmem:[#allocation2 + $0x7b] sm:$0xff] }
 0x84a   : > { %v8996_v18 = vmul.f32 %v8995_v4, %v14904_v24  ;;  %v8997_v5 = vmul.f32 %v8995_v4, %v14901_v42  ;;  %v8998_v0 = vmul.f32 %v8995_v4, %v14918_v52  ;;  %v8999_v30 = vmul.f32 %v8995_v4, %v14913_v48 }
 0x84b   : > { %v9000_v19 = vmul.f32 %v8995_v4, %v14929_v61  ;;  %v9001_v8 = vmul.f32 %v8995_v4, %v14923_v57  ;;  %v9002_v36 = vmul.f32 %v8995_v4, %v14939_v13  ;;  %v9003_v40 = vmul.f32 %v8995_v4, %v14935_v3 }
 0x84c   : > { %v9004_v29 = vmul.f32 %v8995_v4, %v14949_v16  ;;  %v9005_v49 = vmul.f32 %v8995_v4, %v14945_v34  ;;  %v9006_v24 = vmul.f32 %v8995_v4, %v14959_v31  ;;  %v9007_v42 = vmul.f32 %v8995_v4, %v14955_v28 }
 0x84d   : > { %v9008_v52 = vmul.f32 %v8995_v4, %v14970_v38  ;;  %v9009_v48 = vmul.f32 %v8995_v4, %v14966_v45  ;;  %v9010_v61 = vmul.f32 %v8995_v4, %v14982_v63  ;;  %v9011_v57 = vmul.f32 %v8995_v4, %v14978_v60 }
 0x84e   : > { %v9012_v13 = vmul.f32 %v8995_v4, %v14993_v14  ;;  %v15127_v3 = vmul.f32 %v8995_v4, %v14989_v12  ;;  %v15130_v34 = vmul.f32 %v8995_v4, %v15003_v26  ;;  %v15133_v16 = vmul.f32 %v8995_v4, %v14999_v20 }
 0x84f   : > { %v15136_v28 = vmul.f32 %v8995_v4, %v15013_v46  ;;  %v15139_v31 = vmul.f32 %v8995_v4, %v15009_v35  ;;  %v15142_v45 = vmul.f32 %v8995_v4, %v15023_v62  ;;  %v15145_v38 = vmul.f32 %v8995_v4, %v15019_v37 }
 0x850   : > { %v15148_v60 = vmul.f32 %v8995_v4, %v15033_v11  ;;  %v15151_v63 = vmul.f32 %v8995_v4, %v15029_v7  ;;  %v15154_v12 = vmul.f32 %v8995_v4, %v15043_v33  ;;  %v15157_v14 = vmul.f32 %v8995_v4, %v15039_v22  ;;  %v12874_v22 = vld [vmem:[#allocation2 + $0x13] sm:$0xff] }
 0x851   : > { %v15160_v20 = vmul.f32 %v8995_v4, %v15053_v32  ;;  %v15163_v26 = vmul.f32 %v8995_v4, %v15049_v43  ;;  %v15166_v35 = vmul.f32 %v8995_v4, %v15063_v44  ;;  %v15169_v46 = vmul.f32 %v8995_v4, %v15059_v47  ;;  %v12875_v43 = vld [vmem:[#allocation2 + $0x1b] sm:$0xff]  ;;  %v12876_v47 = vld [vmem:[#allocation2 + $0x23] sm:$0xff] }
 0x852   : > { %v15177_v37 = vmul.f32 %v8995_v4, %v15073_v9  ;;  %v15180_v62 = vmul.f32 %v8995_v4, %v15069_v17  ;;  %v15183_v7 = vmul.f32 %v8995_v4, %v15083_v41  ;;  %v15186_v11 = vmul.f32 %v8995_v4, %v15079_v27  ;;  %v12879_v17 = vld [vmem:[#allocation2 + $0x3b] sm:$0xff]  ;;  %v12880_v41 = vld [vmem:[#allocation2 + $0x43] sm:$0xff]  ;;  %v12881_v27 = vld [vmem:[#allocation2 + $0x4b] sm:$0xff] }
 0x853   : > { %v9032_v33 = vadd.f32 %v12874_v22, %v8996_v18  ;;  %v9033_v32 = vadd.f32 %v12875_v43, %v8997_v5  ;;  %v9034_v44 = vadd.f32 %v12876_v47, %v8998_v0  ;;  %v9035_v23 = vadd.f32 %v12877_v50, %v8999_v30  ;;  %v12888_v18 = vld [vmem:[#allocation2 + $0x83] sm:$0xff]  ;;  %v12889_v0 = vld [vmem:[#allocation2 + $0x8b] sm:$0xff]  ;;  %v12899_v22 = vld [vmem:[#allocation2 + $0xdb] sm:$0xff] }
 0x854   : > { %v9036_v9 = vadd.f32 %v12878_v25, %v9000_v19  ;;  %v9037_v55 = vadd.f32 %v12879_v17, %v9001_v8  ;;  %v9038_v21 = vadd.f32 %v12880_v41, %v9002_v36  ;;  %v9039_v58 = vadd.f32 %v12881_v27, %v9003_v40  ;;  %v12890_v19 = vld [vmem:[#allocation2 + $0x93] sm:$0xff]  ;;  %v12891_v36 = vld [vmem:[#allocation2 + $0x9b] sm:$0xff]  ;;  %v12908_v25 = vld [vmem:[#allocation2 + $0x123] sm:$0xff] }
 0x855   : > { %v9040_v1 = vadd.f32 %v12882_v54, %v9004_v29  ;;  %v9041_v53 = vadd.f32 %v12883_v56, %v9005_v49  ;;  %v9042_v6 = vadd.f32 %v12884_v2, %v9006_v24  ;;  %v9043_v15 = vadd.f32 %v12885_v10, %v9007_v42  ;;  %9068 = vst.msk [vmem:[%s15174_s22] sm:$0xff] %vm409_vm0, %v9032_v33  ;;  %v12892_v29 = vld [vmem:[#allocation2 + $0xa3] sm:$0xff]  ;;  %v12893_v24 = vld [vmem:[#allocation2 + $0xab] sm:$0xff]  ;;  %v12903_v47 = vld [vmem:[#allocation2 + $0xfb] sm:$0xff] }
 0x856   : > { %9069 = vst.msk [vmem:[%s15174_s22 + $0x8] sm:$0xff] %vm409_vm0, %v9033_v32  ;;  %9070 = vst.msk [vmem:[%s15174_s22 + $0x10] sm:$0xff] %vm409_vm0, %v9034_v44  ;;  %v9044_v59 = vadd.f32 %v12886_v39, %v9008_v52  ;;  %v9045_v4 = vadd.f32 %v12887_v51, %v9009_v48  ;;  %v9046_v5 = vadd.f32 %v12888_v18, %v9010_v61  ;;  %v12894_v52 = vld [vmem:[#allocation2 + $0xb3] sm:$0xff]  ;;  %v12895_v61 = vld [vmem:[#allocation2 + $0xbb] sm:$0xff] }
 0x857   : > { %9071 = vst.msk [vmem:[%s15174_s22 + $0x18] sm:$0xff] %vm409_vm0, %v9035_v23  ;;  %v9047_v30 = vadd.f32 %v12889_v0, %v9011_v57  ;;  %9072 = vst.msk [vmem:[%s15174_s22 + $0x20] sm:$0xff] %vm409_vm0, %v9036_v9  ;;  %v9048_v8 = vadd.f32 %v12890_v19, %v9012_v13  ;;  %v9049_v40 = vadd.f32 %v12891_v36, %v15127_v3  ;;  %v12896_v13 = vld [vmem:[#allocation2 + $0xc3] sm:$0xff]  ;;  %v12909_v17 = vld [vmem:[#allocation2 + $0x12b] sm:$0xff] }
 0x858   : > { %9073 = vst.msk [vmem:[%s15174_s22 + $0x28] sm:$0xff] %vm409_vm0, %v9037_v55  ;;  %9074 = vst.msk [vmem:[%s15174_s22 + $0x30] sm:$0xff] %vm409_vm0, %v9038_v21  ;;  %v9050_v49 = vadd.f32 %v12892_v29, %v15130_v34  ;;  %v9051_v42 = vadd.f32 %v12893_v24, %v15133_v16  ;;  %v9052_v48 = vadd.f32 %v12894_v52, %v15136_v28  ;;  %v12897_v34 = vld [vmem:[#allocation2 + $0xcb] sm:$0xff]  ;;  %v12898_v28 = vld [vmem:[#allocation2 + $0xd3] sm:$0xff] }
 0x859   : > { %9075 = vst.msk [vmem:[%s15174_s22 + $0x38] sm:$0xff] %vm409_vm0, %v9039_v58  ;;  %9076 = vst.msk [vmem:[%s15174_s22 + $0x40] sm:$0xff] %vm409_vm0, %v9040_v1  ;;  %v9053_v57 = vadd.f32 %v12895_v61, %v15139_v31  ;;  %v9054_v3 = vadd.f32 %v12896_v13, %v15142_v45  ;;  %v9055_v16 = vadd.f32 %v12897_v34, %v15145_v38  ;;  %v12900_v33 = vld [vmem:[#allocation2 + $0xe3] sm:$0xff]  ;;  %v12901_v38 = vld [vmem:[#allocation2 + $0xeb] sm:$0xff] }
 0x85a   : > { %9077 = vst.msk [vmem:[%s15174_s22 + $0x48] sm:$0xff] %vm409_vm0, %v9041_v53  ;;  %9078 = vst.msk [vmem:[%s15174_s22 + $0x50] sm:$0xff] %vm409_vm0, %v9042_v6  ;;  %v9056_v31 = vadd.f32 %v12898_v28, %v15148_v60  ;;  %v9057_v45 = vadd.f32 %v12899_v22, %v15151_v63  ;;  %v9058_v43 = vadd.f32 %v12900_v33, %v15154_v12  ;;  %v12902_v60 = vld [vmem:[#allocation2 + $0xf3] sm:$0xff]  ;;  %v12904_v44 = vld [vmem:[#allocation2 + $0x103] sm:$0xff] }
 0x85b   : > { %9079 = vst.msk [vmem:[%s15174_s22 + $0x58] sm:$0xff] %vm409_vm0, %v9043_v15  ;;  %9080 = vst.msk [vmem:[%s15174_s22 + $0x60] sm:$0xff] %vm409_vm0, %v9044_v59  ;;  %v9059_v32 = vadd.f32 %v12901_v38, %v15157_v14  ;;  %v9060_v63 = vadd.f32 %v12902_v60, %v15160_v20  ;;  %v9061_v12 = vadd.f32 %v12903_v47, %v15163_v26  ;;  %v12905_v14 = vld [vmem:[#allocation2 + $0x10b] sm:$0xff]  ;;  %v12906_v20 = vld [vmem:[#allocation2 + $0x113] sm:$0xff] }
 0x85c   : > { %9081 = vst.msk [vmem:[%s15174_s22 + $0x68] sm:$0xff] %vm409_vm0, %v9045_v4  ;;  %9082 = vst.msk [vmem:[%s15174_s22 + $0x70] sm:$0xff] %vm409_vm0, %v9046_v5  ;;  %v9062_v50 = vadd.f32 %v12904_v44, %v15166_v35  ;;  %v9063_v23 = vadd.f32 %v12905_v14, %v15169_v46  ;;  %v9064_v26 = vadd.f32 %v12906_v20, %v15177_v37  ;;  %v12907_v35 = vld [vmem:[#allocation2 + $0x11b] sm:$0xff] }
 0x85d   : > { %9083 = vst.msk [vmem:[%s15174_s22 + $0x78] sm:$0xff] %vm409_vm0, %v9047_v30  ;;  %9084 = vst.msk [vmem:[%s15174_s22 + $0x80] sm:$0xff] %vm409_vm0, %v9048_v8  ;;  %v9065_v46 = vadd.f32 %v12907_v35, %v15180_v62  ;;  %v9066_v9 = vadd.f32 %v12908_v25, %v15183_v7  ;;  %v9067_v55 = vadd.f32 %v12909_v17, %v15186_v11 }
 0x85e   : > { %9085 = vst.msk [vmem:[%s15174_s22 + $0x88] sm:$0xff] %vm409_vm0, %v9049_v40  ;;  %9086 = vst.msk [vmem:[%s15174_s22 + $0x90] sm:$0xff] %vm409_vm0, %v9050_v49 }
 0x85f   : > { %9087 = vst.msk [vmem:[%s15174_s22 + $0x98] sm:$0xff] %vm409_vm0, %v9051_v42  ;;  %9088 = vst.msk [vmem:[%s15174_s22 + $0xa0] sm:$0xff] %vm409_vm0, %v9052_v48 }
 0x860   : > { %9089 = vst.msk [vmem:[%s15174_s22 + $0xa8] sm:$0xff] %vm409_vm0, %v9053_v57  ;;  %9090 = vst.msk [vmem:[%s15174_s22 + $0xb0] sm:$0xff] %vm409_vm0, %v9054_v3 }
 0x861   : > { %9091 = vst.msk [vmem:[%s15174_s22 + $0xb8] sm:$0xff] %vm409_vm0, %v9055_v16  ;;  %9092 = vst.msk [vmem:[%s15174_s22 + $0xc0] sm:$0xff] %vm409_vm0, %v9056_v31 }
 0x862   : > { %9093 = vst.msk [vmem:[%s15174_s22 + $0xc8] sm:$0xff] %vm409_vm0, %v9057_v45  ;;  %9094 = vst.msk [vmem:[%s15174_s22 + $0xd0] sm:$0xff] %vm409_vm0, %v9058_v43 }
 0x863   : > { %9095 = vst.msk [vmem:[%s15174_s22 + $0xd8] sm:$0xff] %vm409_vm0, %v9059_v32  ;;  %9096 = vst.msk [vmem:[%s15174_s22 + $0xe0] sm:$0xff] %vm409_vm0, %v9060_v63 }
 0x864   : > { %9097 = vst.msk [vmem:[%s15174_s22 + $0xe8] sm:$0xff] %vm409_vm0, %v9061_v12  ;;  %9098 = vst.msk [vmem:[%s15174_s22 + $0xf0] sm:$0xff] %vm409_vm0, %v9062_v50 }
 0x865   : > { %9099 = vst.msk [vmem:[%s15174_s22 + $0xf8] sm:$0xff] %vm409_vm0, %v9063_v23  ;;  %9100 = vst.msk [vmem:[%s15174_s22 + $0x100] sm:$0xff] %vm409_vm0, %v9064_v26 }
 0x866   : > { %9101 = vst.msk [vmem:[%s15174_s22 + $0x108] sm:$0xff] %vm409_vm0, %v9065_v46  ;;  %9102 = vst.msk [vmem:[%s15174_s22 + $0x110] sm:$0xff] %vm409_vm0, %v9066_v9 }
 0x867   : > { %9103 = vst.msk [vmem:[%s15174_s22 + $0x118] sm:$0xff] %vm409_vm0, %v9067_v55 }
 0x868 PF: > { %p21_p9 = scmp.ge.s32.totalorder %s13197_s26, 4   ;;  %s15314_s13 = smov %s13026_s14 }
 0x869   : > { %s15315_s14 = smov %s13030_s15  ;;  %s15316_s15 = smov %s13208_s29 }
 0x86a   : > { %s15317_s16 = smov %s13197_s26  ;;  %23 = sbr.rel (!%p21_p9) target bundleno = 4 (0x4), region = 139 }
 0x871   :  { %9125 = vsyncpa [#allocation5], 1 }
 0x872   :  { %9127 = vsyncpa [#allocation5 + $0x1], 1 }
 0x873   :  { %9128 = vsyncpa [#allocation7], 1 }

</bundles_post_ra>
